<compile_context>
chip_gen: v5e
topology: v5e:2x2
jax: 0.10.0
libtpu: 0.0.40
codegen_flags: <defaults>
</compile_context>

<pallas_src>
import numpy as np
import jax
import jax.numpy as jnp
from jax.experimental import pallas as pl
from jax.experimental.pallas import tpu as pltpu

_BN_EPS = 1e-5
_LRELU_SLOPE = 0.2


# ------------------------- tiny host-side tables ----------------------------

def _stage2_target_table(B):
    """tgt[t, 0, b*49 + oh*7 + ow] = H1 column index feeding tap t, or -1.

    For Conv2d(k=4, s=2, p=1) on the 14x14 stage-1 output:
      tap t = kh*4 + kw reads H1[b, :, r, c] with r = 2*oh + kh - 1,
      c = 2*ow + kw - 1; out-of-range (zero-padded) taps are marked -1 and
      never match the >=0 row iota, i.e. they gather zeros.
    H1 columns are laid out as b*196 + r*14 + c.
    """
    tgt = np.full((16, 1, B * 49), -1, np.int32)
    for kh in range(4):
        for kw in range(4):
            t = kh * 4 + kw
            for b in range(B):
                for oh in range(7):
                    for ow in range(7):
                        r = 2 * oh + kh - 1
                        c = 2 * ow + kw - 1
                        if 0 <= r < 14 and 0 <= c < 14:
                            tgt[t, 0, b * 49 + oh * 7 + ow] = b * 196 + r * 14 + c
    return tgt


def _batch_indicator(B):
    """ind[b*49 + s, b'] = 1 iff b == b' (for the one-shot head reduction)."""
    ind = np.zeros((B * 49, B), np.float32)
    for b in range(B):
        ind[b * 49:(b + 1) * 49, b] = 1.0
    return ind


# ------------------------------ Pallas kernel -------------------------------

def _bn_lrelu(y, gamma, beta):
    """BatchNorm2d (training-mode batch stats per channel row) + LeakyReLU(0.2).

    Two-pass (centered) statistics, biased variance, eps=1e-5.
    y: (C, N*H*W) f32; gamma/beta: (C, 1) f32.
    """
    inv_n = 1.0 / y.shape[1]
    mean = jnp.sum(y, axis=1, keepdims=True) * inv_n
    yc = y - mean
    var = jnp.sum(yc * yc, axis=1, keepdims=True) * inv_n     # biased variance
    scale = gamma * jax.lax.rsqrt(var + _BN_EPS)
    yb = yc * scale + beta
    return jnp.where(yb >= 0.0, yb, _LRELU_SLOPE * yb)


def _discriminator_kernel(p1t_ref, w1_ref, w2_ref, tgt_ref, wlt_ref, ind_ref,
                          pp_ref, out_ref, p2t_ref):
    """Whole Discriminator forward on VMEM-resident data.

    Layout: activations are (channels, batch*spatial) -> lane-dense, and the
    NCHW flatten before the Linear head is a no-op.

    pp_ref packs per-channel params, columns:
      [conv1 bias, bn1 gamma, bn1 beta, conv2 bias, bn2 gamma, bn2 beta,
       linear bias (broadcast), unused].
    """
    n_bs1 = p1t_ref.shape[1]          # B*196
    n_bs2 = p2t_ref.shape[1]          # B*49

    # ---- Stage 1: Conv(1->16, k4 s2 p1) as bf16 GEMM + BN + LeakyReLU ------
    y1 = jnp.dot(w1_ref[...], p1t_ref[...],
                 preferred_element_type=jnp.float32)           # (16, B*196) f32
    y1 = y1 + pp_ref[:, 0:1]
    h1 = _bn_lrelu(y1, pp_ref[:, 1:2], pp_ref[:, 2:3])         # f32, SSA (vregs)
    h1b = h1.astype(jnp.bfloat16)                               # MXU operand

    # ---- Stage-2 im2col: 16 per-tap gather-by-matmul over the full batch ---
    # One-hot gather matrix built in-kernel (no HBM constant):
    #   onehot[i, j] = 1 iff i == tgt[t, j]   (tgt == -1 -> all-zero column)
    row_ids = jax.lax.broadcasted_iota(jnp.int32, (n_bs1, n_bs2), 0)
    for t in range(16):                                         # static unroll
        onehot = jnp.where(row_ids == tgt_ref[t], 1.0, 0.0).astype(jnp.bfloat16)
        blk = jnp.dot(h1b, onehot,
                      preferred_element_type=jnp.float32)       # (16, B*49) f32
        # Sublane-aligned row block, full lane width -> unmasked-friendly store.
        p2t_ref[t * 16:(t + 1) * 16, :] = blk.astype(jnp.bfloat16)

    # ---- Stage 2: Conv(16->16, k4 s2 p1) as bf16 GEMM + BN + LeakyReLU -----
    y2 = jnp.dot(w2_ref[...], p2t_ref[...],
                 preferred_element_type=jnp.float32)            # (16, B*49) f32
    y2 = y2 + pp_ref[:, 3:4]
    h2 = _bn_lrelu(y2, pp_ref[:, 4:5], pp_ref[:, 5:6])          # f32, SSA

    # ---- Head: View(16*7*7) -> Linear(784, 1) -> Sigmoid (batched) ---------
    # H2[c, b*49 + s] already matches PyTorch's NCHW flatten order, so the
    # Linear is an elementwise product with the pre-tiled head weight followed
    # by a per-batch reduction done on the MXU via the block indicator.
    prod = h2 * wlt_ref[...]                                    # (16, B*49) f32
    zz = jnp.dot(prod, ind_ref[...],
                 preferred_element_type=jnp.float32)            # (16, B)
    z = jnp.sum(zz, axis=0, keepdims=True) + pp_ref[0:1, 6:7]   # (1, B)
    out_ref[...] = 1.0 / (1.0 + jnp.exp(-z))                    # exact sigmoid


# -------------------------------- JAX glue ----------------------------------

def init_params(key):
    k = jax.random.split(key, 10)
    return {
        # Conv2d(1, 16, 4) weight/bias
        "w1": 0.10 * jax.random.normal(k[0], (16, 1, 4, 4), jnp.float32),
        "b1": 0.10 * jax.random.normal(k[1], (16,), jnp.float32),
        # BatchNorm2d(16) affine params
        "g1": 1.0 + 0.10 * jax.random.normal(k[2], (16,), jnp.float32),
        "be1": 0.10 * jax.random.normal(k[3], (16,), jnp.float32),
        # Conv2d(16, 16, 4) weight/bias
        "w2": 0.05 * jax.random.normal(k[4], (16, 16, 4, 4), jnp.float32),
        "b2": 0.10 * jax.random.normal(k[5], (16,), jnp.float32),
        # BatchNorm2d(16) affine params
        "g2": 1.0 + 0.10 * jax.random.normal(k[6], (16,), jnp.float32),
        "be2": 0.10 * jax.random.normal(k[7], (16,), jnp.float32),
        # Linear(784, 1) weight/bias (PyTorch layout: (out, in))
        "wl": 0.05 * jax.random.normal(k[8], (1, 16 * 7 * 7), jnp.float32),
        "bl": 0.10 * jax.random.normal(k[9], (1,), jnp.float32),
    }


@jax.jit
def discriminator_forward(x_nchw, params):
    x = x_nchw.astype(jnp.float32)
    B = x.shape[0]

    # Stage-1 im2col (transposed): P1^T[kh*4+kw, b*196 + oh*14 + ow]
    #   = zero-padded input[b, 2*oh+kh, 2*ow+kw].  Pure input prep; XLA fuses.
    xp = jnp.pad(x.reshape(B, 28, 28), ((0, 0), (1, 1), (1, 1)))
    taps = [xp[:, kh:kh + 28:2, kw:kw + 28:2].reshape(B, 196)
            for kh in range(4) for kw in range(4)]
    p1t = jnp.stack(taps, axis=0).reshape(16, B * 196).astype(jnp.bfloat16)

    # Weight / parameter prep (pure relayout, folded into the jit).
    # bf16 MXU operands (NOT int8: v7x has no integer MXU path).
    w1m = params["w1"].reshape(16, 16).astype(jnp.bfloat16)               # (cout, kh*4+kw)
    w2m = (jnp.transpose(params["w2"], (0, 2, 3, 1))
           .reshape(16, 256).astype(jnp.bfloat16))                        # (cout, (kh,kw,cin))
    wlt = jnp.tile(params["wl"].reshape(16, 49), (1, B))                  # (16, B*49) f32
    pp = jnp.stack([params["b1"], params["g1"], params["be1"],
                    params["b2"], params["g2"], params["be2"],
                    jnp.broadcast_to(params["bl"], (16,)),
                    jnp.zeros((16,), jnp.float32)], axis=1)               # (16, 8) f32

    # Tiny host-built tables (B is static at trace time): ~6 KB + ~1 KB.
    tgt = jnp.asarray(_stage2_target_table(B))                            # (16, 1, B*49) i32
    ind = jnp.asarray(_batch_indicator(B))                                # (B*49, B) f32

    out = pl.pallas_call(
        _discriminator_kernel,
        out_shape=jax.ShapeDtypeStruct((1, B), jnp.float32),
        in_specs=[pl.BlockSpec(memory_space=pltpu.MemorySpace.VMEM)] * 7,
        out_specs=pl.BlockSpec(memory_space=pltpu.MemorySpace.VMEM),
        scratch_shapes=[
            pltpu.VMEM((256, B * 49), jnp.bfloat16),    # P2 (stage-2 patches)
        ],
    )(p1t, w1m, w2m, tgt, wlt, ind, pp)

    return out.reshape(B, 1)


if __name__ == "__main__":
    key = jax.random.PRNGKey(0)
    pkey, xkey = jax.random.split(key)
    params = init_params(pkey)

    # MNIST-shaped input; spatial size 28 is required by Linear(16*7*7, 1).
    x = jax.random.normal(xkey, (2, 1, 28, 28), jnp.float32)

    out = discriminator_forward(x, params)
    out = jax.block_until_ready(out)
    assert out.shape == (2, 1), out.shape
    assert bool(jnp.all((out >= 0.0) & (out <= 1.0)))
    print("KERNEL_OK")
</pallas_src>

<mosaic_0001>
module attributes {stable_mosaic.version = 11 : i64} {
  func.func @_discriminator_kernel(%arg0: memref<16x392xbf16, #tpu.memory_space<vmem>>, %arg1: memref<16x16xbf16, #tpu.memory_space<vmem>>, %arg2: memref<16x256xbf16, #tpu.memory_space<vmem>>, %arg3: memref<16x1x98xi32, #tpu.memory_space<vmem>>, %arg4: memref<16x98xf32, #tpu.memory_space<vmem>>, %arg5: memref<98x2xf32, #tpu.memory_space<vmem>>, %arg6: memref<16x8xf32, #tpu.memory_space<vmem>>, %arg7: memref<1x2xf32, #tpu.memory_space<vmem>>, %arg8: memref<256x98xbf16, #tpu.memory_space<vmem>>) attributes {dimension_semantics = [], scalar_prefetch = 0 : i64, scratch_operands = 1 : i64, tpu.core_type = #tpu.core_type<tc>} {
    %c0 = arith.constant 0 : index
    %c0_0 = arith.constant 0 : index
    %0 = vector.load %arg1[%c0, %c0_0] : memref<16x16xbf16, #tpu.memory_space<vmem>>, vector<16x16xbf16>
    %c0_1 = arith.constant 0 : index
    %c0_2 = arith.constant 0 : index
    %1 = vector.load %arg0[%c0_1, %c0_2] : memref<16x392xbf16, #tpu.memory_space<vmem>>, vector<16x392xbf16>
    %cst = arith.constant dense<0.000000e+00> : vector<16x392xf32>
    %2 = tpu.matmul %0, %1, %cst {dimension_numbers = #tpu.dot_dimension_numbers<[1], [0], [0], [1], [0, 0, 1, 1], [], []>} : vector<16x16xbf16>, vector<16x392xbf16>, vector<16x392xf32> -> vector<16x392xf32>
    %c0_3 = arith.constant 0 : index
    %c0_4 = arith.constant 0 : index
    %3 = vector.load %arg6[%c0_3, %c0_4] : memref<16x8xf32, #tpu.memory_space<vmem>>, vector<16x1xf32>
    %4 = vector.broadcast %3 : vector<16x1xf32> to vector<16x392xf32>
    %5 = arith.addf %2, %4 : vector<16x392xf32>
    %c0_5 = arith.constant 0 : index
    %c1 = arith.constant 1 : index
    %6 = vector.load %arg6[%c0_5, %c1] : memref<16x8xf32, #tpu.memory_space<vmem>>, vector<16x1xf32>
    %c0_6 = arith.constant 0 : index
    %c2 = arith.constant 2 : index
    %7 = vector.load %arg6[%c0_6, %c2] : memref<16x8xf32, #tpu.memory_space<vmem>>, vector<16x1xf32>
    %cst_7 = arith.constant dense<0.000000e+00> : vector<16xf32>
    %8 = vector.multi_reduction <add>, %5, %cst_7 [1] : vector<16x392xf32> to vector<16xf32>
    %9 = vector.shape_cast %8 : vector<16xf32> to vector<16x1xf32>
    %cst_8 = arith.constant 0.00255102036 : f32
    %10 = vector.broadcast %cst_8 : f32 to vector<16x1xf32>
    %11 = arith.mulf %9, %10 : vector<16x1xf32>
    %12 = vector.broadcast %11 : vector<16x1xf32> to vector<16x392xf32>
    %13 = arith.subf %5, %12 : vector<16x392xf32>
    %14 = arith.mulf %13, %13 : vector<16x392xf32>
    %cst_9 = arith.constant dense<0.000000e+00> : vector<16xf32>
    %15 = vector.multi_reduction <add>, %14, %cst_9 [1] : vector<16x392xf32> to vector<16xf32>
    %16 = vector.shape_cast %15 : vector<16xf32> to vector<16x1xf32>
    %cst_10 = arith.constant 0.00255102036 : f32
    %17 = vector.broadcast %cst_10 : f32 to vector<16x1xf32>
    %18 = arith.mulf %16, %17 : vector<16x1xf32>
    %cst_11 = arith.constant 9.99999974E-6 : f32
    %19 = vector.broadcast %cst_11 : f32 to vector<16x1xf32>
    %20 = arith.addf %18, %19 : vector<16x1xf32>
    %21 = math.rsqrt %20 : vector<16x1xf32>
    %22 = arith.mulf %6, %21 : vector<16x1xf32>
    %23 = vector.broadcast %22 : vector<16x1xf32> to vector<16x392xf32>
    %24 = arith.mulf %13, %23 : vector<16x392xf32>
    %25 = vector.broadcast %7 : vector<16x1xf32> to vector<16x392xf32>
    %26 = arith.addf %24, %25 : vector<16x392xf32>
    %cst_12 = arith.constant 0.000000e+00 : f32
    %27 = vector.broadcast %cst_12 : f32 to vector<16x392xf32>
    %28 = arith.cmpf oge, %26, %27 : vector<16x392xf32>
    %cst_13 = arith.constant 2.000000e-01 : f32
    %29 = vector.broadcast %cst_13 : f32 to vector<16x392xf32>
    %30 = arith.mulf %29, %26 : vector<16x392xf32>
    %31 = arith.select %28, %26, %30 : vector<16x392xi1>, vector<16x392xf32>
    %32 = arith.truncf %31 : vector<16x392xf32> to vector<16x392xbf16>
    %33 = tpu.iota {dimensions = array<i32: 0>} : vector<392x98xi32>
    %c0_14 = arith.constant 0 : index
    %c0_15 = arith.constant 0 : index
    %c0_16 = arith.constant 0 : index
    %34 = vector.load %arg3[%c0_14, %c0_15, %c0_16] : memref<16x1x98xi32, #tpu.memory_space<vmem>>, vector<1x1x98xi32>
    %35 = vector.shape_cast %34 : vector<1x1x98xi32> to vector<1x98xi32>
    %36 = vector.broadcast %35 : vector<1x98xi32> to vector<392x98xi32>
    %37 = arith.cmpi eq, %33, %36 : vector<392x98xi32>
    %cst_17 = arith.constant 1.000000e+00 : f32
    %cst_18 = arith.constant 0.000000e+00 : f32
    %38 = vector.broadcast %cst_17 : f32 to vector<392x98xf32>
    %39 = vector.broadcast %cst_18 : f32 to vector<392x98xf32>
    %40 = arith.select %37, %38, %39 : vector<392x98xi1>, vector<392x98xf32>
    %41 = arith.truncf %40 : vector<392x98xf32> to vector<392x98xbf16>
    %cst_19 = arith.constant dense<0.000000e+00> : vector<16x98xf32>
    %42 = tpu.matmul %32, %41, %cst_19 {dimension_numbers = #tpu.dot_dimension_numbers<[1], [0], [0], [1], [0, 0, 1, 1], [], []>} : vector<16x392xbf16>, vector<392x98xbf16>, vector<16x98xf32> -> vector<16x98xf32>
    %43 = arith.truncf %42 : vector<16x98xf32> to vector<16x98xbf16>
    %c0_20 = arith.constant 0 : index
    %c0_21 = arith.constant 0 : index
    %44 = vector.load %arg8[%c0_20, %c0_21] : memref<256x98xbf16, #tpu.memory_space<vmem>>, vector<16x98xbf16>
    tpu.vector_store %arg8[%c0_20, %c0_21], %43 {strides = array<i32>} : memref<256x98xbf16, #tpu.memory_space<vmem>>, vector<16x98xbf16>,
    %c1_22 = arith.constant 1 : index
    %c0_23 = arith.constant 0 : index
    %c0_24 = arith.constant 0 : index
    %45 = vector.load %arg3[%c1_22, %c0_23, %c0_24] : memref<16x1x98xi32, #tpu.memory_space<vmem>>, vector<1x1x98xi32>
    %46 = vector.shape_cast %45 : vector<1x1x98xi32> to vector<1x98xi32>
    %47 = vector.broadcast %46 : vector<1x98xi32> to vector<392x98xi32>
    %48 = arith.cmpi eq, %33, %47 : vector<392x98xi32>
    %cst_25 = arith.constant 1.000000e+00 : f32
    %cst_26 = arith.constant 0.000000e+00 : f32
    %49 = vector.broadcast %cst_25 : f32 to vector<392x98xf32>
    %50 = vector.broadcast %cst_26 : f32 to vector<392x98xf32>
    %51 = arith.select %48, %49, %50 : vector<392x98xi1>, vector<392x98xf32>
    %52 = arith.truncf %51 : vector<392x98xf32> to vector<392x98xbf16>
    %cst_27 = arith.constant dense<0.000000e+00> : vector<16x98xf32>
    %53 = tpu.matmul %32, %52, %cst_27 {dimension_numbers = #tpu.dot_dimension_numbers<[1], [0], [0], [1], [0, 0, 1, 1], [], []>} : vector<16x392xbf16>, vector<392x98xbf16>, vector<16x98xf32> -> vector<16x98xf32>
    %54 = arith.truncf %53 : vector<16x98xf32> to vector<16x98xbf16>
    %c16 = arith.constant 16 : index
    %c0_28 = arith.constant 0 : index
    %55 = vector.load %arg8[%c16, %c0_28] : memref<256x98xbf16, #tpu.memory_space<vmem>>, vector<16x98xbf16>
    tpu.vector_store %arg8[%c16, %c0_28], %54 {strides = array<i32>} : memref<256x98xbf16, #tpu.memory_space<vmem>>, vector<16x98xbf16>,
    %c2_29 = arith.constant 2 : index
    %c0_30 = arith.constant 0 : index
    %c0_31 = arith.constant 0 : index
    %56 = vector.load %arg3[%c2_29, %c0_30, %c0_31] : memref<16x1x98xi32, #tpu.memory_space<vmem>>, vector<1x1x98xi32>
    %57 = vector.shape_cast %56 : vector<1x1x98xi32> to vector<1x98xi32>
    %58 = vector.broadcast %57 : vector<1x98xi32> to vector<392x98xi32>
    %59 = arith.cmpi eq, %33, %58 : vector<392x98xi32>
    %cst_32 = arith.constant 1.000000e+00 : f32
    %cst_33 = arith.constant 0.000000e+00 : f32
    %60 = vector.broadcast %cst_32 : f32 to vector<392x98xf32>
    %61 = vector.broadcast %cst_33 : f32 to vector<392x98xf32>
    %62 = arith.select %59, %60, %61 : vector<392x98xi1>, vector<392x98xf32>
    %63 = arith.truncf %62 : vector<392x98xf32> to vector<392x98xbf16>
    %cst_34 = arith.constant dense<0.000000e+00> : vector<16x98xf32>
    %64 = tpu.matmul %32, %63, %cst_34 {dimension_numbers = #tpu.dot_dimension_numbers<[1], [0], [0], [1], [0, 0, 1, 1], [], []>} : vector<16x392xbf16>, vector<392x98xbf16>, vector<16x98xf32> -> vector<16x98xf32>
    %65 = arith.truncf %64 : vector<16x98xf32> to vector<16x98xbf16>
    %c32 = arith.constant 32 : index
    %c0_35 = arith.constant 0 : index
    %66 = vector.load %arg8[%c32, %c0_35] : memref<256x98xbf16, #tpu.memory_space<vmem>>, vector<16x98xbf16>
    tpu.vector_store %arg8[%c32, %c0_35], %65 {strides = array<i32>} : memref<256x98xbf16, #tpu.memory_space<vmem>>, vector<16x98xbf16>,
    %c3 = arith.constant 3 : index
    %c0_36 = arith.constant 0 : index
    %c0_37 = arith.constant 0 : index
    %67 = vector.load %arg3[%c3, %c0_36, %c0_37] : memref<16x1x98xi32, #tpu.memory_space<vmem>>, vector<1x1x98xi32>
    %68 = vector.shape_cast %67 : vector<1x1x98xi32> to vector<1x98xi32>
    %69 = vector.broadcast %68 : vector<1x98xi32> to vector<392x98xi32>
    %70 = arith.cmpi eq, %33, %69 : vector<392x98xi32>
    %cst_38 = arith.constant 1.000000e+00 : f32
    %cst_39 = arith.constant 0.000000e+00 : f32
    %71 = vector.broadcast %cst_38 : f32 to vector<392x98xf32>
    %72 = vector.broadcast %cst_39 : f32 to vector<392x98xf32>
    %73 = arith.select %70, %71, %72 : vector<392x98xi1>, vector<392x98xf32>
    %74 = arith.truncf %73 : vector<392x98xf32> to vector<392x98xbf16>
    %cst_40 = arith.constant dense<0.000000e+00> : vector<16x98xf32>
    %75 = tpu.matmul %32, %74, %cst_40 {dimension_numbers = #tpu.dot_dimension_numbers<[1], [0], [0], [1], [0, 0, 1, 1], [], []>} : vector<16x392xbf16>, vector<392x98xbf16>, vector<16x98xf32> -> vector<16x98xf32>
    %76 = arith.truncf %75 : vector<16x98xf32> to vector<16x98xbf16>
    %c48 = arith.constant 48 : index
    %c0_41 = arith.constant 0 : index
    %77 = vector.load %arg8[%c48, %c0_41] : memref<256x98xbf16, #tpu.memory_space<vmem>>, vector<16x98xbf16>
    tpu.vector_store %arg8[%c48, %c0_41], %76 {strides = array<i32>} : memref<256x98xbf16, #tpu.memory_space<vmem>>, vector<16x98xbf16>,
    %c4 = arith.constant 4 : index
    %c0_42 = arith.constant 0 : index
    %c0_43 = arith.constant 0 : index
    %78 = vector.load %arg3[%c4, %c0_42, %c0_43] : memref<16x1x98xi32, #tpu.memory_space<vmem>>, vector<1x1x98xi32>
    %79 = vector.shape_cast %78 : vector<1x1x98xi32> to vector<1x98xi32>
    %80 = vector.broadcast %79 : vector<1x98xi32> to vector<392x98xi32>
    %81 = arith.cmpi eq, %33, %80 : vector<392x98xi32>
    %cst_44 = arith.constant 1.000000e+00 : f32
    %cst_45 = arith.constant 0.000000e+00 : f32
    %82 = vector.broadcast %cst_44 : f32 to vector<392x98xf32>
    %83 = vector.broadcast %cst_45 : f32 to vector<392x98xf32>
    %84 = arith.select %81, %82, %83 : vector<392x98xi1>, vector<392x98xf32>
    %85 = arith.truncf %84 : vector<392x98xf32> to vector<392x98xbf16>
    %cst_46 = arith.constant dense<0.000000e+00> : vector<16x98xf32>
    %86 = tpu.matmul %32, %85, %cst_46 {dimension_numbers = #tpu.dot_dimension_numbers<[1], [0], [0], [1], [0, 0, 1, 1], [], []>} : vector<16x392xbf16>, vector<392x98xbf16>, vector<16x98xf32> -> vector<16x98xf32>
    %87 = arith.truncf %86 : vector<16x98xf32> to vector<16x98xbf16>
    %c64 = arith.constant 64 : index
    %c0_47 = arith.constant 0 : index
    %88 = vector.load %arg8[%c64, %c0_47] : memref<256x98xbf16, #tpu.memory_space<vmem>>, vector<16x98xbf16>
    tpu.vector_store %arg8[%c64, %c0_47], %87 {strides = array<i32>} : memref<256x98xbf16, #tpu.memory_space<vmem>>, vector<16x98xbf16>,
    %c5 = arith.constant 5 : index
    %c0_48 = arith.constant 0 : index
    %c0_49 = arith.constant 0 : index
    %89 = vector.load %arg3[%c5, %c0_48, %c0_49] : memref<16x1x98xi32, #tpu.memory_space<vmem>>, vector<1x1x98xi32>
    %90 = vector.shape_cast %89 : vector<1x1x98xi32> to vector<1x98xi32>
    %91 = vector.broadcast %90 : vector<1x98xi32> to vector<392x98xi32>
    %92 = arith.cmpi eq, %33, %91 : vector<392x98xi32>
    %cst_50 = arith.constant 1.000000e+00 : f32
    %cst_51 = arith.constant 0.000000e+00 : f32
    %93 = vector.broadcast %cst_50 : f32 to vector<392x98xf32>
    %94 = vector.broadcast %cst_51 : f32 to vector<392x98xf32>
    %95 = arith.select %92, %93, %94 : vector<392x98xi1>, vector<392x98xf32>
    %96 = arith.truncf %95 : vector<392x98xf32> to vector<392x98xbf16>
    %cst_52 = arith.constant dense<0.000000e+00> : vector<16x98xf32>
    %97 = tpu.matmul %32, %96, %cst_52 {dimension_numbers = #tpu.dot_dimension_numbers<[1], [0], [0], [1], [0, 0, 1, 1], [], []>} : vector<16x392xbf16>, vector<392x98xbf16>, vector<16x98xf32> -> vector<16x98xf32>
    %98 = arith.truncf %97 : vector<16x98xf32> to vector<16x98xbf16>
    %c80 = arith.constant 80 : index
    %c0_53 = arith.constant 0 : index
    %99 = vector.load %arg8[%c80, %c0_53] : memref<256x98xbf16, #tpu.memory_space<vmem>>, vector<16x98xbf16>
    tpu.vector_store %arg8[%c80, %c0_53], %98 {strides = array<i32>} : memref<256x98xbf16, #tpu.memory_space<vmem>>, vector<16x98xbf16>,
    %c6 = arith.constant 6 : index
    %c0_54 = arith.constant 0 : index
    %c0_55 = arith.constant 0 : index
    %100 = vector.load %arg3[%c6, %c0_54, %c0_55] : memref<16x1x98xi32, #tpu.memory_space<vmem>>, vector<1x1x98xi32>
    %101 = vector.shape_cast %100 : vector<1x1x98xi32> to vector<1x98xi32>
    %102 = vector.broadcast %101 : vector<1x98xi32> to vector<392x98xi32>
    %103 = arith.cmpi eq, %33, %102 : vector<392x98xi32>
    %cst_56 = arith.constant 1.000000e+00 : f32
    %cst_57 = arith.constant 0.000000e+00 : f32
    %104 = vector.broadcast %cst_56 : f32 to vector<392x98xf32>
    %105 = vector.broadcast %cst_57 : f32 to vector<392x98xf32>
    %106 = arith.select %103, %104, %105 : vector<392x98xi1>, vector<392x98xf32>
    %107 = arith.truncf %106 : vector<392x98xf32> to vector<392x98xbf16>
    %cst_58 = arith.constant dense<0.000000e+00> : vector<16x98xf32>
    %108 = tpu.matmul %32, %107, %cst_58 {dimension_numbers = #tpu.dot_dimension_numbers<[1], [0], [0], [1], [0, 0, 1, 1], [], []>} : vector<16x392xbf16>, vector<392x98xbf16>, vector<16x98xf32> -> vector<16x98xf32>
    %109 = arith.truncf %108 : vector<16x98xf32> to vector<16x98xbf16>
    %c96 = arith.constant 96 : index
    %c0_59 = arith.constant 0 : index
    %110 = vector.load %arg8[%c96, %c0_59] : memref<256x98xbf16, #tpu.memory_space<vmem>>, vector<16x98xbf16>
    tpu.vector_store %arg8[%c96, %c0_59], %109 {strides = array<i32>} : memref<256x98xbf16, #tpu.memory_space<vmem>>, vector<16x98xbf16>,
    %c7 = arith.constant 7 : index
    %c0_60 = arith.constant 0 : index
    %c0_61 = arith.constant 0 : index
    %111 = vector.load %arg3[%c7, %c0_60, %c0_61] : memref<16x1x98xi32, #tpu.memory_space<vmem>>, vector<1x1x98xi32>
    %112 = vector.shape_cast %111 : vector<1x1x98xi32> to vector<1x98xi32>
    %113 = vector.broadcast %112 : vector<1x98xi32> to vector<392x98xi32>
    %114 = arith.cmpi eq, %33, %113 : vector<392x98xi32>
    %cst_62 = arith.constant 1.000000e+00 : f32
    %cst_63 = arith.constant 0.000000e+00 : f32
    %115 = vector.broadcast %cst_62 : f32 to vector<392x98xf32>
    %116 = vector.broadcast %cst_63 : f32 to vector<392x98xf32>
    %117 = arith.select %114, %115, %116 : vector<392x98xi1>, vector<392x98xf32>
    %118 = arith.truncf %117 : vector<392x98xf32> to vector<392x98xbf16>
    %cst_64 = arith.constant dense<0.000000e+00> : vector<16x98xf32>
    %119 = tpu.matmul %32, %118, %cst_64 {dimension_numbers = #tpu.dot_dimension_numbers<[1], [0], [0], [1], [0, 0, 1, 1], [], []>} : vector<16x392xbf16>, vector<392x98xbf16>, vector<16x98xf32> -> vector<16x98xf32>
    %120 = arith.truncf %119 : vector<16x98xf32> to vector<16x98xbf16>
    %c112 = arith.constant 112 : index
    %c0_65 = arith.constant 0 : index
    %121 = vector.load %arg8[%c112, %c0_65] : memref<256x98xbf16, #tpu.memory_space<vmem>>, vector<16x98xbf16>
    tpu.vector_store %arg8[%c112, %c0_65], %120 {strides = array<i32>} : memref<256x98xbf16, #tpu.memory_space<vmem>>, vector<16x98xbf16>,
    %c8 = arith.constant 8 : index
    %c0_66 = arith.constant 0 : index
    %c0_67 = arith.constant 0 : index
    %122 = vector.load %arg3[%c8, %c0_66, %c0_67] : memref<16x1x98xi32, #tpu.memory_space<vmem>>, vector<1x1x98xi32>
    %123 = vector.shape_cast %122 : vector<1x1x98xi32> to vector<1x98xi32>
    %124 = vector.broadcast %123 : vector<1x98xi32> to vector<392x98xi32>
    %125 = arith.cmpi eq, %33, %124 : vector<392x98xi32>
    %cst_68 = arith.constant 1.000000e+00 : f32
    %cst_69 = arith.constant 0.000000e+00 : f32
    %126 = vector.broadcast %cst_68 : f32 to vector<392x98xf32>
    %127 = vector.broadcast %cst_69 : f32 to vector<392x98xf32>
    %128 = arith.select %125, %126, %127 : vector<392x98xi1>, vector<392x98xf32>
    %129 = arith.truncf %128 : vector<392x98xf32> to vector<392x98xbf16>
    %cst_70 = arith.constant dense<0.000000e+00> : vector<16x98xf32>
    %130 = tpu.matmul %32, %129, %cst_70 {dimension_numbers = #tpu.dot_dimension_numbers<[1], [0], [0], [1], [0, 0, 1, 1], [], []>} : vector<16x392xbf16>, vector<392x98xbf16>, vector<16x98xf32> -> vector<16x98xf32>
    %131 = arith.truncf %130 : vector<16x98xf32> to vector<16x98xbf16>
    %c128 = arith.constant 128 : index
    %c0_71 = arith.constant 0 : index
    %132 = vector.load %arg8[%c128, %c0_71] : memref<256x98xbf16, #tpu.memory_space<vmem>>, vector<16x98xbf16>
    tpu.vector_store %arg8[%c128, %c0_71], %131 {strides = array<i32>} : memref<256x98xbf16, #tpu.memory_space<vmem>>, vector<16x98xbf16>,
    %c9 = arith.constant 9 : index
    %c0_72 = arith.constant 0 : index
    %c0_73 = arith.constant 0 : index
    %133 = vector.load %arg3[%c9, %c0_72, %c0_73] : memref<16x1x98xi32, #tpu.memory_space<vmem>>, vector<1x1x98xi32>
    %134 = vector.shape_cast %133 : vector<1x1x98xi32> to vector<1x98xi32>
    %135 = vector.broadcast %134 : vector<1x98xi32> to vector<392x98xi32>
    %136 = arith.cmpi eq, %33, %135 : vector<392x98xi32>
    %cst_74 = arith.constant 1.000000e+00 : f32
    %cst_75 = arith.constant 0.000000e+00 : f32
    %137 = vector.broadcast %cst_74 : f32 to vector<392x98xf32>
    %138 = vector.broadcast %cst_75 : f32 to vector<392x98xf32>
    %139 = arith.select %136, %137, %138 : vector<392x98xi1>, vector<392x98xf32>
    %140 = arith.truncf %139 : vector<392x98xf32> to vector<392x98xbf16>
    %cst_76 = arith.constant dense<0.000000e+00> : vector<16x98xf32>
    %141 = tpu.matmul %32, %140, %cst_76 {dimension_numbers = #tpu.dot_dimension_numbers<[1], [0], [0], [1], [0, 0, 1, 1], [], []>} : vector<16x392xbf16>, vector<392x98xbf16>, vector<16x98xf32> -> vector<16x98xf32>
    %142 = arith.truncf %141 : vector<16x98xf32> to vector<16x98xbf16>
    %c144 = arith.constant 144 : index
    %c0_77 = arith.constant 0 : index
    %143 = vector.load %arg8[%c144, %c0_77] : memref<256x98xbf16, #tpu.memory_space<vmem>>, vector<16x98xbf16>
    tpu.vector_store %arg8[%c144, %c0_77], %142 {strides = array<i32>} : memref<256x98xbf16, #tpu.memory_space<vmem>>, vector<16x98xbf16>,
    %c10 = arith.constant 10 : index
    %c0_78 = arith.constant 0 : index
    %c0_79 = arith.constant 0 : index
    %144 = vector.load %arg3[%c10, %c0_78, %c0_79] : memref<16x1x98xi32, #tpu.memory_space<vmem>>, vector<1x1x98xi32>
    %145 = vector.shape_cast %144 : vector<1x1x98xi32> to vector<1x98xi32>
    %146 = vector.broadcast %145 : vector<1x98xi32> to vector<392x98xi32>
    %147 = arith.cmpi eq, %33, %146 : vector<392x98xi32>
    %cst_80 = arith.constant 1.000000e+00 : f32
    %cst_81 = arith.constant 0.000000e+00 : f32
    %148 = vector.broadcast %cst_80 : f32 to vector<392x98xf32>
    %149 = vector.broadcast %cst_81 : f32 to vector<392x98xf32>
    %150 = arith.select %147, %148, %149 : vector<392x98xi1>, vector<392x98xf32>
    %151 = arith.truncf %150 : vector<392x98xf32> to vector<392x98xbf16>
    %cst_82 = arith.constant dense<0.000000e+00> : vector<16x98xf32>
    %152 = tpu.matmul %32, %151, %cst_82 {dimension_numbers = #tpu.dot_dimension_numbers<[1], [0], [0], [1], [0, 0, 1, 1], [], []>} : vector<16x392xbf16>, vector<392x98xbf16>, vector<16x98xf32> -> vector<16x98xf32>
    %153 = arith.truncf %152 : vector<16x98xf32> to vector<16x98xbf16>
    %c160 = arith.constant 160 : index
    %c0_83 = arith.constant 0 : index
    %154 = vector.load %arg8[%c160, %c0_83] : memref<256x98xbf16, #tpu.memory_space<vmem>>, vector<16x98xbf16>
    tpu.vector_store %arg8[%c160, %c0_83], %153 {strides = array<i32>} : memref<256x98xbf16, #tpu.memory_space<vmem>>, vector<16x98xbf16>,
    %c11 = arith.constant 11 : index
    %c0_84 = arith.constant 0 : index
    %c0_85 = arith.constant 0 : index
    %155 = vector.load %arg3[%c11, %c0_84, %c0_85] : memref<16x1x98xi32, #tpu.memory_space<vmem>>, vector<1x1x98xi32>
    %156 = vector.shape_cast %155 : vector<1x1x98xi32> to vector<1x98xi32>
    %157 = vector.broadcast %156 : vector<1x98xi32> to vector<392x98xi32>
    %158 = arith.cmpi eq, %33, %157 : vector<392x98xi32>
    %cst_86 = arith.constant 1.000000e+00 : f32
    %cst_87 = arith.constant 0.000000e+00 : f32
    %159 = vector.broadcast %cst_86 : f32 to vector<392x98xf32>
    %160 = vector.broadcast %cst_87 : f32 to vector<392x98xf32>
    %161 = arith.select %158, %159, %160 : vector<392x98xi1>, vector<392x98xf32>
    %162 = arith.truncf %161 : vector<392x98xf32> to vector<392x98xbf16>
    %cst_88 = arith.constant dense<0.000000e+00> : vector<16x98xf32>
    %163 = tpu.matmul %32, %162, %cst_88 {dimension_numbers = #tpu.dot_dimension_numbers<[1], [0], [0], [1], [0, 0, 1, 1], [], []>} : vector<16x392xbf16>, vector<392x98xbf16>, vector<16x98xf32> -> vector<16x98xf32>
    %164 = arith.truncf %163 : vector<16x98xf32> to vector<16x98xbf16>
    %c176 = arith.constant 176 : index
    %c0_89 = arith.constant 0 : index
    %165 = vector.load %arg8[%c176, %c0_89] : memref<256x98xbf16, #tpu.memory_space<vmem>>, vector<16x98xbf16>
    tpu.vector_store %arg8[%c176, %c0_89], %164 {strides = array<i32>} : memref<256x98xbf16, #tpu.memory_space<vmem>>, vector<16x98xbf16>,
    %c12 = arith.constant 12 : index
    %c0_90 = arith.constant 0 : index
    %c0_91 = arith.constant 0 : index
    %166 = vector.load %arg3[%c12, %c0_90, %c0_91] : memref<16x1x98xi32, #tpu.memory_space<vmem>>, vector<1x1x98xi32>
    %167 = vector.shape_cast %166 : vector<1x1x98xi32> to vector<1x98xi32>
    %168 = vector.broadcast %167 : vector<1x98xi32> to vector<392x98xi32>
    %169 = arith.cmpi eq, %33, %168 : vector<392x98xi32>
    %cst_92 = arith.constant 1.000000e+00 : f32
    %cst_93 = arith.constant 0.000000e+00 : f32
    %170 = vector.broadcast %cst_92 : f32 to vector<392x98xf32>
    %171 = vector.broadcast %cst_93 : f32 to vector<392x98xf32>
    %172 = arith.select %169, %170, %171 : vector<392x98xi1>, vector<392x98xf32>
    %173 = arith.truncf %172 : vector<392x98xf32> to vector<392x98xbf16>
    %cst_94 = arith.constant dense<0.000000e+00> : vector<16x98xf32>
    %174 = tpu.matmul %32, %173, %cst_94 {dimension_numbers = #tpu.dot_dimension_numbers<[1], [0], [0], [1], [0, 0, 1, 1], [], []>} : vector<16x392xbf16>, vector<392x98xbf16>, vector<16x98xf32> -> vector<16x98xf32>
    %175 = arith.truncf %174 : vector<16x98xf32> to vector<16x98xbf16>
    %c192 = arith.constant 192 : index
    %c0_95 = arith.constant 0 : index
    %176 = vector.load %arg8[%c192, %c0_95] : memref<256x98xbf16, #tpu.memory_space<vmem>>, vector<16x98xbf16>
    tpu.vector_store %arg8[%c192, %c0_95], %175 {strides = array<i32>} : memref<256x98xbf16, #tpu.memory_space<vmem>>, vector<16x98xbf16>,
    %c13 = arith.constant 13 : index
    %c0_96 = arith.constant 0 : index
    %c0_97 = arith.constant 0 : index
    %177 = vector.load %arg3[%c13, %c0_96, %c0_97] : memref<16x1x98xi32, #tpu.memory_space<vmem>>, vector<1x1x98xi32>
    %178 = vector.shape_cast %177 : vector<1x1x98xi32> to vector<1x98xi32>
    %179 = vector.broadcast %178 : vector<1x98xi32> to vector<392x98xi32>
    %180 = arith.cmpi eq, %33, %179 : vector<392x98xi32>
    %cst_98 = arith.constant 1.000000e+00 : f32
    %cst_99 = arith.constant 0.000000e+00 : f32
    %181 = vector.broadcast %cst_98 : f32 to vector<392x98xf32>
    %182 = vector.broadcast %cst_99 : f32 to vector<392x98xf32>
    %183 = arith.select %180, %181, %182 : vector<392x98xi1>, vector<392x98xf32>
    %184 = arith.truncf %183 : vector<392x98xf32> to vector<392x98xbf16>
    %cst_100 = arith.constant dense<0.000000e+00> : vector<16x98xf32>
    %185 = tpu.matmul %32, %184, %cst_100 {dimension_numbers = #tpu.dot_dimension_numbers<[1], [0], [0], [1], [0, 0, 1, 1], [], []>} : vector<16x392xbf16>, vector<392x98xbf16>, vector<16x98xf32> -> vector<16x98xf32>
    %186 = arith.truncf %185 : vector<16x98xf32> to vector<16x98xbf16>
    %c208 = arith.constant 208 : index
    %c0_101 = arith.constant 0 : index
    %187 = vector.load %arg8[%c208, %c0_101] : memref<256x98xbf16, #tpu.memory_space<vmem>>, vector<16x98xbf16>
    tpu.vector_store %arg8[%c208, %c0_101], %186 {strides = array<i32>} : memref<256x98xbf16, #tpu.memory_space<vmem>>, vector<16x98xbf16>,
    %c14 = arith.constant 14 : index
    %c0_102 = arith.constant 0 : index
    %c0_103 = arith.constant 0 : index
    %188 = vector.load %arg3[%c14, %c0_102, %c0_103] : memref<16x1x98xi32, #tpu.memory_space<vmem>>, vector<1x1x98xi32>
    %189 = vector.shape_cast %188 : vector<1x1x98xi32> to vector<1x98xi32>
    %190 = vector.broadcast %189 : vector<1x98xi32> to vector<392x98xi32>
    %191 = arith.cmpi eq, %33, %190 : vector<392x98xi32>
    %cst_104 = arith.constant 1.000000e+00 : f32
    %cst_105 = arith.constant 0.000000e+00 : f32
    %192 = vector.broadcast %cst_104 : f32 to vector<392x98xf32>
    %193 = vector.broadcast %cst_105 : f32 to vector<392x98xf32>
    %194 = arith.select %191, %192, %193 : vector<392x98xi1>, vector<392x98xf32>
    %195 = arith.truncf %194 : vector<392x98xf32> to vector<392x98xbf16>
    %cst_106 = arith.constant dense<0.000000e+00> : vector<16x98xf32>
    %196 = tpu.matmul %32, %195, %cst_106 {dimension_numbers = #tpu.dot_dimension_numbers<[1], [0], [0], [1], [0, 0, 1, 1], [], []>} : vector<16x392xbf16>, vector<392x98xbf16>, vector<16x98xf32> -> vector<16x98xf32>
    %197 = arith.truncf %196 : vector<16x98xf32> to vector<16x98xbf16>
    %c224 = arith.constant 224 : index
    %c0_107 = arith.constant 0 : index
    %198 = vector.load %arg8[%c224, %c0_107] : memref<256x98xbf16, #tpu.memory_space<vmem>>, vector<16x98xbf16>
    tpu.vector_store %arg8[%c224, %c0_107], %197 {strides = array<i32>} : memref<256x98xbf16, #tpu.memory_space<vmem>>, vector<16x98xbf16>,
    %c15 = arith.constant 15 : index
    %c0_108 = arith.constant 0 : index
    %c0_109 = arith.constant 0 : index
    %199 = vector.load %arg3[%c15, %c0_108, %c0_109] : memref<16x1x98xi32, #tpu.memory_space<vmem>>, vector<1x1x98xi32>
    %200 = vector.shape_cast %199 : vector<1x1x98xi32> to vector<1x98xi32>
    %201 = vector.broadcast %200 : vector<1x98xi32> to vector<392x98xi32>
    %202 = arith.cmpi eq, %33, %201 : vector<392x98xi32>
    %cst_110 = arith.constant 1.000000e+00 : f32
    %cst_111 = arith.constant 0.000000e+00 : f32
    %203 = vector.broadcast %cst_110 : f32 to vector<392x98xf32>
    %204 = vector.broadcast %cst_111 : f32 to vector<392x98xf32>
    %205 = arith.select %202, %203, %204 : vector<392x98xi1>, vector<392x98xf32>
    %206 = arith.truncf %205 : vector<392x98xf32> to vector<392x98xbf16>
    %cst_112 = arith.constant dense<0.000000e+00> : vector<16x98xf32>
    %207 = tpu.matmul %32, %206, %cst_112 {dimension_numbers = #tpu.dot_dimension_numbers<[1], [0], [0], [1], [0, 0, 1, 1], [], []>} : vector<16x392xbf16>, vector<392x98xbf16>, vector<16x98xf32> -> vector<16x98xf32>
    %208 = arith.truncf %207 : vector<16x98xf32> to vector<16x98xbf16>
    %c240 = arith.constant 240 : index
    %c0_113 = arith.constant 0 : index
    %209 = vector.load %arg8[%c240, %c0_113] : memref<256x98xbf16, #tpu.memory_space<vmem>>, vector<16x98xbf16>
    tpu.vector_store %arg8[%c240, %c0_113], %208 {strides = array<i32>} : memref<256x98xbf16, #tpu.memory_space<vmem>>, vector<16x98xbf16>,
    %c0_114 = arith.constant 0 : index
    %c0_115 = arith.constant 0 : index
    %210 = vector.load %arg2[%c0_114, %c0_115] : memref<16x256xbf16, #tpu.memory_space<vmem>>, vector<16x256xbf16>
    %c0_116 = arith.constant 0 : index
    %c0_117 = arith.constant 0 : index
    %211 = vector.load %arg8[%c0_116, %c0_117] : memref<256x98xbf16, #tpu.memory_space<vmem>>, vector<256x98xbf16>
    %cst_118 = arith.constant dense<0.000000e+00> : vector<16x98xf32>
    %212 = tpu.matmul %210, %211, %cst_118 {dimension_numbers = #tpu.dot_dimension_numbers<[1], [0], [0], [1], [0, 0, 1, 1], [], []>} : vector<16x256xbf16>, vector<256x98xbf16>, vector<16x98xf32> -> vector<16x98xf32>
    %c0_119 = arith.constant 0 : index
    %c3_120 = arith.constant 3 : index
    %213 = vector.load %arg6[%c0_119, %c3_120] : memref<16x8xf32, #tpu.memory_space<vmem>>, vector<16x1xf32>
    %214 = vector.broadcast %213 : vector<16x1xf32> to vector<16x98xf32>
    %215 = arith.addf %212, %214 : vector<16x98xf32>
    %c0_121 = arith.constant 0 : index
    %c4_122 = arith.constant 4 : index
    %216 = vector.load %arg6[%c0_121, %c4_122] : memref<16x8xf32, #tpu.memory_space<vmem>>, vector<16x1xf32>
    %c0_123 = arith.constant 0 : index
    %c5_124 = arith.constant 5 : index
    %217 = vector.load %arg6[%c0_123, %c5_124] : memref<16x8xf32, #tpu.memory_space<vmem>>, vector<16x1xf32>
    %cst_125 = arith.constant dense<0.000000e+00> : vector<16xf32>
    %218 = vector.multi_reduction <add>, %215, %cst_125 [1] : vector<16x98xf32> to vector<16xf32>
    %219 = vector.shape_cast %218 : vector<16xf32> to vector<16x1xf32>
    %cst_126 = arith.constant 0.0102040814 : f32
    %220 = vector.broadcast %cst_126 : f32 to vector<16x1xf32>
    %221 = arith.mulf %219, %220 : vector<16x1xf32>
    %222 = vector.broadcast %221 : vector<16x1xf32> to vector<16x98xf32>
    %223 = arith.subf %215, %222 : vector<16x98xf32>
    %224 = arith.mulf %223, %223 : vector<16x98xf32>
    %cst_127 = arith.constant dense<0.000000e+00> : vector<16xf32>
    %225 = vector.multi_reduction <add>, %224, %cst_127 [1] : vector<16x98xf32> to vector<16xf32>
    %226 = vector.shape_cast %225 : vector<16xf32> to vector<16x1xf32>
    %cst_128 = arith.constant 0.0102040814 : f32
    %227 = vector.broadcast %cst_128 : f32 to vector<16x1xf32>
    %228 = arith.mulf %226, %227 : vector<16x1xf32>
    %cst_129 = arith.constant 9.99999974E-6 : f32
    %229 = vector.broadcast %cst_129 : f32 to vector<16x1xf32>
    %230 = arith.addf %228, %229 : vector<16x1xf32>
    %231 = math.rsqrt %230 : vector<16x1xf32>
    %232 = arith.mulf %216, %231 : vector<16x1xf32>
    %233 = vector.broadcast %232 : vector<16x1xf32> to vector<16x98xf32>
    %234 = arith.mulf %223, %233 : vector<16x98xf32>
    %235 = vector.broadcast %217 : vector<16x1xf32> to vector<16x98xf32>
    %236 = arith.addf %234, %235 : vector<16x98xf32>
    %cst_130 = arith.constant 0.000000e+00 : f32
    %237 = vector.broadcast %cst_130 : f32 to vector<16x98xf32>
    %238 = arith.cmpf oge, %236, %237 : vector<16x98xf32>
    %cst_131 = arith.constant 2.000000e-01 : f32
    %239 = vector.broadcast %cst_131 : f32 to vector<16x98xf32>
    %240 = arith.mulf %239, %236 : vector<16x98xf32>
    %241 = arith.select %238, %236, %240 : vector<16x98xi1>, vector<16x98xf32>
    %c0_132 = arith.constant 0 : index
    %c0_133 = arith.constant 0 : index
    %242 = vector.load %arg4[%c0_132, %c0_133] : memref<16x98xf32, #tpu.memory_space<vmem>>, vector<16x98xf32>
    %243 = arith.mulf %241, %242 : vector<16x98xf32>
    %c0_134 = arith.constant 0 : index
    %c0_135 = arith.constant 0 : index
    %244 = vector.load %arg5[%c0_134, %c0_135] : memref<98x2xf32, #tpu.memory_space<vmem>>, vector<98x2xf32>
    %cst_136 = arith.constant dense<0.000000e+00> : vector<16x2xf32>
    %245 = tpu.matmul %243, %244, %cst_136 {dimension_numbers = #tpu.dot_dimension_numbers<[1], [0], [0], [1], [0, 0, 1, 1], [], []>} : vector<16x98xf32>, vector<98x2xf32>, vector<16x2xf32> -> vector<16x2xf32>
    %cst_137 = arith.constant dense<0.000000e+00> : vector<2xf32>
    %246 = vector.multi_reduction <add>, %245, %cst_137 [0] : vector<16x2xf32> to vector<2xf32>
    %247 = vector.shape_cast %246 : vector<2xf32> to vector<1x2xf32>
    %c0_138 = arith.constant 0 : index
    %c6_139 = arith.constant 6 : index
    %248 = vector.load %arg6[%c0_138, %c6_139] : memref<16x8xf32, #tpu.memory_space<vmem>>, vector<1x1xf32>
    %249 = vector.broadcast %248 : vector<1x1xf32> to vector<1x2xf32>
    %250 = arith.addf %247, %249 : vector<1x2xf32>
    %cst_140 = arith.constant 0.000000e+00 : f32
    %251 = vector.broadcast %cst_140 : f32 to vector<1x2xf32>
    %252 = arith.subf %251, %250 : vector<1x2xf32>
    %253 = math.exp %252 : vector<1x2xf32>
    %cst_141 = arith.constant 1.000000e+00 : f32
    %254 = vector.broadcast %cst_141 : f32 to vector<1x2xf32>
    %255 = arith.addf %254, %253 : vector<1x2xf32>
    %cst_142 = arith.constant 1.000000e+00 : f32
    %256 = vector.broadcast %cst_142 : f32 to vector<1x2xf32>
    %257 = arith.divf %256, %255 : vector<1x2xf32>
    %c0_143 = arith.constant 0 : index
    %c0_144 = arith.constant 0 : index
    %258 = vector.load %arg7[%c0_143, %c0_144] : memref<1x2xf32, #tpu.memory_space<vmem>>, vector<1x2xf32>
    tpu.vector_store %arg7[%c0_143, %c0_144], %257 {strides = array<i32>} : memref<1x2xf32, #tpu.memory_space<vmem>>, vector<1x2xf32>,
    return
  }
}

</mosaic_0001>

<bundles_post_ra>
// kernel: tile.7
= control target key start
LH: loop header
LB: loop body
LE: loop exit
PB: predicated region body
PF: predicated region fallthrough
CT: control target
= control target key end

     0   :  { %vm68_vm0 = vcmask 1047556   ;;  %vm70_vm1 = vcmask 400384   ;;  %vm89_vm2 = vcmask 802184   ;;  %s195_s0 = inlined_call_operand.vmem [shape: f32[16,2,49], index: 0, kind: input, shape index: {}]   ;;  %s196_s1 = inlined_call_operand.vmem [shape: f32[16,98], index: 1, kind: output, shape index: {}]  }
   0x1   :  { %v110_v0 = vld [vmem:[%s195_s0 + $0xe] sm:$0x3]  ;;  %v111_v1 = vld [vmem:[%s195_s0 + $0xc] sm:$0x3]  ;;  %v112_v2 = vld [vmem:[%s195_s0 + $0xa] sm:$0x3] }
   0x2   :  { %39 = vst [vmem:[#allocation0 + $0x38] sm:$0x3] %v110_v0  ;;  %v113_v3 = vld [vmem:[%s195_s0 + $0x8] sm:$0x3]  ;;  %v114_v4 = vld [vmem:[%s195_s0 + $0x6] sm:$0x3] }
   0x3   :  { %43 = vst [vmem:[#allocation0 + $0x30] sm:$0x3] %v111_v1  ;;  %v115_v5 = vld [vmem:[%s195_s0 + $0x4] sm:$0x3]  ;;  %v116_v6 = vld [vmem:[%s195_s0 + $0x2] sm:$0x3] }
   0x4   :  { %47 = vst [vmem:[#allocation0 + $0x28] sm:$0x3] %v112_v2  ;;  %v64_v7 = vld [vmem:[%s195_s0] sm:$0x3]  ;;  %v102_v8 = vld [vmem:[%s195_s0 + $0x1e] sm:$0x3] }
   0x5   :  { %51 = vst [vmem:[#allocation0 + $0x20] sm:$0x3] %v113_v3  ;;  %v103_v9 = vld [vmem:[%s195_s0 + $0x1c] sm:$0x3]  ;;  %v104_v10 = vld [vmem:[%s195_s0 + $0x1a] sm:$0x3] }
   0x6   :  { %55 = vst [vmem:[#allocation0 + $0x18] sm:$0x3] %v114_v4  ;;  %v105_v11 = vld [vmem:[%s195_s0 + $0x18] sm:$0x3]  ;;  %v106_v12 = vld [vmem:[%s195_s0 + $0x16] sm:$0x3] }
   0x7   :  { %59 = vst [vmem:[#allocation0 + $0x10] sm:$0x3] %v115_v5  ;;  %v107_v13 = vld [vmem:[%s195_s0 + $0x14] sm:$0x3]  ;;  %v108_v14 = vld [vmem:[%s195_s0 + $0x12] sm:$0x3] }
   0x8   :  { %63 = vst [vmem:[#allocation0 + $0x8] sm:$0x3] %v116_v6  ;;  %v109_v15 = vld [vmem:[%s195_s0 + $0x10] sm:$0x3]  ;;  %s120_s0 = smov 49  }
   0x9   :  { %65 = vst [vmem:[#allocation0] sm:$0x3] %v64_v7 }
   0xa   :  { %7 = vst [vmem:[#allocation0 + $0x78] sm:$0x3] %v102_v8 }
   0xb   :  { %11 = vst [vmem:[#allocation0 + $0x70] sm:$0x3] %v103_v9 }
   0xc   :  { %15 = vst [vmem:[#allocation0 + $0x68] sm:$0x3] %v104_v10  ;;  %v84_v16 = vld [vmem:[#allocation0 + $0x1] ss:$8 sm:$0xf0]  }
   0xd   :  { %19 = vst [vmem:[#allocation0 + $0x60] sm:$0x3] %v105_v11  ;;  %v67_v23 = vld [vmem:[#allocation0] ss:$8 sm:$0xf0]  }
   0xe   :  { %23 = vst [vmem:[#allocation0 + $0x58] sm:$0x3] %v106_v12 }
   0xf   :  { %27 = vst [vmem:[#allocation0 + $0x50] sm:$0x3] %v107_v13 }
  0x10   :  { %v82_v17 = vld [vmem:[#allocation0 + $0x1] ss:$8 sm:$0xf]   ;;  %31 = vst [vmem:[#allocation0 + $0x48] sm:$0x3] %v108_v14 }
  0x11   :  { %v86_v18 = vsel %vm68_vm0, %v84_v16, %v82_v17  ;;  %35 = vst [vmem:[#allocation0 + $0x40] sm:$0x3] %v109_v15  ;;  %v66_v22 = vld [vmem:[#allocation0] ss:$8 sm:$0xf]  }
  0x12   :  { %87 = vrot.lane.b32.xlu0 %v86_v18, %s120_s0  ;;  %v69_v24 = vsel %vm68_vm0, %v67_v23, %v66_v22 }
  0x13   :  { %71 = vst.msk [vmem:[%s196_s1] sm:$0xff] %vm70_vm1, %v69_v24  }
  0x14   :  { %v94_v19 = vld [vmem:[#allocation0 + $0x41] ss:$8 sm:$0xf0]   ;;  %v75_v26 = vld [vmem:[#allocation0 + $0x40] ss:$8 sm:$0xf0]  }
  0x18   :  { %v92_v20 = vld [vmem:[#allocation0 + $0x41] ss:$8 sm:$0xf]   ;;  %v73_v25 = vld [vmem:[#allocation0 + $0x40] ss:$8 sm:$0xf]  }
  0x19   :  { %v96_v21 = vsel %vm68_vm0, %v94_v19, %v92_v20  ;;  %v77_v27 = vsel %vm68_vm0, %v75_v26, %v73_v25 }
  0x1a   :  { %97 = vrot.lane.b32.xlu0 %v96_v21, %s120_s0  ;;  %117 = vst.msk [vmem:[%s196_s1 + $0x8] sm:$0xff] %vm70_vm1, %v77_v27  }
  0x84   :  { %v88_v28 = vpop.permute.xlu0 %87  }
  0x85   :  { %90 = vst.msk [vmem:[%s196_s1] sm:$0xff] %vm89_vm2, %v88_v28  }
  0x8c   :  { %v98_v29 = vpop.permute.xlu0 %97  }
  0x8d   :  { %118 = vst.msk [vmem:[%s196_s1 + $0x8] sm:$0xff] %vm89_vm2, %v98_v29  }

// kernel: discriminator_forward.1
= control target key start
LH: loop header
LB: loop body
LE: loop exit
PB: predicated region body
PF: predicated region fallthrough
CT: control target
= control target key end

     0   :  { %vm71_vm0 = vcmask 130048   ;;  %v4694_v14 = vmov 0   ;;  %s9867_s0 = inlined_call_operand.vmem [shape: bf16[16,392], index: 0, kind: input, shape index: {}]   ;;  %s9868_s1 = inlined_call_operand.vmem [shape: bf16[16,16], index: 1, kind: input, shape index: {}]   ;;  %s9869_s2 = inlined_call_operand.vmem [shape: bf16[16,256], index: 2, kind: input, shape index: {}]   ;;  %s9870_s3 = inlined_call_operand.vmem [shape: s32[16,1,98], index: 3, kind: input, shape index: {}]   ;;  %s9871_s4 = inlined_call_operand.vmem [shape: f32[16,98], index: 4, kind: input, shape index: {}]   ;;  %s9872_s5 = inlined_call_operand.vmem [shape: f32[98,2], index: 5, kind: input, shape index: {}]   ;;  %s9873_s6 = inlined_call_operand.vmem [shape: f32[16,8], index: 6, kind: input, shape index: {}]   ;;  %s9874_s7 = inlined_call_operand.hbm [shape: f32[1,2], index: 7, kind: output, shape index: {}]  }
   0x1   :  { %v3703_v0 = vld [vmem:[%s9867_s0] sm:$0xf]  ;;  %v4598_v1 = vld [vmem:[%s9867_s0 + $0xc] sm:$0xf0]  ;;  %v4596_v2 = vld [vmem:[%s9867_s0 + $0x4] sm:$0xf]  ;;  %4628 = vset.pattern.permute.xlu0 %v4694_v14 }
   0x2   :  { %v3704_v3 = vor.u32 %v4598_v1, %v3703_v0  ;;  %v3705_v4 = vld [vmem:[%s9867_s0 + $0x10] sm:$0xf0]  ;;  %v3711_v5 = vld [vmem:[%s9867_s0 + $0x8] sm:$0xf]  ;;  %v4599_v6 = vld [vmem:[%s9867_s0 + $0x14] sm:$0xf0] }
   0x3   :  { %v3708_v7 = vor.u32 %v4596_v2, %v3705_v4  ;;  %v3712_v8 = vor.u32 %v4599_v6, %v3711_v5  ;;  %v4597_v9 = vld [vmem:[%s9867_s0 + $0xc] sm:$0xf]  ;;  %v3713_v10 = vld [vmem:[%s9867_s0 + $0x18] sm:$0xf0]  ;;  %v4595_v11 = vld [vmem:[%s9868_s1] sm:$0xff] }
   0x4   :  { %82 = vmatpush.bf16.msra.mxu0 %v3704_v3  ;;  %v3716_v12 = vor.u32 %v4597_v9, %v3713_v10  ;;  %v4774_v13 = vld [vmem:[%s9873_s6] sm:$0xff] }
   0x5   :  { %96 = vmatpush.bf16.msra.mxu1 %v3708_v7  ;;  %110 = vmatpush.bf16.msra.mxu2 %v3712_v8 }
   0x6   :  { %124 = vmatpush.bf16.msra.mxu3 %v3716_v12  ;;  %38 = vperm.xlu0 %4628, %v4774_v13  }
   0x7   :  { %3717 = vmatmul.msk.bf16.vlgmr.msra.gmra.mxu0 %vm71_vm0, %v4595_v11 }
   0x8   :  { %3718 = vmatmul.msk.bf16.vlgmr.msra.gmra.mxu1 %vm71_vm0, %v4595_v11  ;;  %3719 = vmatmul.msk.bf16.vlgmr.msra.gmra.mxu2 %vm71_vm0, %v4595_v11 }
   0x9   :  { %3720 = vmatmul.msk.bf16.vlgmr.msra.gmra.mxu3 %vm71_vm0, %v4595_v11 }
   0xa   :  { %12 = vsyncpa [#allocation4], 0  ;;  %v4780_v15 = vld [vmem:[%s9873_s6 + $0x8] sm:$0xff]  ;;  %vm9875_vm1 = vcmask 64512   ;;  %v4695_v6 = vmov 1   ;;  %v4696_v9 = vmov 2   ;;  %v262_v10 = vlaneseq }
   0xb   :  { %4630 = vset.pattern.permute.xlu1 %v4695_v6  ;;  %4631 = vset.pattern.permute.xlu2 %v4696_v9  ;;  %v4828_v14 = vld [vmem:[%s9870_s3] ss:$0 sm:$0xff]  ;;  %s3688_s0 = sshll.u32 %s9874_s7, 4  ;;  %s3689_s0 = int_to_ptr.hbm [resolvable:$true] %s3688_s0 }
   0xc   :  { %v4823_v12 = vshrl.u32 %v262_v10, 7 }
   0xe   :  { %43 = vperm.xlu0 %4628, %v4780_v15   ;;  %9967 = vst [vmem:[#allocation6_spill] sm:$0xff] %v4823_v12  ;;  %v5060_v10 = vadd.s32 184, %v4823_v12 }
  0x16   :  { %4629 = vset.pattern.permute.xlu0 %v4695_v6 }
  0x78   :  { %v39_v17 = vpop.permute.xlu0 %38 }
  0x80   :  { %v44_v29 = vpop.permute.xlu0 %43 }
  0x84   :  { %v84_v16 = vpop.f32.mrf.mxu0 }
  0x85   :  { %v98_v18 = vpop.f32.mrf.mxu1  ;;  %v85_v19 = vadd.f32 %v84_v16, %v39_v17  ;;  %v4832_v16 = vadd.s32 112, %v4823_v12 }
  0x86   :  { %v99_v20 = vadd.f32 %v98_v18, %v39_v17  ;;  %v4838_v18 = vadd.s32 96, %v4823_v12 }
  0x87   :  { %vm328_vm2 = vcmp.eq.s32.totalorder %v4832_v16, %v4828_v14 }
  0x88   :  { %v131_v21 = vadd.f32 %v99_v20, %v85_v19  ;;  %vm326_vm4 = vcmp.eq.s32.totalorder %v4838_v18, %v4828_v14 }
  0x8b   :  { %v112_v22 = vpop.f32.mrf.mxu2 }
  0x8c   :  { %v113_v23 = vadd.f32 %v112_v22, %v39_v17  ;;  %v126_v24 = vpop.f32.mrf.mxu3  ;;  %v86_v26 = vpop.f32.mrf.mxu0  ;;  %v4850_v22 = vadd.s32 64, %v4823_v12 }
  0x8d   :  { %v127_v25 = vadd.f32 %v126_v24, %v39_v17  ;;  %v100_v27 = vpop.f32.mrf.mxu1  ;;  %v87_v31 = vadd.f32 %v86_v26, %v44_v29  ;;  %v4835_v17 = vadd.s32 120, %v4823_v12  ;;  %v9880_v26 = vmov 1.0|1.0  }
  0x8e   :  { %v132_v28 = vadd.f32 %v131_v21, %v113_v23  ;;  %v101_v32 = vadd.f32 %v100_v27, %v44_v29  ;;  %v4847_v21 = vadd.s32 88, %v4823_v12  ;;  %v4870_v27 = vadd.s32 240, %v4823_v12 }
  0x8f   :  { %v134_v30 = vsel %vm9875_vm1, %v127_v25, 0.0  ;;  %vm329_vm3 = vcmp.eq.s32.totalorder %v4835_v17, %v4828_v14  ;;  %vm322_vm11 = vcmp.eq.s32.totalorder %v4850_v22, %v4828_v14 }
  0x90   :  { %v135_v33 = vadd.f32 %v134_v30, %v132_v28  ;;  %v138_v35 = vadd.f32 %v101_v32, %v87_v31  ;;  %9968 = vst [vmem:[#allocation7_spill] sm:$0xff] %v4847_v21  ;;  %vm3721_vm6 = vmpackc.low %vm329_vm3, %vm328_vm2  ;;  %vm325_vm9 = vcmp.eq.s32.totalorder %v4847_v21, %v4828_v14  ;;  %v4873_v28 = vadd.s32 248, %v4823_v12 }
  0x91   :  { %3722 = vmatpush.bf16.msk.msrb.mxu0 %vm3721_vm6, %v9880_v26  ;;  %9970 = vst [vmem:[#allocation9_spill] sm:$0xff] %v4870_v27  ;;  %vm344_vm12 = vcmp.eq.s32.totalorder %v4870_v27, %v4828_v14 }
  0x92   :  { %136 = vadd.xlane.f32.xlu1 %v135_v33  ;;  %9971 = vst [vmem:[#allocation10_spill] sm:$0xff] %v4873_v28  ;;  %vm345_vm13 = vcmp.eq.s32.totalorder %v4873_v28, %v4828_v14 }
  0x93   :  { %v114_v34 = vpop.f32.mrf.mxu2  ;;  %vm3737_vm0 = vmpackc.low %vm345_vm13, %vm344_vm12 }
  0x94   :  { %v115_v36 = vadd.f32 %v114_v34, %v44_v29  ;;  %v128_v37 = vpop.f32.mrf.mxu3  ;;  %v4894_v34 = vadd.s32 48, %v4823_v12  ;;  %3738 = vmatpush.bf16.msk.msrb.mxu1 %vm3737_vm0, %v9880_v26 }
  0x95   :  { %v129_v38 = vadd.f32 %v128_v37, %v44_v29  ;;  %v4910_v37 = vadd.s32 32, %v4823_v12 }
  0x96   :  { %v139_v39 = vadd.f32 %v138_v35, %v115_v36  ;;  %9974 = vst [vmem:[#allocation13_spill] sm:$0xff] %v4894_v34  ;;  %v4901_v35 = vadd.s32 56, %v4823_v12 }
  0x97   :  { %v140_v40 = vsel %vm9875_vm1, %v129_v38, 0.0 }
  0x98   :  { %v141_v41 = vadd.f32 %v140_v40, %v139_v39  ;;  %9975 = vst [vmem:[#allocation14_spill] sm:$0xff] %v4901_v35  ;;  %v4924_v39 = vadd.s32 40, %v4823_v12  ;;  %v4927_v40 = vadd.s32 208, %v4823_v12 }
  0x9a   :  { %142 = vadd.xlane.f32.xlu1 %v141_v41  ;;  %9978 = vst [vmem:[#allocation15_spill] sm:$0xff] %v4927_v40  ;;  %v4930_v41 = vadd.s32 216, %v4823_v12  ;;  %vm319_vm0 = vcmp.eq.s32.totalorder %v4924_v39, %v4828_v14 }
  0x9c   :  { %9979 = vst [vmem:[#allocation16_spill] sm:$0xff] %v4930_v41  ;;  %vm341_vm12 = vcmp.eq.s32.totalorder %v4930_v41, %v4828_v14 }
 0x105   :  { %v137_v42 = vpop.xlane.xlu1 %136 }
 0x106   :  { %v144_v43 = vmul.f32 0.0025510204, %v137_v42  ;;  %v4933_v42 = vadd.s32 16, %v4823_v12 }
 0x108   :  { %v4785_v44 = vsub.f32 %v85_v19, %v144_v43  ;;  %v4787_v45 = vsub.f32 %v99_v20, %v144_v43  ;;  %v4789_v46 = vsub.f32 %v113_v23, %v144_v43  ;;  %v4791_v47 = vsub.f32 %v127_v25, %v144_v43  ;;  %9980 = vst [vmem:[#allocation17_spill] sm:$0xff] %v4933_v42 }
 0x109   :  { %v4841_v19 = vadd.s32 104, %v4823_v12  ;;  %v4844_v20 = vadd.s32 80, %v4823_v12  ;;  %v4861_v25 = vadd.s32 72, %v4823_v12 }
 0x10a   :  { %v154_v48 = vmul.f32 %v4785_v44, %v4785_v44  ;;  %v155_v49 = vmul.f32 %v4787_v45, %v4787_v45  ;;  %v157_v50 = vmul.f32 %v4791_v47, %v4791_v47  ;;  %v156_v51 = vmul.f32 %v4789_v46, %v4789_v46 }
 0x10b   :  { %vm327_vm5 = vcmp.eq.s32.totalorder %v4841_v19, %v4828_v14  ;;  %9969 = vst [vmem:[#allocation8_spill] sm:$0xff] %v4861_v25  ;;  %vm324_vm8 = vcmp.eq.s32.totalorder %v4844_v20, %v4828_v14  ;;  %vm323_vm15 = vcmp.eq.s32.totalorder %v4861_v25, %v4828_v14 }
 0x10c   :  { %v162_v52 = vadd.f32 %v155_v49, %v154_v48  ;;  %v164_v56 = vsel %vm9875_vm1, %v157_v50, 0.0  ;;  %vm3723_vm10 = vmpackc.low %vm327_vm5, %vm326_vm4  ;;  %vm320_vm5 = vcmp.eq.s32.totalorder %v4894_v34, %v4828_v14  ;;  %v4942_v49 = vadd.s32 24, %v4823_v12 }
 0x10d   :  { %v143_v53 = vpop.xlane.xlu1 %142  ;;  %3724 = vmatpush.bf16.msk.msrb.mxu0 %vm3723_vm10, %v9880_v26  ;;  %vm4918_vm4 = vmpackc.low %vm325_vm9, %vm324_vm8  ;;  %v4945_v50 = vadd.s32 192, %v4823_v12  ;;  %vm321_vm8 = vcmp.eq.s32.totalorder %v4901_v35, %v4828_v14  ;;  %vm318_vm9 = vcmp.eq.s32.totalorder %v4910_v37, %v4828_v14  ;;  %vm340_vm10 = vcmp.eq.s32.totalorder %v4927_v40, %v4828_v14 }
 0x10e   :  { %v145_v54 = vmul.f32 0.0025510204, %v143_v53  ;;  %v163_v55 = vadd.f32 %v162_v52, %v156_v51  ;;  %9983 = vst [vmem:[#allocation18_spill] sm:$0xff] %v4942_v49  ;;  %vm4964_vm13 = vmpackc.low %vm323_vm15, %vm322_vm11  ;;  %v4973_v53 = vadd.s32 200, %v4823_v12  ;;  %vm317_vm11 = vcmp.eq.s32.totalorder %v4942_v49, %v4828_v14 }
 0x10f   :  { %vm338_vm15 = vcmp.eq.s32.totalorder %v4945_v50, %v4828_v14  ;;  %v5120_v52 = vadd.s32 168, %v4823_v12 }
 0x110   :  { %v4802_v57 = vsub.f32 %v87_v31, %v145_v54  ;;  %v4804_v58 = vsub.f32 %v101_v32, %v145_v54  ;;  %v165_v59 = vadd.f32 %v164_v56, %v163_v55  ;;  %v4806_v60 = vsub.f32 %v115_v36, %v145_v54 }
 0x111   :  { %v4808_v61 = vsub.f32 %v129_v38, %v145_v54  ;;  %v4882_v31 = vadd.s32 224, %v4823_v12  ;;  %v4885_v32 = vadd.s32 232, %v4823_v12  ;;  %3726 = vmatpush.bf16.msk.msrb.mxu0 %vm4918_vm4, %v9880_v26  ;;  %v4993_v56 = vadd.s32 368, %v4823_v12  ;;  %vm5022_vm4 = vmpackc.low %vm321_vm8, %vm320_vm5 }
 0x112   :  { %166 = vadd.xlane.f32.xlu2 %v165_v59  ;;  %v158_v62 = vmul.f32 %v4802_v57, %v4802_v57  ;;  %v159_v63 = vmul.f32 %v4804_v58, %v4804_v58  ;;  %v160_v1 = vmul.f32 %v4806_v60, %v4806_v60  ;;  %v4996_v59 = vadd.s32 376, %v4823_v12  ;;  %vm5048_vm5 = vmpackc.low %vm319_vm0, %vm318_vm9 }
 0x113   :  { %v161_v0 = vmul.f32 %v4808_v61, %v4808_v61  ;;  %9972 = vst [vmem:[#allocation11_spill] sm:$0xff] %v4882_v31  ;;  %vm342_vm2 = vcmp.eq.s32.totalorder %v4882_v31, %v4828_v14  ;;  %vm343_vm3 = vcmp.eq.s32.totalorder %v4885_v32, %v4828_v14  ;;  %vm9886_vm8 = vcmask 1043456  }
 0x114   :  { %v168_v2 = vadd.f32 %v159_v63, %v158_v62  ;;  %9973 = vst [vmem:[#allocation12_spill] sm:$0xff] %v4885_v32  ;;  %vm4937_vm6 = vmpackc.low %vm343_vm3, %vm342_vm2  ;;  %vm316_vm2 = vcmp.eq.s32.totalorder %v4933_v42, %v4828_v14  ;;  %v5102_v38 = vadd.s32 360, %v4823_v12 }
 0x115   :  { %v170_v4 = vsel %vm9875_vm1, %v161_v0, 0.0  ;;  %3740 = vmatpush.bf16.msk.msrb.mxu1 %vm4937_vm6, %v9880_v26  ;;  %9988 = vst [vmem:[#allocation19_spill] sm:$0xff] %v4996_v59  ;;  %v5009_v0 = vadd.s32 8, %v4823_v12  ;;  %vm339_vm6 = vcmp.eq.s32.totalorder %v4973_v53, %v4828_v14  ;;  %3728 = vmatpush.bf16.msk.msrb.mxu0 %vm4964_vm13, %v9880_v26 }
 0x116   :  { %v169_v3 = vadd.f32 %v168_v2, %v160_v1  ;;  %v5014_v1 = vld [vmem:[%s9870_s3 + $0x1] ss:$0 sm:$0xff]  ;;  %vm5068_vm9 = vmpackc.low %vm339_vm6, %vm338_vm15  ;;  %vm337_vm6 = vcmp.eq.s32.totalorder %v5060_v10, %v4828_v14  ;;  %9999 = vst [vmem:[#allocation22_spill] sm:$0xff] %v5102_v38  ;;  %v5348_v2 = vadd.s32 264, %v4823_v12 }
 0x117   :  { %9989 = vst [vmem:[#allocation20_spill] sm:$0xff] %v5009_v0  ;;  %vm522_vm13 = vcmp.eq.s32.totalorder %v4832_v16, %v5014_v1  ;;  %vm523_vm0 = vcmp.eq.s32.totalorder %v4835_v17, %v5014_v1  ;;  %vm5085_vm15 = vmpackc.low %vm317_vm11, %vm316_vm2  ;;  %vm315_vm11 = vcmp.eq.s32.totalorder %v5009_v0, %v4828_v14 }
 0x118   :  { %v171_v5 = vadd.f32 %v170_v4, %v169_v3  ;;  %v5033_v3 = vadd.s32 384, %v4823_v12  ;;  %10022 = vst [vmem:[#allocation35_spill] sm:$0xff] %v5348_v2 }
 0x119   :  { %3730 = vmatpush.bf16.msk.msrb.mxu0 %vm5022_vm4, %v9880_v26 }
 0x11a   :  { %172 = vadd.xlane.f32.xlu2 %v171_v5  ;;  %9992 = vst [vmem:[#allocation21_spill] sm:$0xff] %v5033_v3  ;;  %vm362_vm1 = vcmp.eq.s32.totalorder %v5033_v3, %v4828_v14 }
 0x11d   :  { %3732 = vmatpush.bf16.msk.msrb.mxu0 %vm5048_vm5, %v9880_v26  ;;  %vm538_vm5 = vcmp.eq.s32.totalorder %v4870_v27, %v5014_v1 }
 0x121   :  { %3734 = vmatpush.bf16.msk.msrb.mxu0 %vm5085_vm15, %v9880_v26 }
 0x132   :  { %219 = vperm.xlu2 %4631, %v4774_v13  }
 0x185   :  { %v167_v7 = vpop.xlane.xlu2 %166 }
 0x186   :  { %v174_v8 = vmul.f32 0.0025510204, %v167_v7 }
 0x188   :  { %v4820_v11 = vadd.f32 1e-05, %v174_v8  ;;  %v5057_v8 = vadd.s32 176, %v4823_v12 }
 0x18a   :  { %4656 = vrsqrt.f32 %v4820_v11  ;;  %vm184_vm7 = vweird.f32 %v4820_v11 }
 0x18d   :  { %v173_v23 = vpop.xlane.xlu2 %172 }
 0x18e   :  { %v175_v24 = vmul.f32 0.0025510204, %v173_v23  ;;  %v9876_v23 = vmov 0.0  }
 0x190   :  { %v4875_v29 = vpop.eup %4656  ;;  %v4877_v30 = vadd.f32 1e-05, %v175_v24  ;;  %v411_v24 = vsel %vm362_vm1, 1.0, %v9876_v23  ;;  %vm336_vm1 = vcmp.eq.s32.totalorder %v5057_v8, %v4828_v14 }
 0x191   :  { %v179_v33 = vmul.f32 %v4875_v29, %v4820_v11  ;;  %vm185_vm14 = vweird.f32 %v4875_v29 }
 0x192   :  { %4658 = vrsqrt.f32 %v4877_v30  ;;  %vm4981_vm3 = vmor %vm184_vm7, %vm185_vm14 }
 0x193   :  { %v180_v36 = vmul.f32 %v4875_v29, %v179_v33  ;;  %vm3741_vm14 = vmpackc.low %vm341_vm12, %vm340_vm10  ;;  %vm360_vm10 = vcmp.eq.s32.totalorder %v4993_v56, %v4828_v14  ;;  %vm361_vm12 = vcmp.eq.s32.totalorder %v4996_v59, %v4828_v14  ;;  %v436_v33 = vpack.c.bf16 %v411_v24, %v411_v24 }
 0x194   :  { %3742 = vmatpush.bf16.msk.msrb.mxu1 %vm3741_vm14, %v9880_v26  ;;  %vm194_vm14 = vweird.f32 %v4877_v30  ;;  %v5211_v24 = vadd.s32 320, %v4823_v12 }
 0x195   :  { %v181_v43 = vmul.f32 0.5, %v180_v36  ;;  %v442_v48 = vsel %vm9886_vm8, %v436_v33, 0  ;;  %v5214_v33 = vadd.s32 328, %v4823_v12 }
 0x196   :  { %493 = vmatpush.bf16.msrb.mxu3 %v442_v48  ;;  %v5296_v48 = vadd.s32 296, %v4823_v12 }
 0x197   :  { %v182_v51 = vsub.f32 1.5, %v181_v43  ;;  %10012 = vst [vmem:[#allocation25_spill] sm:$0xff] %v5214_v33  ;;  %vm355_vm15 = vcmp.eq.s32.totalorder %v5214_v33, %v4828_v14  ;;  %v5293_v43 = vadd.s32 288, %v4823_v12 }
 0x198   :  { %v4975_v54 = vpop.eup %4658  ;;  %3744 = vmatpush.bf16.msk.msrb.mxu1 %vm5068_vm9, %v9880_v26  ;;  %10018 = vst [vmem:[#allocation31_spill] sm:$0xff] %v5296_v48 }
 0x199   :  { %v189_v62 = vmul.f32 %v4975_v54, %v4877_v30  ;;  %vm195_vm7 = vweird.f32 %v4975_v54  ;;  %v183_v63 = vmul.f32 %v4875_v29, %v182_v51  ;;  %v5099_v30 = vadd.s32 352, %v4823_v12  ;;  %10017 = vst [vmem:[#allocation30_spill] sm:$0xff] %v5293_v43 }
 0x19a   :  { %vm5106_vm2 = vmor %vm194_vm14, %vm195_vm7  ;;  %v5117_v51 = vadd.s32 160, %v4823_v12  ;;  %vm520_vm14 = vcmp.eq.s32.totalorder %v4838_v18, %v5014_v1 }
 0x19b   :  { %v190_v4 = vmul.f32 %v4975_v54, %v189_v62  ;;  %v187_v5 = vsel %vm4981_vm3, %v4875_v29, %v183_v63  ;;  %vm3753_vm3 = vmpackc.low %vm361_vm12, %vm360_vm10  ;;  %vm314_vm10 = vcmp.eq.s32.totalorder %v4823_v12, %v4828_v14  ;;  %vm358_vm4 = vcmp.eq.s32.totalorder %v5099_v30, %v4828_v14 }
 0x19c   :  { %v198_v7 = vmul.f32 %v187_v5, %v4774_v13  ;;  %3754 = vmatpush.bf16.msk.msrb.mxu2 %vm3753_vm3, %v9880_v26  ;;  %vm3771_vm12 = vmpackc.low %vm523_vm0, %vm522_vm13  ;;  %vm359_vm3 = vcmp.eq.s32.totalorder %v5102_v38, %v4828_v14  ;;  %vm334_vm13 = vcmp.eq.s32.totalorder %v5117_v51, %v4828_v14  ;;  %vm335_vm0 = vcmp.eq.s32.totalorder %v5120_v52, %v4828_v14 }
 0x19d   :  { %v191_v11 = vmul.f32 0.5, %v190_v4  ;;  %vm5129_vm7 = vmpackc.low %vm337_vm6, %vm336_vm1  ;;  %3772 = vmatpush.bf16.msk.msra.mxu3 %vm3771_vm12, %v9880_v26  ;;  %vm521_vm1 = vcmp.eq.s32.totalorder %v4841_v19, %v5014_v1  ;;  %v5164_v4 = vadd.s32 336, %v4823_v12  ;;  %v5170_v5 = vadd.s32 144, %v4823_v12 }
 0x19e   :  { %202 = vperm.xlu0 %4629, %v198_v7   ;;  %vm3755_vm9 = vmpackc.low %vm359_vm3, %vm358_vm4  ;;  %3746 = vmatpush.bf16.msk.msrb.mxu1 %vm5129_vm7, %v9880_v26  ;;  %vm518_vm3 = vcmp.eq.s32.totalorder %v4844_v20, %v5014_v1  ;;  %v5264_v29 = vadd.s32 304, %v4823_v12  ;;  %v5322_v62 = vadd.s32 280, %v4823_v12 }
 0x19f   :  { %v192_v36 = vsub.f32 1.5, %v191_v11  ;;  %vm5158_vm6 = vmpackc.low %vm315_vm11, %vm314_vm10  ;;  %10006 = vst [vmem:[#allocation23_spill] sm:$0xff] %v5170_v5  ;;  %vm539_vm10 = vcmp.eq.s32.totalorder %v4873_v28, %v5014_v1  ;;  %v5188_v11 = vadd.s32 152, %v4823_v12  ;;  %vm356_vm11 = vcmp.eq.s32.totalorder %v5164_v4, %v4828_v14 }
 0x1a0   :  { %3756 = vmatpush.bf16.msk.msrb.mxu2 %vm3755_vm9, %v9880_v26  ;;  %vm5183_vm12 = vmpackc.low %vm335_vm0, %vm334_vm13  ;;  %vm332_vm4 = vcmp.eq.s32.totalorder %v5170_v5, %v4828_v14  ;;  %vm519_vm0 = vcmp.eq.s32.totalorder %v4847_v21, %v5014_v1  ;;  %3736 = vmatpush.bf16.msk.msrb.mxu0 %vm5158_vm6, %v9880_v26  ;;  %10015 = vst [vmem:[#allocation28_spill] sm:$0xff] %v5264_v29 }
 0x1a1   :  { %v193_v55 = vmul.f32 %v4975_v54, %v192_v36  ;;  %10009 = vst [vmem:[#allocation24_spill] sm:$0xff] %v5188_v11  ;;  %vm333_vm13 = vcmp.eq.s32.totalorder %v5188_v11, %v4828_v14  ;;  %v5267_v36 = vadd.s32 312, %v4823_v12 }
 0x1a2   :  { %3748 = vmatpush.bf16.msk.msrb.mxu1 %vm5183_vm12, %v9880_v26  ;;  %vm537_vm12 = vcmp.eq.s32.totalorder %v4885_v32, %v5014_v1  ;;  %10020 = vst [vmem:[#allocation33_spill] sm:$0xff] %v5322_v62 }
 0x1a3   :  { %v197_v63 = vsel %vm5106_vm2, %v4975_v54, %v193_v55  ;;  %v5167_v54 = vadd.s32 344, %v4823_v12  ;;  %vm5193_vm2 = vmpackc.low %vm521_vm1, %vm520_vm14  ;;  %10016 = vst [vmem:[#allocation29_spill] sm:$0xff] %v5267_v36  ;;  %v5319_v55 = vadd.s32 272, %v4823_v12 }
 0x1a4   :  { %v199_v6 = vmul.f32 %v197_v63, %v4780_v15  ;;  %vm3787_vm14 = vmpackc.low %vm539_vm10, %vm538_vm5  ;;  %3774 = vmatpush.bf16.msk.msra.mxu3 %vm5193_vm2, %v9880_v26  ;;  %vm536_vm10 = vcmp.eq.s32.totalorder %v4882_v31, %v5014_v1  ;;  %v5345_v63 = vadd.s32 256, %v4823_v12 }
 0x1a5   :  { %vm357_vm7 = vcmp.eq.s32.totalorder %v5167_v54, %v4828_v14  ;;  %vm3749_vm1 = vmpackc.low %vm333_vm13, %vm332_vm4  ;;  %3788 = vmatpush.bf16.msk.msra.mxu0 %vm3787_vm14, %v9880_v26  ;;  %vm534_vm4 = vcmp.eq.s32.totalorder %v4927_v40, %v5014_v1  ;;  %vm517_vm14 = vcmp.eq.s32.totalorder %v4861_v25, %v5014_v1  ;;  %10019 = vst [vmem:[#allocation32_spill] sm:$0xff] %v5319_v55 }
 0x1a6   :  { %207 = vperm.xlu1 %4630, %v199_v6   ;;  %4632 = vset.pattern.permute.xlu0 %v4696_v9  ;;  %vm3757_vm9 = vmpackc.low %vm357_vm7, %vm356_vm11  ;;  %vm354_vm11 = vcmp.eq.s32.totalorder %v5211_v24, %v4828_v14  ;;  %v5261_v9 = vadd.s32 136, %v4823_v12  ;;  %10021 = vst [vmem:[#allocation34_spill] sm:$0xff] %v5345_v63 }
 0x1a7   :  { %223 = vperm.xlu0 %4632, %v4780_v15   ;;  %3758 = vmatpush.bf16.msk.msrb.mxu2 %vm3757_vm9, %v9880_v26  ;;  %vm3775_vm5 = vmpackc.low %vm519_vm0, %vm518_vm3  ;;  %vm535_vm3 = vcmp.eq.s32.totalorder %v4930_v41, %v5014_v1  ;;  %v5258_v15 = vadd.s32 128, %v4823_v12  ;;  %vm516_vm0 = vcmp.eq.s32.totalorder %v4850_v22, %v5014_v1 }
 0x1a8   :  { %vm3759_vm2 = vmpackc.low %vm355_vm15, %vm354_vm11  ;;  %3750 = vmatpush.bf16.msk.msrb.mxu1 %vm3749_vm1, %v9880_v26  ;;  %3776 = vmatpush.bf16.msk.msra.mxu3 %vm3775_vm5, %v9880_v26  ;;  %10014 = vst [vmem:[#allocation27_spill] sm:$0xff] %v5261_v9  ;;  %vm331_vm13 = vcmp.eq.s32.totalorder %v5261_v9, %v4828_v14  ;;  %vm532_vm11 = vcmp.eq.s32.totalorder %v4945_v50, %v5014_v1 }
 0x1a9   :  { %vm3789_vm7 = vmpackc.low %vm537_vm12, %vm536_vm10  ;;  %10013 = vst [vmem:[#allocation26_spill] sm:$0xff] %v5258_v15  ;;  %vm330_vm6 = vcmp.eq.s32.totalorder %v5258_v15, %v4828_v14  ;;  %vm533_vm15 = vcmp.eq.s32.totalorder %v4973_v53, %v5014_v1  ;;  %vm352_vm5 = vcmp.eq.s32.totalorder %v5264_v29, %v4828_v14  ;;  %vm353_vm10 = vcmp.eq.s32.totalorder %v5267_v36, %v4828_v14 }
 0x1aa   :  { %3790 = vmatpush.bf16.msk.msra.mxu0 %vm3789_vm7, %v9880_v26  ;;  %vm3791_vm9 = vmpackc.low %vm535_vm3, %vm534_vm4  ;;  %vm555_vm7 = vcmp.eq.s32.totalorder %v4996_v59, %v5014_v1 }
 0x1ab   :  { %3760 = vmatpush.bf16.msk.msrb.mxu2 %vm3759_vm2, %v9880_v26  ;;  %vm3751_vm1 = vmpackc.low %vm331_vm13, %vm330_vm6  ;;  %vm554_vm2 = vcmp.eq.s32.totalorder %v4993_v56, %v5014_v1  ;;  %vm514_vm6 = vcmp.eq.s32.totalorder %v4894_v34, %v5014_v1  ;;  %vm515_vm13 = vcmp.eq.s32.totalorder %v4901_v35, %v5014_v1 }
 0x1ac   :  { %3752 = vmatpush.bf16.msk.msrb.mxu1 %vm3751_vm1, %v9880_v26  ;;  %vm3777_vm12 = vmpackc.low %vm517_vm14, %vm516_vm0  ;;  %vm530_vm0 = vcmp.eq.s32.totalorder %v5057_v8, %v5014_v1  ;;  %vm531_vm14 = vcmp.eq.s32.totalorder %v5060_v10, %v5014_v1 }
 0x1ad   :  { %3778 = vmatpush.bf16.msk.msra.mxu3 %vm3777_vm12, %v9880_v26  ;;  %vm3793_vm4 = vmpackc.low %vm533_vm15, %vm532_vm11  ;;  %vm350_vm11 = vcmp.eq.s32.totalorder %v5293_v43, %v4828_v14  ;;  %vm351_vm15 = vcmp.eq.s32.totalorder %v5296_v48, %v4828_v14 }
 0x1ae   :  { %3792 = vmatpush.bf16.msk.msra.mxu0 %vm3791_vm9, %v9880_v26  ;;  %vm3761_vm3 = vmpackc.low %vm353_vm10, %vm352_vm5  ;;  %vm552_vm5 = vcmp.eq.s32.totalorder %v5099_v30, %v5014_v1  ;;  %vm553_vm10 = vcmp.eq.s32.totalorder %v5102_v38, %v5014_v1 }
 0x1af   :  { %3762 = vmatpush.bf16.msk.msrb.mxu2 %vm3761_vm3, %v9880_v26  ;;  %vm3803_vm9 = vmpackc.low %vm555_vm7, %vm554_vm2  ;;  %vm513_vm3 = vcmp.eq.s32.totalorder %v4924_v39, %v5014_v1 }
 0x1b0   :  { %3804 = vmatpush.bf16.msk.msra.mxu1 %vm3803_vm9, %v9880_v26  ;;  %vm3779_vm1 = vmpackc.low %vm515_vm13, %vm514_vm6  ;;  %vm528_vm9 = vcmp.eq.s32.totalorder %v5117_v51, %v5014_v1  ;;  %vm529_vm6 = vcmp.eq.s32.totalorder %v5120_v52, %v5014_v1 }
 0x1b1   :  { %3780 = vmatpush.bf16.msk.msra.mxu3 %vm3779_vm1, %v9880_v26  ;;  %vm3795_vm12 = vmpackc.low %vm531_vm14, %vm530_vm0  ;;  %vm348_vm0 = vcmp.eq.s32.totalorder %v5319_v55, %v4828_v14  ;;  %vm349_vm14 = vcmp.eq.s32.totalorder %v5322_v62, %v4828_v14  ;;  %vm550_vm1 = vcmp.eq.s32.totalorder %v5164_v4, %v5014_v1 }
 0x1b2   :  { %3794 = vmatpush.bf16.msk.msra.mxu0 %vm3793_vm4, %v9880_v26  ;;  %vm3763_vm2 = vmpackc.low %vm351_vm15, %vm350_vm11  ;;  %vm512_vm4 = vcmp.eq.s32.totalorder %v4910_v37, %v5014_v1  ;;  %vm551_vm11 = vcmp.eq.s32.totalorder %v5167_v54, %v5014_v1 }
 0x1b3   :  { %3764 = vmatpush.bf16.msk.msrb.mxu2 %vm3763_vm2, %v9880_v26  ;;  %vm3805_vm7 = vmpackc.low %vm553_vm10, %vm552_vm5  ;;  %vm511_vm2 = vcmp.eq.s32.totalorder %v4942_v49, %v5014_v1 }
 0x1b4   :  { %3806 = vmatpush.bf16.msk.msra.mxu1 %vm3805_vm7, %v9880_v26  ;;  %vm3781_vm13 = vmpackc.low %vm513_vm3, %vm512_vm4  ;;  %vm526_vm7 = vcmp.eq.s32.totalorder %v5170_v5, %v5014_v1  ;;  %vm527_vm4 = vcmp.eq.s32.totalorder %v5188_v11, %v5014_v1 }
 0x1b5   :  { %3782 = vmatpush.bf16.msk.msra.mxu3 %vm3781_vm13, %v9880_v26  ;;  %vm3797_vm15 = vmpackc.low %vm529_vm6, %vm528_vm9  ;;  %vm346_vm9 = vcmp.eq.s32.totalorder %v5345_v63, %v4828_v14  ;;  %vm347_vm6 = vcmp.eq.s32.totalorder %v5348_v2, %v4828_v14  ;;  %vm548_vm13 = vcmp.eq.s32.totalorder %v5211_v24, %v5014_v1 }
 0x1b6   :  { %3796 = vmatpush.bf16.msk.msra.mxu0 %vm3795_vm12, %v9880_v26  ;;  %vm3765_vm5 = vmpackc.low %vm349_vm14, %vm348_vm0  ;;  %vm510_vm12 = vcmp.eq.s32.totalorder %v4933_v42, %v5014_v1  ;;  %vm549_vm0 = vcmp.eq.s32.totalorder %v5214_v33, %v5014_v1 }
 0x1b7   :  { %3766 = vmatpush.bf16.msk.msrb.mxu2 %vm3765_vm5, %v9880_v26  ;;  %vm3807_vm10 = vmpackc.low %vm551_vm11, %vm550_vm1  ;;  %vm556_vm1 = vcmp.eq.s32.totalorder %v5033_v3, %v5014_v1  ;;  %vm508_vm5 = vcmp.eq.s32.totalorder %v4823_v12, %v5014_v1 }
 0x1b8   :  { %3808 = vmatpush.bf16.msk.msra.mxu1 %vm3807_vm10, %v9880_v26  ;;  %vm3783_vm3 = vmpackc.low %vm511_vm2, %vm510_vm12  ;;  %v605_v6 = vsel %vm556_vm1, 1.0, %v9876_v23  ;;  %vm509_vm10 = vcmp.eq.s32.totalorder %v5009_v0, %v5014_v1  ;;  %vm524_vm12 = vcmp.eq.s32.totalorder %v5258_v15, %v5014_v1  ;;  %vm525_vm2 = vcmp.eq.s32.totalorder %v5261_v9, %v5014_v1  ;;  %v220_v23 = vpop.permute.xlu2 %219 }
 0x1b9   :  { %3784 = vmatpush.bf16.msk.msra.mxu3 %vm3783_vm3, %v9880_v26  ;;  %vm3799_vm14 = vmpackc.low %vm527_vm4, %vm526_vm7  ;;  %v630_v14 = vpack.c.bf16 %v605_v6, %v605_v6  ;;  %vm546_vm4 = vcmp.eq.s32.totalorder %v5264_v29, %v5014_v1  ;;  %vm547_vm3 = vcmp.eq.s32.totalorder %v5267_v36, %v5014_v1  ;;  %vm542_vm1 = vcmp.eq.s32.totalorder %v5319_v55, %v5014_v1  ;;  %v5408_v6 = vld [vmem:[%s9870_s3 + $0x2] ss:$0 sm:$0xff] }
 0x1ba   :  { %3798 = vmatpush.bf16.msk.msra.mxu0 %vm3797_vm15, %v9880_v26  ;;  %vm3767_vm11 = vmpackc.low %vm347_vm6, %vm346_vm9 }
 0x1bb   :  { %3768 = vmatpush.bf16.msk.msrb.mxu2 %vm3767_vm11, %v9880_v26  ;;  %vm3809_vm15 = vmpackc.low %vm549_vm0, %vm548_vm13  ;;  %v632_v7 = vsel %vm9886_vm8, %v630_v14, 0  ;;  %vm544_vm13 = vcmp.eq.s32.totalorder %v5293_v43, %v5014_v1  ;;  %vm545_vm0 = vcmp.eq.s32.totalorder %v5296_v48, %v5014_v1  ;;  %vm543_vm11 = vcmp.eq.s32.totalorder %v5322_v62, %v5014_v1 }
 0x1bc   :  { %3810 = vmatpush.bf16.msk.msra.mxu1 %vm3809_vm15, %v9880_v26  ;;  %vm3785_vm7 = vmpackc.low %vm509_vm10, %vm508_vm5  ;;  %vm540_vm5 = vcmp.eq.s32.totalorder %v5345_v63, %v5014_v1  ;;  %vm541_vm10 = vcmp.eq.s32.totalorder %v5348_v2, %v5014_v1 }
 0x1bd   :  { %3786 = vmatpush.bf16.msk.msra.mxu3 %vm3785_vm7, %v9880_v26  ;;  %vm3801_vm9 = vmpackc.low %vm525_vm2, %vm524_vm12  ;;  %vm745_vm2 = vcmp.eq.s32.totalorder %v5033_v3, %v5408_v6  ;;  %vm711_vm7 = vcmp.eq.s32.totalorder %v4832_v16, %v5408_v6 }
 0x1be   :  { %3800 = vmatpush.bf16.msk.msra.mxu0 %vm3799_vm14, %v9880_v26  ;;  %vm3811_vm6 = vmpackc.low %vm547_vm3, %vm546_vm4  ;;  %vm712_vm4 = vcmp.eq.s32.totalorder %v4835_v17, %v5408_v6  ;;  %vm727_vm3 = vcmp.eq.s32.totalorder %v4870_v27, %v5408_v6 }
 0x1bf   :  { %683 = vmatpush.bf16.msra.mxu2 %v632_v7  ;;  %vm3813_vm14 = vmpackc.low %vm545_vm0, %vm544_vm13  ;;  %vm744_vm13 = vcmp.eq.s32.totalorder %v4996_v59, %v5408_v6 }
 0x1c0   :  { %3812 = vmatpush.bf16.msk.msra.mxu1 %vm3811_vm6, %v9880_v26  ;;  %vm3815_vm15 = vmpackc.low %vm543_vm11, %vm542_vm1  ;;  %vm743_vm6 = vcmp.eq.s32.totalorder %v4993_v56, %v5408_v6 }
 0x1c1   :  { %vm3817_vm12 = vmpackc.low %vm541_vm10, %vm540_vm5 }
 0x1c2   :  { %3802 = vmatpush.bf16.msk.msra.mxu0 %vm3801_vm9, %v9880_v26  ;;  %vm728_vm9 = vcmp.eq.s32.totalorder %v4873_v28, %v5408_v6 }
 0x1c3   :  { %vm5472_vm0 = vmpackc.low %vm728_vm9, %vm727_vm3  ;;  %vm10037_vm9 = vcmp.eq.s32.totalorder %v4882_v31, %v5408_v6 }
 0x1c4   :  { %3814 = vmatpush.bf16.msk.msra.mxu1 %vm3813_vm14, %v9880_v26  ;;  %vm5460_vm14 = vmpackc.low %vm712_vm4, %vm711_vm7  ;;  %vm10033_vm7 = vcmp.eq.s32.totalorder %v4838_v18, %v5408_v6  ;;  %vm10034_vm4 = vcmp.eq.s32.totalorder %v4841_v19, %v5408_v6 }
 0x1c5   :  { %vm5500_vm3 = vmpackc.low %vm10034_vm4, %vm10033_vm7  ;;  %vm10045_vm7 = vcmask 1043456   ;;  %vm10046_vm4 = vcmask 64512  }
 0x1c8   :  { %3816 = vmatpush.bf16.msk.msra.mxu1 %vm3815_vm15, %v9880_v26 }
 0x1cc   :  { %3818 = vmatpush.bf16.msk.msra.mxu1 %vm3817_vm12, %v9880_v26 }
 0x210   :  { %v203_v13 = vpop.permute.xlu0 %202 }
 0x211   :  { %v210_v14 = vmul.f32 %v203_v13, %v4785_v44  ;;  %v211_v7 = vmul.f32 %v203_v13, %v4787_v45  ;;  %v212_v1 = vmul.f32 %v203_v13, %v4789_v46  ;;  %v213_v2 = vmul.f32 %v203_v13, %v4791_v47 }
 0x212   :  { %v10023_v46 = vmov 0.0  }
 0x213   :  { %v226_v44 = vadd.f32 %v220_v23, %v210_v14  ;;  %v227_v45 = vadd.f32 %v220_v23, %v211_v7  ;;  %v5430_v47 = vsel %vm745_vm2, 1.0, %v10023_v46  ;;  %v228_v13 = vadd.f32 %v220_v23, %v212_v1 }
 0x214   :  { %v229_v14 = vadd.f32 %v220_v23, %v213_v2  ;;  %v819_v23 = vpack.c.bf16 %v5430_v47, %v5430_v47 }
 0x215   :  { %vm234_vm2 = vcmp.ge.f32.partialorder %v226_v44, 0.0  ;;  %vm235_vm8 = vcmp.ge.f32.partialorder %v227_v45, 0.0  ;;  %v242_v2 = vmul.f32 0.2, %v226_v44  ;;  %vm236_vm5 = vcmp.ge.f32.partialorder %v228_v13, 0.0 }
 0x216   :  { %v245_v0 = vmul.f32 0.2, %v229_v14  ;;  %vm237_vm12 = vcmp.ge.f32.partialorder %v229_v14, 0.0 }
 0x218   :  { %v208_v7 = vpop.permute.xlu1 %207 }
 0x219   :  { %v214_v26 = vmul.f32 %v208_v7, %v4802_v57  ;;  %v215_v46 = vmul.f32 %v208_v7, %v4804_v58  ;;  %v216_v3 = vmul.f32 %v208_v7, %v4806_v60  ;;  %v224_v63 = vpop.permute.xlu0 %223  ;;  %v217_v1 = vmul.f32 %v208_v7, %v4808_v61 }
 0x21a   :  { %v243_v57 = vmul.f32 0.2, %v227_v45  ;;  %v244_v60 = vmul.f32 0.2, %v228_v13  ;;  %v10072_v7 = vmov 0  ;;  %v10096_v61 = vmov 0 }
 0x21b   :  { %v230_v9 = vadd.f32 %v224_v63, %v214_v26  ;;  %v231_v58 = vadd.f32 %v224_v63, %v215_v46  ;;  %v232_v15 = vadd.f32 %v224_v63, %v216_v3  ;;  %v233_v12 = vadd.f32 %v224_v63, %v217_v1 }
 0x21c   :  { %v250_v26 = vsel %vm234_vm2, %v226_v44, %v242_v2  ;;  %v251_v3 = vsel %vm235_vm8, %v227_v45, %v243_v57  ;;  %v252_v1 = vsel %vm236_vm5, %v228_v13, %v244_v60  ;;  %vm5485_vm8 = vmpackc.low %vm744_vm13, %vm743_vm6  ;;  %vm10038_vm6 = vcmp.eq.s32.totalorder %v4885_v32, %v5408_v6  ;;  %v5585_v57 = vld [vmem:[%s9870_s3 + $0x3] ss:$0 sm:$0xff]  ;;  %v10091_v2 = vld [vmem:[#allocation20_spill] sm:$0xff] }
 0x21d   :  { %vm238_vm10 = vcmp.ge.f32.partialorder %v230_v9, 0.0  ;;  %vm239_vm15 = vcmp.ge.f32.partialorder %v231_v58, 0.0  ;;  %vm240_vm11 = vcmp.ge.f32.partialorder %v232_v15, 0.0  ;;  %v246_v62 = vmul.f32 0.2, %v230_v9  ;;  %vm5513_vm13 = vmpackc.low %vm10038_vm6, %vm10037_vm9  ;;  %v10094_v60 = vld [vmem:[#allocation26_spill] sm:$0xff] }
 0x21e   :  { %vm241_vm1 = vcmp.ge.f32.partialorder %v233_v12, 0.0  ;;  %v247_v47 = vmul.f32 0.2, %v231_v58  ;;  %v248_v55 = vmul.f32 0.2, %v232_v15  ;;  %vm10042_vm5 = vcmp.eq.s32.totalorder %v5102_v38, %v5408_v6 }
 0x21f   :  { %v249_v63 = vmul.f32 0.2, %v233_v12  ;;  %v254_v46 = vsel %vm238_vm10, %v230_v9, %v246_v62  ;;  %v253_v62 = vsel %vm237_vm12, %v229_v14, %v245_v0  ;;  %vm739_vm12 = vcmp.eq.s32.totalorder %v5164_v4, %v5408_v6  ;;  %v10084_v0 = vld [vmem:[#allocation33_spill] sm:$0xff] }
 0x220   :  { %v255_v11 = vsel %vm239_vm15, %v231_v58, %v247_v47  ;;  %v256_v5 = vsel %vm240_vm11, %v232_v15, %v248_v55  ;;  %v5477_v49 = vpack.c.bf16 %v254_v46, %v250_v26  ;;  %vm724_vm11 = vcmp.eq.s32.totalorder %v4930_v41, %v5408_v6 }
 0x221   :  { %v257_v44 = vsel %vm241_vm1, %v233_v12, %v249_v63  ;;  %v5490_v45 = vpack.c.bf16 %v255_v11, %v251_v3  ;;  %v5492_v13 = vpack.c.bf16 %v256_v5, %v252_v1  ;;  %vm723_vm1 = vcmp.eq.s32.totalorder %v4927_v40, %v5408_v6  ;;  %v10074_v1 = vld [vmem:[#allocation18_spill] sm:$0xff]  ;;  %v10083_v12 = vld [vmem:[#allocation32_spill] sm:$0xff] }
 0x222   :  { %10028 = vst [vmem:[#allocation36_spill] sm:$0xff] %v5477_v49  ;;  %v5504_v55 = vpack.c.bf16 %v257_v44, %v253_v62  ;;  %452 = vmatmul.bf16.vlgmr.msrb.gmra.mxu0 %v5477_v49  ;;  %vm10041_vm15 = vcmp.eq.s32.totalorder %v5099_v30, %v5408_v6  ;;  %vm740_vm2 = vcmp.eq.s32.totalorder %v5167_v54, %v5408_v6  ;;  %v821_v5 = vsel %vm10045_vm7, %v819_v23, 0  ;;  %v10078_v62 = vld [vmem:[#allocation23_spill] sm:$0xff]  ;;  %v10079_v44 = vld [vmem:[#allocation24_spill] sm:$0xff]  ;;  %v10090_v23 = vld [vmem:[#allocation6_spill] sm:$0xff] }
 0x223   :  { %10031 = vst [vmem:[#allocation37_spill] sm:$0xff] %v5490_v45  ;;  %466 = vmatmul.bf16.vlgmr.msrb.gmra.mxu1 %v5490_v45  ;;  %480 = vmatmul.bf16.vlgmr.msrb.gmra.mxu2 %v5492_v13  ;;  %vm5529_vm10 = vmpackc.low %vm10042_vm5, %vm10041_vm15  ;;  %v10047_v11 = vmov 1.0|1.0   ;;  %vm10048_vm9 = vcmp.eq.s32.totalorder %v4844_v20, %v5408_v6  ;;  %vm10049_vm6 = vcmp.eq.s32.totalorder %v4847_v21, %v5408_v6  ;;  %v10056_v58 = vmov 0 }
 0x224   :  { %10032 = vst [vmem:[#allocation38_spill] sm:$0xff] %v5492_v13  ;;  %3769 = vmatmul.msk.bf16.vlgmr.msrb.gmra.mxu3 %vm10046_vm4, %v5504_v55  ;;  %3822 = vmatpush.bf16.msk.msrb.mxu2 %vm5460_vm14, %v10047_v11  ;;  %vm5549_vm15 = vmpackc.low %vm10049_vm6, %vm10048_vm9  ;;  %vm705_vm5 = vcmp.eq.s32.totalorder %v4850_v22, %v5408_v6  ;;  %vm706_vm7 = vcmp.eq.s32.totalorder %v4861_v25, %v5408_v6  ;;  %v10060_v47 = vmov 0  ;;  %v10068_v63 = vmov 0 }
 0x225   :  { %3838 = vmatpush.bf16.msk.msrb.mxu3 %vm5472_vm0, %v10047_v11  ;;  %3854 = vmatpush.bf16.msk.msrb.mxu0 %vm5485_vm8, %v10047_v11  ;;  %vm5566_vm14 = vmpackc.low %vm724_vm11, %vm723_vm1  ;;  %vm721_vm4 = vcmp.eq.s32.totalorder %v4945_v50, %v5408_v6  ;;  %vm722_vm9 = vcmp.eq.s32.totalorder %v4973_v53, %v5408_v6  ;;  %vm737_vm0 = vcmp.eq.s32.totalorder %v5211_v24, %v5408_v6  ;;  %v10070_v46 = vmov 0 }
 0x226   :  { %vm5574_vm6 = vmpackc.low %vm740_vm2, %vm739_vm12  ;;  %vm738_vm8 = vcmp.eq.s32.totalorder %v5214_v33, %v5408_v6  ;;  %872 = vmatpush.bf16.msrb.mxu1 %v821_v5  ;;  %vm703_vm11 = vcmp.eq.s32.totalorder %v4894_v34, %v5408_v6  ;;  %vm704_vm12 = vcmp.eq.s32.totalorder %v4901_v35, %v5408_v6  ;;  %v10085_v5 = vmov 0 }
 0x227   :  { %vm5587_vm1 = vmpackc.low %vm706_vm7, %vm705_vm5  ;;  %vm719_vm5 = vcmp.eq.s32.totalorder %v5057_v8, %v5408_v6  ;;  %vm720_vm7 = vcmp.eq.s32.totalorder %v5060_v10, %v5408_v6  ;;  %v10101_v26 = vmov 0  ;;  %v10116_v9 = vmov 0 }
 0x228   :  { %v10057_v58 = vsel %vm5587_vm1, 4294967295, %v10056_v58  ;;  %3824 = vmatpush.bf16.msk.msrb.mxu2 %vm5500_vm3, %v10047_v11  ;;  %vm5598_vm2 = vmpackc.low %vm722_vm9, %vm721_vm4  ;;  %vm735_vm3 = vcmp.eq.s32.totalorder %v5264_v29, %v5408_v6  ;;  %vm736_vm4 = vcmp.eq.s32.totalorder %v5267_v36, %v5408_v6  ;;  %v10123_v14 = vmov 0 }
 0x229   :  { %3840 = vmatpush.bf16.msk.msrb.mxu3 %vm5513_vm13, %v10047_v11  ;;  %3856 = vmatpush.bf16.msk.msrb.mxu0 %vm5529_vm10, %v10047_v11  ;;  %vm5612_vm1 = vmpackc.low %vm738_vm8, %vm737_vm0  ;;  %vm900_vm13 = vcmp.eq.s32.totalorder %v4832_v16, %v5585_v57  ;;  %vm901_vm10 = vcmp.eq.s32.totalorder %v4835_v17, %v5585_v57  ;;  %vm701_vm8 = vcmp.eq.s32.totalorder %v4910_v37, %v5408_v6  ;;  %v10137_v3 = vmov 0 }
 0x22a   :  { %v10061_v47 = vsel %vm5612_vm1, 4294967295, %v10060_v47  ;;  %vm5620_vm9 = vmpackc.low %vm704_vm12, %vm703_vm11  ;;  %vm702_vm1 = vcmp.eq.s32.totalorder %v4924_v39, %v5408_v6  ;;  %vm717_vm12 = vcmp.eq.s32.totalorder %v5117_v51, %v5408_v6  ;;  %v10150_v15 = vmov 0 }
 0x22b   :  { %vm5628_vm0 = vmpackc.low %vm720_vm7, %vm719_vm5  ;;  %vm718_vm5 = vcmp.eq.s32.totalorder %v5120_v52, %v5408_v6 }
 0x22c   :  { %3826 = vmatpush.bf16.msk.msrb.mxu2 %vm5549_vm15, %v10047_v11  ;;  %vm5639_vm11 = vmpackc.low %vm736_vm4, %vm735_vm3  ;;  %vm733_vm15 = vcmp.eq.s32.totalorder %v5293_v43, %v5408_v6  ;;  %vm734_vm3 = vcmp.eq.s32.totalorder %v5296_v48, %v5408_v6 }
 0x22d   :  { %3842 = vmatpush.bf16.msk.msrb.mxu3 %vm5566_vm14, %v10047_v11  ;;  %3858 = vmatpush.bf16.msk.msrb.mxu0 %vm5574_vm6, %v10047_v11  ;;  %vm5653_vm7 = vmpackc.low %vm901_vm10, %vm900_vm13  ;;  %vm898_vm14 = vcmp.eq.s32.totalorder %v4838_v18, %v5585_v57  ;;  %vm899_vm6 = vcmp.eq.s32.totalorder %v4841_v19, %v5585_v57  ;;  %vm699_vm10 = vcmp.eq.s32.totalorder %v4933_v42, %v5408_v6 }
 0x22e   :  { %v10069_v63 = vsel %vm5653_vm7, 4294967295, %v10068_v63  ;;  %vm5661_vm4 = vmpackc.low %vm702_vm1, %vm701_vm8  ;;  %vm700_vm7 = vcmp.eq.s32.totalorder %v10074_v1, %v5408_v6  ;;  %vm10075_vm1 = vnez %v10057_v58  ;;  %v6108_v58 = vld [vmem:[%s9870_s3 + $0x5] ss:$0 sm:$0xff] }
 0x22f   :  { %v10071_v46 = vsel %vm5661_vm4, 4294967295, %v10070_v46  ;;  %vm5669_vm13 = vmpackc.low %vm718_vm5, %vm717_vm12  ;;  %vm715_vm12 = vcmp.eq.s32.totalorder %v10078_v62, %v5408_v6  ;;  %vm716_vm5 = vcmp.eq.s32.totalorder %v10079_v44, %v5408_v6 }
 0x230   :  { %v10073_v7 = vsel %vm5669_vm13, 4294967295, %v10072_v7  ;;  %3828 = vmatpush.bf16.msk.msrb.mxu2 %vm10075_vm1, %v10047_v11  ;;  %vm5680_vm8 = vmpackc.low %vm734_vm3, %vm733_vm15  ;;  %vm10080_vm13 = vnez %v10061_v47  ;;  %vm731_vm15 = vcmp.eq.s32.totalorder %v10083_v12, %v5408_v6  ;;  %vm732_vm3 = vcmp.eq.s32.totalorder %v10084_v0, %v5408_v6  ;;  %v10095_v47 = vld [vmem:[#allocation27_spill] sm:$0xff]  ;;  %v10098_v0 = vld [vmem:[#allocation34_spill] sm:$0xff] }
 0x231   :  { %3844 = vmatpush.bf16.msk.msrb.mxu3 %vm5598_vm2, %v10047_v11  ;;  %3860 = vmatpush.bf16.msk.msrb.mxu0 %vm10080_vm13, %v10047_v11  ;;  %vm5694_vm4 = vmpackc.low %vm899_vm6, %vm898_vm14  ;;  %vm896_vm2 = vcmp.eq.s32.totalorder %v4844_v20, %v5585_v57  ;;  %vm897_vm14 = vcmp.eq.s32.totalorder %v4847_v21, %v5585_v57  ;;  %vm10087_vm6 = vcmask 64512  }
 0x232   :  { %656 = vmatmul.bf16.vlgmr.msra.gmra.mxu0 %v5490_v45  ;;  %vm5703_vm1 = vmpackc.low %vm700_vm7, %vm699_vm10  ;;  %vm697_vm7 = vcmp.eq.s32.totalorder %v10090_v23, %v5408_v6  ;;  %vm698_vm10 = vcmp.eq.s32.totalorder %v10091_v2, %v5408_v6 }
 0x233   :  { %v10086_v5 = vsel %vm5703_vm1, 4294967295, %v10085_v5  ;;  %670 = vmatmul.bf16.vlgmr.msra.gmra.mxu1 %v5492_v13  ;;  %3819 = vmatmul.msk.bf16.vlgmr.msra.gmra.mxu2 %vm10087_vm6, %v5504_v55  ;;  %vm5714_vm13 = vmpackc.low %vm716_vm5, %vm715_vm12  ;;  %vm713_vm12 = vcmp.eq.s32.totalorder %v10094_v60, %v5408_v6  ;;  %vm714_vm5 = vcmp.eq.s32.totalorder %v10095_v47, %v5408_v6  ;;  %v10099_v60 = vld [vmem:[#allocation35_spill] sm:$0xff]  ;;  %v5751_v47 = vld [vmem:[%s9870_s3 + $0x4] ss:$0 sm:$0xff] }
 0x234   :  { %642 = vmatmul.bf16.vlgmr.msra.gmra.mxu3 %v5477_v49  ;;  %3830 = vmatpush.bf16.msk.msrb.mxu2 %vm5620_vm9, %v10047_v11  ;;  %vm5726_vm1 = vmpackc.low %vm732_vm3, %vm731_vm15  ;;  %vm729_vm9 = vcmp.eq.s32.totalorder %v10098_v0, %v5408_v6  ;;  %vm730_vm15 = vcmp.eq.s32.totalorder %v10099_v60, %v5408_v6  ;;  %vm894_vm3 = vcmp.eq.s32.totalorder %v4850_v22, %v5585_v57  ;;  %v10103_v6 = vmov 0 }
 0x235   :  { %3846 = vmatpush.bf16.msk.msrb.mxu3 %vm5628_vm0, %v10047_v11  ;;  %3862 = vmatpush.bf16.msk.msrb.mxu0 %vm5639_vm11, %v10047_v11  ;;  %vm5740_vm6 = vmpackc.low %vm897_vm14, %vm896_vm2  ;;  %vm10100_vm0 = vnez %v10069_v63  ;;  %vm895_vm2 = vcmp.eq.s32.totalorder %v4861_v25, %v5585_v57  ;;  %v10169_v63 = vld [vmem:[#allocation33_spill] sm:$0xff] }
 0x236   :  { %v10097_v61 = vsel %vm5740_vm6, 4294967295, %v10096_v61  ;;  %3872 = vmatpush.bf16.msk.msra.mxu1 %vm10100_vm0, %v10047_v11  ;;  %vm5756_vm11 = vmpackc.low %vm698_vm10, %vm697_vm7  ;;  %vm916_vm6 = vcmp.eq.s32.totalorder %v4870_v27, %v5585_v57  ;;  %vm917_vm0 = vcmp.eq.s32.totalorder %v4873_v28, %v5585_v57  ;;  %vm10105_vm7 = vnez %v10071_v46 }
 0x237   :  { %v10102_v26 = vsel %vm5756_vm11, 4294967295, %v10101_v26  ;;  %vm5764_vm14 = vmpackc.low %vm714_vm5, %vm713_vm12  ;;  %vm932_vm12 = vcmp.eq.s32.totalorder %v4993_v56, %v5585_v57  ;;  %vm933_vm5 = vcmp.eq.s32.totalorder %v4996_v59, %v5585_v57  ;;  %v10170_v46 = vmov 0 }
 0x238   :  { %v10104_v6 = vsel %vm5764_vm14, 4294967295, %v10103_v6  ;;  %3832 = vmatpush.bf16.msk.msrb.mxu2 %vm10105_vm7, %v10047_v11  ;;  %vm5775_vm10 = vmpackc.low %vm730_vm15, %vm729_vm9  ;;  %vm10108_vm14 = vnez %v10073_v7  ;;  %vm1089_vm9 = vcmp.eq.s32.totalorder %v4832_v16, %v5751_v47  ;;  %vm1090_vm15 = vcmp.eq.s32.totalorder %v4835_v17, %v5751_v47 }
 0x239   :  { %3848 = vmatpush.bf16.msk.msrb.mxu3 %vm10108_vm14, %v10047_v11  ;;  %3864 = vmatpush.bf16.msk.msrb.mxu0 %vm5680_vm8, %v10047_v11  ;;  %vm5789_vm11 = vmpackc.low %vm895_vm2, %vm894_vm3  ;;  %vm892_vm8 = vcmp.eq.s32.totalorder %v4894_v34, %v5585_v57  ;;  %vm893_vm3 = vcmp.eq.s32.totalorder %v4901_v35, %v5585_v57  ;;  %v10113_v7 = vmov 0  ;;  %vm914_vm14 = vcmp.eq.s32.totalorder %v4882_v31, %v5585_v57 }
 0x23a   :  { %3874 = vmatpush.bf16.msk.msra.mxu1 %vm5694_vm4, %v10047_v11  ;;  %vm5800_vm7 = vmpackc.low %vm917_vm0, %vm916_vm6  ;;  %vm915_vm4 = vcmp.eq.s32.totalorder %v4885_v32, %v5585_v57  ;;  %vm10115_vm6 = vnez %v10086_v5  ;;  %v10121_v5 = vmov 0 }
 0x23b   :  { %vm5808_vm2 = vmpackc.low %vm933_vm5, %vm932_vm12  ;;  %vm930_vm12 = vcmp.eq.s32.totalorder %v5099_v30, %v5585_v57  ;;  %vm931_vm5 = vcmp.eq.s32.totalorder %v5102_v38, %v5585_v57 }
 0x23c   :  { %v10114_v7 = vsel %vm5808_vm2, 4294967295, %v10113_v7  ;;  %3834 = vmatpush.bf16.msk.msrb.mxu2 %vm10115_vm6, %v10047_v11  ;;  %vm5819_vm0 = vmpackc.low %vm1090_vm15, %vm1089_vm9  ;;  %vm1087_vm9 = vcmp.eq.s32.totalorder %v4838_v18, %v5751_v47  ;;  %vm1088_vm15 = vcmp.eq.s32.totalorder %v4841_v19, %v5751_v47  ;;  %vm10120_vm6 = vnez %v10097_v61 }
 0x23d   :  { %v10117_v9 = vsel %vm5819_vm0, 4294967295, %v10116_v9  ;;  %3850 = vmatpush.bf16.msk.msrb.mxu3 %vm5714_vm13, %v10047_v11  ;;  %3866 = vmatpush.bf16.msk.msrb.mxu0 %vm5726_vm1, %v10047_v11  ;;  %vm5833_vm2 = vmpackc.low %vm893_vm3, %vm892_vm8  ;;  %vm890_vm1 = vcmp.eq.s32.totalorder %v4910_v37, %v5585_v57  ;;  %vm891_vm13 = vcmp.eq.s32.totalorder %v4924_v39, %v5585_v57  ;;  %vm912_vm3 = vcmp.eq.s32.totalorder %v4927_v40, %v5585_v57 }
 0x23e   :  { %3876 = vmatpush.bf16.msk.msra.mxu1 %vm10120_vm6, %v10047_v11  ;;  %vm5844_vm0 = vmpackc.low %vm915_vm4, %vm914_vm14  ;;  %vm913_vm6 = vcmp.eq.s32.totalorder %v4930_v41, %v5585_v57  ;;  %vm10125_vm14 = vnez %v10102_v26  ;;  %v10182_v61 = vmov 0 }
 0x23f   :  { %v10122_v5 = vsel %vm5844_vm0, 4294967295, %v10121_v5  ;;  %vm5852_vm8 = vmpackc.low %vm931_vm5, %vm930_vm12  ;;  %vm928_vm12 = vcmp.eq.s32.totalorder %v5164_v4, %v5585_v57  ;;  %vm929_vm5 = vcmp.eq.s32.totalorder %v5167_v54, %v5585_v57 }
 0x240   :  { %v10124_v14 = vsel %vm5852_vm8, 4294967295, %v10123_v14  ;;  %3836 = vmatpush.bf16.msk.msrb.mxu2 %vm10125_vm14, %v10047_v11  ;;  %vm5863_vm4 = vmpackc.low %vm1088_vm15, %vm1087_vm9  ;;  %vm10128_vm8 = vnez %v10104_v6  ;;  %vm1085_vm9 = vcmp.eq.s32.totalorder %v4844_v20, %v5751_v47  ;;  %vm1086_vm15 = vcmp.eq.s32.totalorder %v4847_v21, %v5751_v47 }
 0x241   :  { %3852 = vmatpush.bf16.msk.msrb.mxu3 %vm10128_vm8, %v10047_v11  ;;  %3868 = vmatpush.bf16.msk.msrb.mxu0 %vm5775_vm10, %v10047_v11  ;;  %vm5877_vm0 = vmpackc.low %vm891_vm13, %vm890_vm1  ;;  %vm888_vm10 = vcmp.eq.s32.totalorder %v4933_v42, %v5585_v57  ;;  %vm889_vm1 = vcmp.eq.s32.totalorder %v10074_v1, %v5585_v57  ;;  %vm10133_vm13 = vnez %v10114_v7  ;;  %v10135_v6 = vmov 0 }
 0x242   :  { %3878 = vmatpush.bf16.msk.msra.mxu1 %vm5789_vm11, %v10047_v11  ;;  %vm5891_vm8 = vmpackc.low %vm913_vm6, %vm912_vm3  ;;  %vm10134_vm11 = vnez %v10117_v9  ;;  %vm911_vm3 = vcmp.eq.s32.totalorder %v4973_v53, %v5585_v57  ;;  %v10146_v7 = vmov 0  ;;  %v10262_v9 = vmov 0 }
 0x243   :  { %vm5905_vm14 = vmpackc.low %vm929_vm5, %vm928_vm12  ;;  %831 = vmatmul.bf16.vlgmr.msrb.gmra.mxu2 %v5477_v49  ;;  %vm926_vm12 = vcmp.eq.s32.totalorder %v5211_v24, %v5585_v57  ;;  %vm927_vm5 = vcmp.eq.s32.totalorder %v5214_v33, %v5585_v57 }
 0x244   :  { %3888 = vmatpush.bf16.msk.msra.mxu2 %vm5800_vm7, %v10047_v11  ;;  %v10136_v6 = vsel %vm5905_vm14, 4294967295, %v10135_v6  ;;  %vm910_vm7 = vcmp.eq.s32.totalorder %v4945_v50, %v5585_v57  ;;  %845 = vmatmul.bf16.vlgmr.msrb.gmra.mxu3 %v5490_v45  ;;  %vm5915_vm6 = vmpackc.low %vm1086_vm15, %vm1085_vm9  ;;  %vm1083_vm9 = vcmp.eq.s32.totalorder %v4850_v22, %v5751_v47  ;;  %vm1084_vm15 = vcmp.eq.s32.totalorder %v4861_v25, %v5751_v47 }
 0x245   :  { %3904 = vmatpush.bf16.msk.msra.mxu3 %vm10133_vm13, %v10047_v11  ;;  %3922 = vmatpush.bf16.msk.msra.mxu0 %vm10134_vm11, %v10047_v11  ;;  %v10138_v3 = vsel %vm5915_vm6, 4294967295, %v10137_v3  ;;  %vm10139_vm13 = vcmask 64512   ;;  %vm5926_vm11 = vmpackc.low %vm889_vm1, %vm888_vm10  ;;  %vm10142_vm6 = vnez %v10122_v5  ;;  %vm886_vm10 = vcmp.eq.s32.totalorder %v10090_v23, %v5585_v57  ;;  %v10179_v5 = vld [vmem:[#allocation27_spill] sm:$0xff] }
 0x246   :  { %859 = vmatmul.bf16.vlgmr.msrb.gmra.mxu0 %v5492_v13  ;;  %3869 = vmatmul.msk.bf16.vlgmr.msrb.gmra.mxu1 %vm10139_vm13, %v5504_v55  ;;  %vm5940_vm14 = vmpackc.low %vm911_vm3, %vm910_vm7  ;;  %vm887_vm1 = vcmp.eq.s32.totalorder %v10091_v2, %v5585_v57  ;;  %vm10145_vm13 = vnez %v10124_v14  ;;  %vm908_vm7 = vcmp.eq.s32.totalorder %v5057_v8, %v5585_v57  ;;  %vm909_vm3 = vcmp.eq.s32.totalorder %v5060_v10, %v5585_v57 }
 0x247   :  { %3880 = vmatpush.bf16.msk.msra.mxu1 %vm5833_vm2, %v10047_v11  ;;  %vm5954_vm2 = vmpackc.low %vm927_vm5, %vm926_vm12  ;;  %vm1081_vm5 = vcmp.eq.s32.totalorder %v4894_v34, %v5751_v47  ;;  %v10156_v14 = vmov 0 }
 0x248   :  { %3890 = vmatpush.bf16.msk.msra.mxu2 %vm10142_vm6, %v10047_v11  ;;  %v10147_v7 = vsel %vm5954_vm2, 4294967295, %v10146_v7  ;;  %vm5962_vm6 = vmpackc.low %vm1084_vm15, %vm1083_vm9  ;;  %vm1082_vm2 = vcmp.eq.s32.totalorder %v4901_v35, %v5751_v47  ;;  %vm1105_vm15 = vcmp.eq.s32.totalorder %v4870_v27, %v5751_v47 }
 0x249   :  { %3906 = vmatpush.bf16.msk.msra.mxu3 %vm10145_vm13, %v10047_v11  ;;  %3924 = vmatpush.bf16.msk.msra.mxu0 %vm5863_vm4, %v10047_v11  ;;  %vm924_vm13 = vcmp.eq.s32.totalorder %v5264_v29, %v5585_v57  ;;  %vm925_vm4 = vcmp.eq.s32.totalorder %v5267_v36, %v5585_v57  ;;  %vm5970_vm12 = vmpackc.low %vm887_vm1, %vm886_vm10  ;;  %vm1106_vm10 = vcmp.eq.s32.totalorder %v4873_v28, %v5751_v47 }
 0x24a   :  { %v10151_v15 = vsel %vm5970_vm12, 4294967295, %v10150_v15  ;;  %vm5984_vm9 = vmpackc.low %vm909_vm3, %vm908_vm7  ;;  %vm10154_vm1 = vnez %v10136_v6  ;;  %vm907_vm7 = vcmp.eq.s32.totalorder %v5120_v52, %v5585_v57  ;;  %v10165_v6 = vmov 0 }
 0x24b   :  { %3882 = vmatpush.bf16.msk.msra.mxu1 %vm5877_vm0, %v10047_v11  ;;  %vm10155_vm0 = vnez %v10138_v3  ;;  %vm5998_vm12 = vmpackc.low %vm925_vm4, %vm924_vm13  ;;  %vm1079_vm4 = vcmp.eq.s32.totalorder %v4910_v37, %v5751_v47  ;;  %v10195_v3 = vmov 0.0  }
 0x24c   :  { %3892 = vmatpush.bf16.msk.msra.mxu2 %vm5891_vm8, %v10047_v11  ;;  %v10157_v14 = vsel %vm5998_vm12, 4294967295, %v10156_v14  ;;  %vm906_vm8 = vcmp.eq.s32.totalorder %v5117_v51, %v5585_v57  ;;  %vm6006_vm3 = vmpackc.low %vm1082_vm2, %vm1081_vm5  ;;  %vm1080_vm12 = vcmp.eq.s32.totalorder %v4924_v39, %v5751_v47  ;;  %vm1103_vm5 = vcmp.eq.s32.totalorder %v4882_v31, %v5751_v47 }
 0x24d   :  { %3908 = vmatpush.bf16.msk.msra.mxu3 %vm10154_vm1, %v10047_v11  ;;  %3926 = vmatpush.bf16.msk.msra.mxu0 %vm10155_vm0, %v10047_v11  ;;  %vm922_vm1 = vcmp.eq.s32.totalorder %v5293_v43, %v5585_v57  ;;  %vm923_vm0 = vcmp.eq.s32.totalorder %v5296_v48, %v5585_v57  ;;  %vm6014_vm13 = vmpackc.low %vm1106_vm10, %vm1105_vm15  ;;  %vm1104_vm15 = vcmp.eq.s32.totalorder %v4885_v32, %v5751_v47 }
 0x24e   :  { %vm6028_vm2 = vmpackc.low %vm907_vm7, %vm906_vm8  ;;  %vm10164_vm10 = vnez %v10147_v7  ;;  %vm905_vm8 = vcmp.eq.s32.totalorder %v10079_v44, %v5585_v57  ;;  %v10221_v7 = vmov 0 }
 0x24f   :  { %3884 = vmatpush.bf16.msk.msra.mxu1 %vm5926_vm11, %v10047_v11  ;;  %vm6042_vm11 = vmpackc.low %vm923_vm0, %vm922_vm1  ;;  %vm1077_vm0 = vcmp.eq.s32.totalorder %v4933_v42, %v5751_v47  ;;  %v10186_v42 = vld [vmem:[#allocation21_spill] sm:$0xff] }
 0x250   :  { %3894 = vmatpush.bf16.msk.msra.mxu2 %vm5940_vm14, %v10047_v11  ;;  %v10166_v6 = vsel %vm6042_vm11, 4294967295, %v10165_v6  ;;  %vm904_vm14 = vcmp.eq.s32.totalorder %v10078_v62, %v5585_v57  ;;  %vm6050_vm7 = vmpackc.low %vm1080_vm12, %vm1079_vm4  ;;  %vm1078_vm11 = vcmp.eq.s32.totalorder %v10074_v1, %v5751_v47  ;;  %vm10172_vm12 = vnez %v10151_v15  ;;  %v10178_v15 = vld [vmem:[#allocation26_spill] sm:$0xff] }
 0x251   :  { %3910 = vmatpush.bf16.msk.msra.mxu3 %vm10164_vm10, %v10047_v11  ;;  %3928 = vmatpush.bf16.msk.msra.mxu0 %vm5962_vm6, %v10047_v11  ;;  %vm920_vm10 = vcmp.eq.s32.totalorder %v10083_v12, %v5585_v57  ;;  %vm921_vm6 = vcmp.eq.s32.totalorder %v10169_v63, %v5585_v57  ;;  %vm6058_vm1 = vmpackc.low %vm1104_vm15, %vm1103_vm5  ;;  %vm1101_vm5 = vcmp.eq.s32.totalorder %v4927_v40, %v5751_v47  ;;  %v10184_v1 = vmov 0 }
 0x252   :  { %v10171_v46 = vsel %vm6058_vm1, 4294967295, %v10170_v46  ;;  %vm6072_vm4 = vmpackc.low %vm905_vm8, %vm904_vm14  ;;  %vm1102_vm15 = vcmp.eq.s32.totalorder %v4930_v41, %v5751_v47  ;;  %vm10175_vm1 = vnez %v10157_v14  ;;  %vm903_vm14 = vcmp.eq.s32.totalorder %v10179_v5, %v5585_v57 }
 0x253   :  { %3886 = vmatpush.bf16.msk.msra.mxu1 %vm10172_vm12, %v10047_v11  ;;  %vm6086_vm12 = vmpackc.low %vm921_vm6, %vm920_vm10  ;;  %v10180_v14 = vmov 0  ;;  %vm919_vm10 = vcmp.eq.s32.totalorder %v10099_v60, %v5585_v57 }
 0x254   :  { %3896 = vmatpush.bf16.msk.msra.mxu2 %vm5984_vm9, %v10047_v11  ;;  %vm902_vm9 = vcmp.eq.s32.totalorder %v10178_v15, %v5585_v57  ;;  %vm6097_vm8 = vmpackc.low %vm1078_vm11, %vm1077_vm0  ;;  %vm1076_vm11 = vcmp.eq.s32.totalorder %v10091_v2, %v5751_v47  ;;  %vm1099_vm0 = vcmp.eq.s32.totalorder %v4945_v50, %v5751_v47 }
 0x255   :  { %3912 = vmatpush.bf16.msk.msra.mxu3 %vm10175_vm1, %v10047_v11  ;;  %3930 = vmatpush.bf16.msk.msra.mxu0 %vm6006_vm3, %v10047_v11  ;;  %v10181_v14 = vsel %vm6097_vm8, 4294967295, %v10180_v14  ;;  %vm918_vm3 = vcmp.eq.s32.totalorder %v10098_v0, %v5585_v57  ;;  %vm6111_vm6 = vmpackc.low %vm1102_vm15, %vm1101_vm5  ;;  %vm1100_vm5 = vcmp.eq.s32.totalorder %v4973_v53, %v5751_v47  ;;  %vm934_vm15 = vcmp.eq.s32.totalorder %v10186_v42, %v5585_v57 }
 0x256   :  { %1020 = vmatmul.bf16.vlgmr.msra.gmra.mxu1 %v5477_v49  ;;  %v10183_v61 = vsel %vm6111_vm6, 4294967295, %v10182_v61  ;;  %vm6122_vm1 = vmpackc.low %vm903_vm14, %vm902_vm9  ;;  %vm10187_vm6 = vnez %v10166_v6  ;;  %vm1121_vm9 = vcmp.eq.s32.totalorder %v4993_v56, %v5751_v47  ;;  %vm1122_vm14 = vcmp.eq.s32.totalorder %v4996_v59, %v5751_v47 }
 0x257   :  { %3938 = vmatpush.bf16.msk.msrb.mxu1 %vm6014_vm13, %v10047_v11  ;;  %vm1075_vm13 = vcmp.eq.s32.totalorder %v10090_v23, %v5751_v47  ;;  %v10185_v1 = vsel %vm6122_vm1, 4294967295, %v10184_v1  ;;  %vm10190_vm1 = vnez %v10171_v46  ;;  %v10193_v6 = vmov 0 }
 0x258   :  { %3898 = vmatpush.bf16.msk.msra.mxu2 %vm6028_vm2, %v10047_v11  ;;  %vm6138_vm2 = vmpackc.low %vm919_vm10, %vm918_vm3  ;;  %vm1295_vm3 = vcmp.eq.s32.totalorder %v4873_v28, %v6108_v58  ;;  %vm1123_vm10 = vcmp.eq.s32.totalorder %v10186_v42, %v5751_v47  ;;  %v983_v46 = vsel %vm934_vm15, 1.0, %v10195_v3  ;;  %vm10198_vm15 = vnez %v10181_v14 }
 0x259   :  { %3914 = vmatpush.bf16.msk.msra.mxu3 %vm10187_vm6, %v10047_v11  ;;  %3932 = vmatpush.bf16.msk.msra.mxu0 %vm6050_vm7, %v10047_v11  ;;  %vm6149_vm8 = vmpackc.low %vm1076_vm11, %vm1075_vm13  ;;  %vm1294_vm7 = vcmp.eq.s32.totalorder %v4870_v27, %v6108_v58  ;;  %vm1098_vm13 = vcmp.eq.s32.totalorder %v5060_v10, %v5751_v47  ;;  %v1172_v27 = vsel %vm1123_vm10, 1.0, %v10195_v3  ;;  %v1008_v14 = vpack.c.bf16 %v983_v46, %v983_v46 }
 0x25a   :  { %vm6159_vm6 = vmpackc.low %vm1100_vm5, %vm1099_vm0  ;;  %vm1119_vm0 = vcmp.eq.s32.totalorder %v5099_v30, %v5751_v47  ;;  %vm1120_vm5 = vcmp.eq.s32.totalorder %v5102_v38, %v5751_v47  ;;  %vm1117_vm10 = vcmp.eq.s32.totalorder %v5164_v4, %v5751_v47  ;;  %v1197_v46 = vpack.c.bf16 %v1172_v27, %v1172_v27 }
 0x25b   :  { %3940 = vmatpush.bf16.msk.msrb.mxu1 %vm10190_vm1, %v10047_v11  ;;  %v10194_v6 = vsel %vm6159_vm6, 4294967295, %v10193_v6  ;;  %vm1097_vm1 = vcmp.eq.s32.totalorder %v5057_v8, %v5751_v47  ;;  %vm6171_vm11 = vmpackc.low %vm1122_vm14, %vm1121_vm9  ;;  %vm1293_vm9 = vcmp.eq.s32.totalorder %v4885_v32, %v6108_v58  ;;  %vm10201_vm14 = vnez %v10183_v61 }
 0x25c   :  { %3900 = vmatpush.bf16.msk.msra.mxu2 %vm6072_vm4, %v10047_v11  ;;  %vm6185_vm6 = vmpackc.low %vm1295_vm3, %vm1294_vm7  ;;  %vm1292_vm4 = vcmp.eq.s32.totalorder %v4882_v31, %v6108_v58  ;;  %vm1095_vm7 = vcmp.eq.s32.totalorder %v5117_v51, %v5751_v47  ;;  %vm1096_vm3 = vcmp.eq.s32.totalorder %v5120_v52, %v5751_v47  ;;  %v10216_v28 = vmov 0 }
 0x25d   :  { %3916 = vmatpush.bf16.msk.msra.mxu3 %vm6086_vm12, %v10047_v11  ;;  %3934 = vmatpush.bf16.msk.msra.mxu0 %vm10198_vm15, %v10047_v11  ;;  %vm6197_vm12 = vmpackc.low %vm1098_vm13, %vm1097_vm1  ;;  %vm1118_vm1 = vcmp.eq.s32.totalorder %v5167_v54, %v5751_v47  ;;  %vm10206_vm13 = vnez %v10185_v1  ;;  %v10218_v57 = vmov 0  ;;  %v10239_v1 = vmov 0 }
 0x25e   :  { %vm6205_vm15 = vmpackc.low %vm1120_vm5, %vm1119_vm0  ;;  %vm1290_vm0 = vcmp.eq.s32.totalorder %v4927_v40, %v6108_v58  ;;  %vm10211_vm5 = vnez %v10194_v6  ;;  %v10241_v27 = vmov 0  ;;  %v10259_v31 = vmov 0 }
 0x25f   :  { %3942 = vmatpush.bf16.msk.msrb.mxu1 %vm10201_vm14, %v10047_v11  ;;  %vm6216_vm14 = vmpackc.low %vm1293_vm9, %vm1292_vm4  ;;  %vm1093_vm4 = vcmp.eq.s32.totalorder %v10078_v62, %v5751_v47  ;;  %vm1094_vm9 = vcmp.eq.s32.totalorder %v10079_v44, %v5751_v47  ;;  %v10265_v61 = vmov 0 }
 0x260   :  { %3902 = vmatpush.bf16.msk.msra.mxu2 %vm10206_vm13, %v10047_v11  ;;  %vm6230_vm13 = vmpackc.low %vm1096_vm3, %vm1095_vm7  ;;  %vm1116_vm7 = vcmp.eq.s32.totalorder %v5214_v33, %v5751_v47  ;;  %vm10214_vm3 = vcmask 1043456  }
 0x261   :  { %3918 = vmatpush.bf16.msk.msra.mxu3 %vm6138_vm2, %v10047_v11  ;;  %3936 = vmatpush.bf16.msk.msra.mxu0 %vm6149_vm8, %v10047_v11  ;;  %vm6244_vm2 = vmpackc.low %vm1118_vm1, %vm1117_vm10  ;;  %vm1115_vm8 = vcmp.eq.s32.totalorder %v5211_v24, %v5751_v47  ;;  %v1010_v26 = vsel %vm10214_vm3, %v1008_v14, 0  ;;  %vm1092_vm3 = vcmp.eq.s32.totalorder %v10179_v5, %v5751_v47  ;;  %vm1287_vm1 = vcmp.eq.s32.totalorder %v5060_v10, %v6108_v58 }
 0x262   :  { %v10225_v14 = vmov 0 }
 0x263   :  { %3944 = vmatpush.bf16.msk.msrb.mxu1 %vm10211_vm5, %v10047_v11  ;;  %1034 = vmatmul.bf16.vlgmr.msra.gmra.mxu2 %v5490_v45  ;;  %vm10220_vm5 = vcmask 1043456  }
 0x264   :  { %3954 = vmatpush.bf16.msk.msrb.mxu2 %vm6171_vm11, %v10047_v11  ;;  %vm10215_vm11 = vcmp.eq.s32.totalorder %v4930_v41, %v6108_v58  ;;  %1048 = vmatmul.bf16.vlgmr.msra.gmra.mxu3 %v5492_v13  ;;  %v1199_v6 = vsel %vm10220_vm5, %v1197_v46, 0  ;;  %v10234_v46 = vmov 0 }
 0x265   :  { %3988 = vmatpush.bf16.msk.msrb.mxu0 %vm6185_vm6, %v10047_v11  ;;  %vm6263_vm10 = vmpackc.low %vm10215_vm11, %vm1290_vm0  ;;  %vm1113_vm11 = vcmp.eq.s32.totalorder %v5264_v29, %v5751_v47  ;;  %vm1114_vm6 = vcmp.eq.s32.totalorder %v5267_v36, %v5751_v47  ;;  %1061 = vmatpush.bf16.msrb.mxu3 %v1010_v26  ;;  %v10236_v26 = vmov 0 }
 0x266   :  { %v10217_v28 = vsel %vm6263_vm10, 4294967295, %v10216_v28  ;;  %1209 = vmatmul.bf16.vlgmr.msra.gmra.mxu0 %v5477_v49  ;;  %vm6281_vm0 = vmpackc.low %vm1094_vm9, %vm1093_vm4  ;;  %vm1286_vm9 = vcmp.eq.s32.totalorder %v5057_v8, %v6108_v58 }
 0x267   :  { %v10219_v57 = vsel %vm6281_vm0, 4294967295, %v10218_v57  ;;  %vm6298_vm4 = vmpackc.low %vm1116_vm7, %vm1115_vm8  ;;  %3946 = vmatpush.bf16.msk.msrb.mxu1 %vm6197_vm12, %v10047_v11  ;;  %vm10223_vm8 = vcmp.eq.s32.totalorder %v4945_v50, %v6108_v58  ;;  %vm10224_vm7 = vcmp.eq.s32.totalorder %v4973_v53, %v6108_v58  ;;  %vm1311_vm12 = vcmp.eq.s32.totalorder %v4996_v59, %v6108_v58 }
 0x268   :  { %v10222_v7 = vsel %vm6298_vm4, 4294967295, %v10221_v7  ;;  %3956 = vmatpush.bf16.msk.msrb.mxu2 %vm6205_vm15, %v10047_v11  ;;  %vm6318_vm5 = vmpackc.low %vm10224_vm7, %vm10223_vm8  ;;  %vm1310_vm4 = vcmp.eq.s32.totalorder %v4993_v56, %v6108_v58  ;;  %vm10227_vm15 = vcmp.eq.s32.totalorder %v10178_v15, %v5751_v47  ;;  %vm1278_vm7 = vcmp.eq.s32.totalorder %v4832_v16, %v6108_v58 }
 0x269   :  { %v10226_v14 = vsel %vm6318_vm5, 4294967295, %v10225_v14  ;;  %3990 = vmatpush.bf16.msk.msrb.mxu0 %vm6216_vm14, %v10047_v11  ;;  %vm6332_vm0 = vmpackc.low %vm1092_vm3, %vm10227_vm15  ;;  %1250 = vmatpush.bf16.msra.mxu3 %v1199_v6  ;;  %vm1279_vm5 = vcmp.eq.s32.totalorder %v4835_v17, %v6108_v58  ;;  %vm1111_vm14 = vcmp.eq.s32.totalorder %v5293_v43, %v5751_v47  ;;  %vm1285_vm15 = vcmp.eq.s32.totalorder %v5120_v52, %v6108_v58 }
 0x26a   :  { %vm6336_vm8 = vmpackc.low %vm1114_vm6, %vm1113_vm11  ;;  %vm1112_vm6 = vcmp.eq.s32.totalorder %v5296_v48, %v5751_v47  ;;  %vm1284_vm11 = vcmp.eq.s32.totalorder %v5117_v51, %v6108_v58  ;;  %v10281_v6 = vmov 0 }
 0x26b   :  { %vm6344_vm10 = vmpackc.low %vm1287_vm1, %vm1286_vm9  ;;  %3948 = vmatpush.bf16.msk.msrb.mxu1 %vm6230_vm13, %v10047_v11  ;;  %vm1309_vm9 = vcmp.eq.s32.totalorder %v5102_v38, %v6108_v58  ;;  %vm1276_vm13 = vcmp.eq.s32.totalorder %v4838_v18, %v6108_v58 }
 0x26c   :  { %vm6352_vm3 = vmpackc.low %vm1311_vm12, %vm1310_vm4  ;;  %3958 = vmatpush.bf16.msk.msrb.mxu2 %vm6244_vm2, %v10047_v11  ;;  %vm1308_vm4 = vcmp.eq.s32.totalorder %v5099_v30, %v6108_v58  ;;  %vm10238_vm12 = vnez %v10217_v28  ;;  %vm1277_vm2 = vcmp.eq.s32.totalorder %v4841_v19, %v6108_v58  ;;  %v10243_v28 = vmov 0 }
 0x26d   :  { %v10235_v46 = vsel %vm6352_vm3, 4294967295, %v10234_v46  ;;  %vm6366_vm1 = vmpackc.low %vm1279_vm5, %vm1278_vm7  ;;  %3992 = vmatpush.bf16.msk.msrb.mxu0 %vm10238_vm12, %v10047_v11  ;;  %vm1109_vm7 = vcmp.eq.s32.totalorder %v10083_v12, %v5751_v47  ;;  %vm1110_vm12 = vcmp.eq.s32.totalorder %v10169_v63, %v5751_v47 }
 0x26e   :  { %v10237_v26 = vsel %vm6366_vm1, 4294967295, %v10236_v26  ;;  %vm6377_vm3 = vmpackc.low %vm1112_vm6, %vm1111_vm14  ;;  %vm1282_vm6 = vcmp.eq.s32.totalorder %v10078_v62, %v6108_v58 }
 0x26f   :  { %v10240_v1 = vsel %vm6377_vm3, 4294967295, %v10239_v1  ;;  %vm6385_vm5 = vmpackc.low %vm1285_vm15, %vm1284_vm11  ;;  %vm1283_vm3 = vcmp.eq.s32.totalorder %v10079_v44, %v6108_v58  ;;  %vm10245_vm11 = vnez %v10219_v57  ;;  %vm10246_vm15 = vnez %v10222_v7  ;;  %v6429_v7 = vld [vmem:[%s9870_s3 + $0x6] ss:$0 sm:$0xff] }
 0x270   :  { %v10242_v27 = vsel %vm6385_vm5, 4294967295, %v10241_v27  ;;  %vm6393_vm14 = vmpackc.low %vm1309_vm9, %vm1308_vm4  ;;  %3950 = vmatpush.bf16.msk.msrb.mxu1 %vm10245_vm11, %v10047_v11  ;;  %3960 = vmatpush.bf16.msk.msrb.mxu2 %vm10246_vm15, %v10047_v11  ;;  %vm1306_vm4 = vcmp.eq.s32.totalorder %v5164_v4, %v6108_v58  ;;  %vm1307_vm9 = vcmp.eq.s32.totalorder %v5167_v54, %v6108_v58  ;;  %v10250_v57 = vmov 0 }
 0x271   :  { %v10244_v28 = vsel %vm6393_vm14, 4294967295, %v10243_v28  ;;  %vm6407_vm5 = vmpackc.low %vm1277_vm2, %vm1276_vm13  ;;  %vm10249_vm14 = vnez %v10226_v14  ;;  %vm1274_vm13 = vcmp.eq.s32.totalorder %v4844_v20, %v6108_v58  ;;  %vm1275_vm2 = vcmp.eq.s32.totalorder %v4847_v21, %v6108_v58 }
 0x272   :  { %3994 = vmatpush.bf16.msk.msrb.mxu0 %vm10249_vm14, %v10047_v11  ;;  %vm6418_vm1 = vmpackc.low %vm1110_vm12, %vm1109_vm7  ;;  %vm1107_vm7 = vcmp.eq.s32.totalorder %v10098_v0, %v5751_v47  ;;  %vm1108_vm12 = vcmp.eq.s32.totalorder %v10099_v60, %v5751_v47  ;;  %vm1280_vm15 = vcmp.eq.s32.totalorder %v10178_v15, %v6108_v58  ;;  %v10256_v47 = vmov 0 }
 0x273   :  { %v10251_v57 = vsel %vm6418_vm1, 4294967295, %v10250_v57  ;;  %vm6431_vm11 = vmpackc.low %vm1283_vm3, %vm1282_vm6  ;;  %vm1281_vm1 = vcmp.eq.s32.totalorder %v10179_v5, %v6108_v58  ;;  %vm1304_vm6 = vcmp.eq.s32.totalorder %v5211_v24, %v6108_v58  ;;  %v10287_v14 = vmov 0 }
 0x274   :  { %vm6439_vm14 = vmpackc.low %vm1307_vm9, %vm1306_vm4  ;;  %3952 = vmatpush.bf16.msk.msrb.mxu1 %vm6332_vm0, %v10047_v11  ;;  %3962 = vmatpush.bf16.msk.msrb.mxu2 %vm6336_vm8, %v10047_v11  ;;  %vm1305_vm4 = vcmp.eq.s32.totalorder %v5214_v33, %v6108_v58  ;;  %vm10258_vm0 = vnez %v10235_v46  ;;  %vm1499_vm8 = vcmp.eq.s32.totalorder %v4993_v56, %v6429_v7  ;;  %v10378_v46 = vmov 0 }
 0x275   :  { %vm6453_vm3 = vmpackc.low %vm1275_vm2, %vm1274_vm13  ;;  %vm1500_vm13 = vcmp.eq.s32.totalorder %v4996_v59, %v6429_v7  ;;  %vm1312_vm2 = vcmp.eq.s32.totalorder %v10186_v42, %v6108_v58  ;;  %v10274_v59 = vmov 0 }
 0x276   :  { %v10257_v47 = vsel %vm6453_vm3, 4294967295, %v10256_v47  ;;  %3996 = vmatpush.bf16.msk.msrb.mxu0 %vm6344_vm10, %v10047_v11  ;;  %vm6467_vm9 = vmpackc.low %vm1108_vm12, %vm1107_vm7  ;;  %vm10261_vm3 = vcmask 64512   ;;  %vm1272_vm7 = vcmp.eq.s32.totalorder %v4850_v22, %v6108_v58  ;;  %vm1273_vm12 = vcmp.eq.s32.totalorder %v4861_v25, %v6108_v58 }
 0x277   :  { %v10260_v31 = vsel %vm6467_vm9, 4294967295, %v10259_v31  ;;  %3919 = vmatmul.msk.bf16.vlgmr.msrb.gmra.mxu3 %vm10261_vm3, %v5504_v55  ;;  %vm6479_vm10 = vmpackc.low %vm1281_vm1, %vm1280_vm15  ;;  %1223 = vmatmul.bf16.vlgmr.msrb.gmra.mxu1 %v5490_v45  ;;  %vm1302_vm1 = vcmp.eq.s32.totalorder %v5264_v29, %v6108_v58  ;;  %vm1303_vm15 = vcmp.eq.s32.totalorder %v5267_v36, %v6108_v58  ;;  %vm10267_vm3 = vnez %v10240_v1 }
 0x278   :  { %4004 = vmatpush.bf16.msk.msra.mxu1 %vm10258_vm0, %v10047_v11  ;;  %v10263_v9 = vsel %vm6479_vm10, 4294967295, %v10262_v9  ;;  %vm10264_vm0 = vnez %v10237_v26  ;;  %vm6491_vm9 = vmpackc.low %vm1305_vm4, %vm1304_vm6  ;;  %3964 = vmatpush.bf16.msk.msrb.mxu2 %vm10267_vm3, %v10047_v11  ;;  %v1361_v26 = vsel %vm1312_vm2, 1.0, %v10195_v3  ;;  %vm1467_vm6 = vcmp.eq.s32.totalorder %v4832_v16, %v6429_v7 }
 0x279   :  { %3972 = vmatpush.bf16.msk.msrb.mxu3 %vm10264_vm0, %v10047_v11  ;;  %v10266_v61 = vsel %vm6491_vm9, 4294967295, %v10265_v61  ;;  %vm6502_vm10 = vmpackc.low %vm1500_vm13, %vm1499_vm8  ;;  %vm1468_vm4 = vcmp.eq.s32.totalorder %v4835_v17, %v6429_v7  ;;  %vm10270_vm0 = vnez %v10242_v27  ;;  %vm10271_vm9 = vnez %v10244_v28 }
 0x27a   :  { %3998 = vmatpush.bf16.msk.msrb.mxu0 %vm10270_vm0, %v10047_v11  ;;  %vm6517_vm8 = vmpackc.low %vm1273_vm12, %vm1272_vm7  ;;  %vm1497_vm13 = vcmp.eq.s32.totalorder %v5099_v30, %v6429_v7  ;;  %vm1498_vm2 = vcmp.eq.s32.totalorder %v5102_v38, %v6429_v7  ;;  %vm1270_vm0 = vcmp.eq.s32.totalorder %v4894_v34, %v6108_v58  ;;  %v1386_v27 = vpack.c.bf16 %v1361_v26, %v1361_v26 }
 0x27b   :  { %vm6525_vm3 = vmpackc.low %vm1303_vm15, %vm1302_vm1  ;;  %vm1300_vm12 = vcmp.eq.s32.totalorder %v5293_v43, %v6108_v58  ;;  %vm1301_vm1 = vcmp.eq.s32.totalorder %v5296_v48, %v6108_v58  ;;  %vm10278_vm15 = vnez %v10251_v57  ;;  %v10279_v38 = vmov 0 }
 0x27c   :  { %4006 = vmatpush.bf16.msk.msra.mxu1 %vm10271_vm9, %v10047_v11  ;;  %v10275_v59 = vsel %vm6525_vm3, 4294967295, %v10274_v59  ;;  %vm1271_vm9 = vcmp.eq.s32.totalorder %v4901_v35, %v6108_v58  ;;  %vm6536_vm7 = vmpackc.low %vm1468_vm4, %vm1467_vm6  ;;  %3966 = vmatpush.bf16.msk.msrb.mxu2 %vm10278_vm15, %v10047_v11  ;;  %vm1466_vm6 = vcmp.eq.s32.totalorder %v4841_v19, %v6429_v7  ;;  %v10283_v57 = vmov 0 }
 0x27d   :  { %3974 = vmatpush.bf16.msk.msrb.mxu3 %vm6407_vm5, %v10047_v11  ;;  %vm6547_vm3 = vmpackc.low %vm1498_vm2, %vm1497_vm13  ;;  %vm1465_vm5 = vcmp.eq.s32.totalorder %v4838_v18, %v6429_v7  ;;  %vm1495_vm13 = vcmp.eq.s32.totalorder %v5164_v4, %v6429_v7  ;;  %vm1496_vm2 = vcmp.eq.s32.totalorder %v5167_v54, %v6429_v7  ;;  %v10302_v1 = vmov 0 }
 0x27e   :  { %v10280_v38 = vsel %vm6547_vm3, 4294967295, %v10279_v38  ;;  %4000 = vmatpush.bf16.msk.msrb.mxu0 %vm6431_vm11, %v10047_v11  ;;  %vm6561_vm4 = vmpackc.low %vm1271_vm9, %vm1270_vm0  ;;  %vm1268_vm11 = vcmp.eq.s32.totalorder %v4910_v37, %v6108_v58  ;;  %vm10285_vm0 = vnez %v10257_v47  ;;  %vm10286_vm9 = vcmask 1043456  }
 0x27f   :  { %v10282_v6 = vsel %vm6561_vm4, 4294967295, %v10281_v6  ;;  %vm6569_vm15 = vmpackc.low %vm1301_vm1, %vm1300_vm12  ;;  %v1388_v44 = vsel %vm10286_vm9, %v1386_v27, 0  ;;  %vm1298_vm12 = vcmp.eq.s32.totalorder %v10083_v12, %v6108_v58  ;;  %vm1299_vm1 = vcmp.eq.s32.totalorder %v10169_v63, %v6108_v58  ;;  %v6665_v27 = vld [vmem:[%s9870_s3 + $0x7] ss:$0 sm:$0xff] }
 0x280   :  { %4008 = vmatpush.bf16.msk.msra.mxu1 %vm6439_vm14, %v10047_v11  ;;  %v10284_v57 = vsel %vm6569_vm15, 4294967295, %v10283_v57  ;;  %vm1269_vm14 = vcmp.eq.s32.totalorder %v4924_v39, %v6108_v58  ;;  %vm6581_vm4 = vmpackc.low %vm1466_vm6, %vm1465_vm5  ;;  %vm10289_vm15 = vnez %v10260_v31  ;;  %vm1463_vm5 = vcmp.eq.s32.totalorder %v4844_v20, %v6429_v7 }
 0x281   :  { %3976 = vmatpush.bf16.msk.msrb.mxu3 %vm10285_vm0, %v10047_v11  ;;  %v10288_v14 = vsel %vm6581_vm4, 4294967295, %v10287_v14  ;;  %3968 = vmatpush.bf16.msk.msrb.mxu2 %vm10289_vm15, %v10047_v11  ;;  %vm6592_vm3 = vmpackc.low %vm1496_vm2, %vm1495_vm13  ;;  %vm1464_vm6 = vcmp.eq.s32.totalorder %v4847_v21, %v6429_v7  ;;  %vm10292_vm0 = vnez %v10263_v9  ;;  %vm10293_vm9 = vnez %v10266_v61  ;;  %v10298_v9 = vld [vmem:[#allocation17_spill] sm:$0xff]  ;;  %v10299_v61 = vld [vmem:[#allocation18_spill] sm:$0xff] }
 0x282   :  { %4002 = vmatpush.bf16.msk.msrb.mxu0 %vm10292_vm0, %v10047_v11  ;;  %vm6606_vm4 = vmpackc.low %vm1269_vm14, %vm1268_vm11  ;;  %vm1493_vm13 = vcmp.eq.s32.totalorder %v5211_v24, %v6429_v7  ;;  %vm1494_vm2 = vcmp.eq.s32.totalorder %v5214_v33, %v6429_v7  ;;  %v10296_v31 = vmov 0  ;;  %vm1266_vm11 = vcmp.eq.s32.totalorder %v10298_v9, %v6108_v58 }
 0x283   :  { %vm6617_vm15 = vmpackc.low %vm1299_vm1, %vm1298_vm12  ;;  %vm1267_vm14 = vcmp.eq.s32.totalorder %v10299_v61, %v6108_v58  ;;  %vm1296_vm0 = vcmp.eq.s32.totalorder %v10098_v0, %v6108_v58  ;;  %vm1297_vm12 = vcmp.eq.s32.totalorder %v10099_v60, %v6108_v58  ;;  %v10305_v28 = vmov 0 }
 0x284   :  { %4010 = vmatpush.bf16.msk.msra.mxu1 %vm10293_vm9, %v10047_v11  ;;  %v10297_v31 = vsel %vm6617_vm15, 4294967295, %v10296_v31  ;;  %1237 = vmatmul.bf16.vlgmr.msrb.gmra.mxu2 %v5492_v13  ;;  %vm1501_vm9 = vcmp.eq.s32.totalorder %v10186_v42, %v6429_v7  ;;  %vm10308_vm1 = vcmask 64512   ;;  %v10332_v26 = vmov 0 }
 0x285   :  { %1439 = vmatpush.bf16.msra.mxu2 %v1388_v44  ;;  %3978 = vmatpush.bf16.msk.msrb.mxu3 %vm6517_vm8, %v10047_v11  ;;  %vm6654_vm8 = vmpackc.low %vm1494_vm2, %vm1493_vm13  ;;  %vm1264_vm2 = vcmp.eq.s32.totalorder %v10090_v23, %v6108_v58  ;;  %v10315_v44 = vld [vmem:[#allocation9_spill] sm:$0xff]  ;;  %v10338_v47 = vmov 0 }
 0x286   :  { %4054 = vmatpush.bf16.msk.msra.mxu0 %vm6502_vm10, %v10047_v11  ;;  %vm6634_vm10 = vmpackc.low %vm1464_vm6, %vm1463_vm5  ;;  %v10303_v1 = vsel %vm6654_vm8, 4294967295, %v10302_v1  ;;  %vm1492_vm6 = vcmp.eq.s32.totalorder %v5267_v36, %v6429_v7  ;;  %vm1265_vm5 = vcmp.eq.s32.totalorder %v10091_v2, %v6108_v58  ;;  %v10316_v36 = vld [vmem:[#allocation10_spill] sm:$0xff]  ;;  %v10319_v58 = vmov 0 }
 0x287   :  { %1412 = vmatmul.bf16.vlgmr.msrb.gmra.mxu0 %v5490_v45  ;;  %vm6676_vm13 = vmpackc.low %vm1267_vm14, %vm1266_vm11  ;;  %3969 = vmatmul.msk.bf16.vlgmr.msra.gmra.mxu3 %vm10308_vm1, %v5504_v55  ;;  %vm10311_vm14 = vcmp.eq.s32.totalorder %v4850_v22, %v6429_v7  ;;  %vm1483_vm1 = vcmp.eq.s32.totalorder %v10315_v44, %v6429_v7  ;;  %vm1484_vm8 = vcmp.eq.s32.totalorder %v10316_v36, %v6429_v7  ;;  %v10361_v45 = vmov 0 }
 0x288   :  { %v10306_v28 = vsel %vm6676_vm13, 4294967295, %v10305_v28  ;;  %vm6697_vm11 = vmpackc.low %vm1297_vm12, %vm1296_vm0  ;;  %vm10312_vm13 = vcmp.eq.s32.totalorder %v4861_v25, %v6429_v7  ;;  %vm10317_vm0 = vnez %v10282_v6  ;;  %vm10318_vm12 = vcmp.eq.s32.totalorder %v5264_v29, %v6429_v7 }
 0x289   :  { %4022 = vmatpush.bf16.msk.msrb.mxu2 %vm6536_vm7, %v10047_v11  ;;  %vm10304_vm7 = vnez %v10275_v59  ;;  %v10309_v59 = vmov 0  ;;  %3980 = vmatpush.bf16.msk.msrb.mxu3 %vm10317_vm0, %v10047_v11  ;;  %vm6732_vm15 = vmpackc.low %vm1265_vm5, %vm1264_vm2  ;;  %v1550_v29 = vsel %vm1501_vm9, 1.0, %v10195_v3  ;;  %vm1657_vm0 = vcmp.eq.s32.totalorder %v4835_v17, %v6665_v27 }
 0x28a   :  { %4012 = vmatpush.bf16.msk.msra.mxu1 %vm10304_vm7, %v10047_v11  ;;  %vm10307_vm7 = vnez %v10280_v38  ;;  %v10310_v59 = vsel %vm6697_vm11, 4294967295, %v10309_v59  ;;  %v10313_v38 = vmov 0  ;;  %vm6721_vm11 = vmpackc.low %vm1492_vm6, %vm10318_vm12  ;;  %vm1656_vm6 = vcmp.eq.s32.totalorder %v4832_v16, %v6665_v27 }
 0x28b   :  { %4056 = vmatpush.bf16.msk.msra.mxu0 %vm10307_vm7, %v10047_v11  ;;  %vm6707_vm7 = vmpackc.low %vm10312_vm13, %vm10311_vm14  ;;  %v10320_v58 = vsel %vm6721_vm11, 4294967295, %v10319_v58  ;;  %vm1459_vm13 = vcmp.eq.s32.totalorder %v4894_v34, %v6429_v7  ;;  %vm1460_vm14 = vcmp.eq.s32.totalorder %v4901_v35, %v6429_v7  ;;  %vm10324_vm12 = vnez %v10284_v57  ;;  %v10329_v57 = vld [vmem:[#allocation11_spill] sm:$0xff] }
 0x28c   :  { %v10314_v38 = vsel %vm6707_vm7, 4294967295, %v10313_v38  ;;  %vm10321_vm7 = vnez %v10288_v14  ;;  %vm6744_vm11 = vmpackc.low %vm1484_vm8, %vm1483_vm1  ;;  %vm1489_vm5 = vcmp.eq.s32.totalorder %v5293_v43, %v6429_v7  ;;  %vm1490_vm9 = vcmp.eq.s32.totalorder %v5296_v48, %v6429_v7 }
 0x28d   :  { %4024 = vmatpush.bf16.msk.msrb.mxu2 %vm10321_vm7, %v10047_v11  ;;  %vm6755_vm2 = vmpackc.low %vm1460_vm14, %vm1459_vm13  ;;  %vm1481_vm8 = vcmp.eq.s32.totalorder %v10329_v57, %v6429_v7  ;;  %vm1482_vm7 = vcmp.eq.s32.totalorder %v4885_v32, %v6429_v7  ;;  %3982 = vmatpush.bf16.msk.msrb.mxu3 %vm6606_vm4, %v10047_v11  ;;  %v1575_v43 = vpack.c.bf16 %v1550_v29, %v1550_v29  ;;  %v10330_v48 = vmov 0 }
 0x28e   :  { %4014 = vmatpush.bf16.msk.msra.mxu1 %vm10324_vm12, %v10047_v11  ;;  %vm6766_vm1 = vmpackc.low %vm1657_vm0, %vm1656_vm6  ;;  %vm1458_vm13 = vcmp.eq.s32.totalorder %v4924_v39, %v6429_v7  ;;  %vm1654_vm4 = vcmp.eq.s32.totalorder %v4838_v18, %v6665_v27  ;;  %vm1655_vm6 = vcmp.eq.s32.totalorder %v4841_v19, %v6665_v27  ;;  %vm10334_vm0 = vnez %v10297_v31 }
 0x28f   :  { %4058 = vmatpush.bf16.msk.msra.mxu0 %vm6592_vm3, %v10047_v11  ;;  %v10331_v48 = vsel %vm6766_vm1, 4294967295, %v10330_v48  ;;  %vm1457_vm3 = vcmp.eq.s32.totalorder %v4910_v37, %v6429_v7  ;;  %vm6777_vm14 = vmpackc.low %vm1490_vm9, %vm1489_vm5  ;;  %v10335_v29 = vmov 0  ;;  %vm1488_vm5 = vcmp.eq.s32.totalorder %v10169_v63, %v6429_v7 }
 0x290   :  { %v10333_v26 = vsel %vm6777_vm14, 4294967295, %v10332_v26  ;;  %vm6788_vm12 = vmpackc.low %vm1482_vm7, %vm1481_vm8  ;;  %vm10337_vm9 = vnez %v10303_v1  ;;  %vm1479_vm8 = vcmp.eq.s32.totalorder %v4927_v40, %v6429_v7  ;;  %vm1480_vm7 = vcmp.eq.s32.totalorder %v4930_v41, %v6429_v7 }
 0x291   :  { %4026 = vmatpush.bf16.msk.msrb.mxu2 %vm6634_vm10, %v10047_v11  ;;  %v10336_v29 = vsel %vm6788_vm12, 4294967295, %v10335_v29  ;;  %vm1487_vm10 = vcmp.eq.s32.totalorder %v10083_v12, %v6429_v7  ;;  %vm6799_vm14 = vmpackc.low %vm1458_vm13, %vm1457_vm3  ;;  %vm10341_vm12 = vcmask 1043456   ;;  %vm1455_vm3 = vcmp.eq.s32.totalorder %v10298_v9, %v6429_v7 }
 0x292   :  { %4016 = vmatpush.bf16.msk.msra.mxu1 %vm10334_vm0, %v10047_v11  ;;  %v10339_v47 = vsel %vm6799_vm14, 4294967295, %v10338_v47  ;;  %vm10340_vm0 = vnez %v10306_v28  ;;  %v1577_v31 = vsel %vm10341_vm12, %v1575_v43, 0  ;;  %vm6811_vm1 = vmpackc.low %vm1655_vm6, %vm1654_vm4  ;;  %vm1456_vm13 = vcmp.eq.s32.totalorder %v10299_v61, %v6429_v7 }
 0x293   :  { %4060 = vmatpush.bf16.msk.msra.mxu0 %vm10337_vm9, %v10047_v11  ;;  %3984 = vmatpush.bf16.msk.msrb.mxu3 %vm10340_vm0, %v10047_v11  ;;  %vm10344_vm9 = vnez %v10314_v38  ;;  %vm6822_vm14 = vmpackc.low %vm1488_vm5, %vm1487_vm10  ;;  %vm1653_vm6 = vcmp.eq.s32.totalorder %v4847_v21, %v6665_v27  ;;  %vm10347_vm12 = vnez %v10310_v59  ;;  %vm1485_vm10 = vcmp.eq.s32.totalorder %v10098_v0, %v6429_v7  ;;  %v6857_v59 = vld [vmem:[%s9870_s3 + $0x8] ss:$0 sm:$0xff] }
 0x294   :  { %vm6833_vm0 = vmpackc.low %vm1480_vm7, %vm1479_vm8  ;;  %vm1486_vm5 = vcmp.eq.s32.totalorder %v10099_v60, %v6429_v7  ;;  %vm1477_vm8 = vcmp.eq.s32.totalorder %v4945_v50, %v6429_v7  ;;  %v10355_v38 = vmov 0  ;;  %vm1454_vm7 = vcmp.eq.s32.totalorder %v10091_v2, %v6429_v7 }
 0x295   :  { %4028 = vmatpush.bf16.msk.msrb.mxu2 %vm10344_vm9, %v10047_v11  ;;  %vm10350_vm9 = vnez %v10320_v58  ;;  %vm6844_vm4 = vmpackc.low %vm1456_vm13, %vm1455_vm3  ;;  %vm10353_vm3 = vcmask 64512   ;;  %vm10354_vm13 = vcmp.eq.s32.totalorder %v4844_v20, %v6665_v27  ;;  %v10357_v58 = vmov 0 }
 0x296   :  { %4018 = vmatpush.bf16.msk.msra.mxu1 %vm10347_vm12, %v10047_v11  ;;  %4019 = vmatmul.msk.bf16.vlgmr.msra.gmra.mxu2 %vm10353_vm3, %v5504_v55  ;;  %vm1651_vm3 = vcmp.eq.s32.totalorder %v4861_v25, %v6665_v27  ;;  %vm10364_vm12 = vnez %v10333_v26  ;;  %v10368_v14 = vmov 0  ;;  %v10471_v43 = vmov 0 }
 0x297   :  { %4062 = vmatpush.bf16.msk.msra.mxu0 %vm10350_vm9, %v10047_v11  ;;  %3986 = vmatpush.bf16.msk.msrb.mxu3 %vm6732_vm15, %v10047_v11  ;;  %vm6867_vm9 = vmpackc.low %vm1653_vm6, %vm10354_vm13  ;;  %vm1650_vm6 = vcmp.eq.s32.totalorder %v4850_v22, %v6665_v27  ;;  %vm10363_vm13 = vcmp.eq.s32.totalorder %v10186_v42, %v6665_v27 }
 0x298   :  { %v10356_v38 = vsel %vm6867_vm9, 4294967295, %v10355_v38  ;;  %vm6885_vm15 = vmpackc.low %vm1486_vm5, %vm1485_vm10  ;;  %vm10360_vm10 = vcmp.eq.s32.totalorder %v4973_v53, %v6429_v7  ;;  %v1739_v6 = vsel %vm10363_vm13, 1.0, %v10195_v3  ;;  %vm1845_vm13 = vcmp.eq.s32.totalorder %v4832_v16, %v6857_v59 }
 0x299   :  { %1426 = vmatmul.bf16.vlgmr.msra.gmra.mxu1 %v5492_v13  ;;  %v10358_v58 = vsel %vm6885_vm15, 4294967295, %v10357_v58  ;;  %4030 = vmatpush.bf16.msk.msrb.mxu2 %vm6755_vm2, %v10047_v11  ;;  %vm6905_vm5 = vmpackc.low %vm10360_vm10, %vm1477_vm8  ;;  %vm1672_vm2 = vcmp.eq.s32.totalorder %v10315_v44, %v6665_v27  ;;  %vm10365_vm8 = vcmp.eq.s32.totalorder %v10090_v23, %v6429_v7  ;;  %vm1476_vm9 = vcmp.eq.s32.totalorder %v5060_v10, %v6429_v7 }
 0x29a   :  { %1628 = vmatpush.bf16.msrb.mxu1 %v1577_v31  ;;  %v10362_v45 = vsel %vm6905_vm5, 4294967295, %v10361_v45  ;;  %1398 = vmatmul.bf16.vlgmr.msrb.gmra.mxu3 %v5477_v49  ;;  %vm6924_vm10 = vmpackc.low %vm1454_vm7, %vm10365_vm8  ;;  %vm1846_vm5 = vcmp.eq.s32.totalorder %v4835_v17, %v6857_v59  ;;  %vm10370_vm7 = vnez %v10336_v29  ;;  %v1764_v26 = vpack.c.bf16 %v1739_v6, %v1739_v6  ;;  %v10408_v29 = vld [vmem:[#allocation19_spill] sm:$0xff] }
 0x29b   :  { %4038 = vmatpush.bf16.msk.msra.mxu3 %vm6744_vm11, %v10047_v11  ;;  %vm10359_vm11 = vnez %v10331_v48  ;;  %4064 = vmatpush.bf16.msk.msra.mxu0 %vm10364_vm12, %v10047_v11  ;;  %vm6932_vm15 = vmpackc.low %vm1651_vm3, %vm1650_vm6  ;;  %vm1475_vm12 = vcmp.eq.s32.totalorder %v5057_v8, %v6429_v7  ;;  %v10371_v31 = vmov 0  ;;  %vm1648_vm6 = vcmp.eq.s32.totalorder %v4894_v34, %v6665_v27 }
 0x29c   :  { %v10369_v14 = vsel %vm6932_vm15, 4294967295, %v10368_v14  ;;  %vm1649_vm3 = vcmp.eq.s32.totalorder %v4901_v35, %v6665_v27  ;;  %vm10373_vm15 = vnez %v10339_v47  ;;  %v10381_v6 = vmov 0 }
 0x29d   :  { %4032 = vmatpush.bf16.msk.msrb.mxu2 %vm10373_vm15, %v10047_v11  ;;  %vm1844_vm15 = vcmp.eq.s32.totalorder %v4841_v19, %v6857_v59  ;;  %v10400_v48 = vmov 0  ;;  %v10415_v47 = vmov 0 }
 0x29e   :  { %4072 = vmatpush.bf16.msk.msra.mxu1 %vm10359_vm11, %v10047_v11  ;;  %vm1673_vm11 = vcmp.eq.s32.totalorder %v10316_v36, %v6665_v27 }
 0x29f   :  { %4040 = vmatpush.bf16.msk.msra.mxu3 %vm10370_vm7, %v10047_v11  ;;  %vm6943_vm8 = vmpackc.low %vm1673_vm11, %vm1672_vm2  ;;  %vm1670_vm2 = vcmp.eq.s32.totalorder %v10329_v57, %v6665_v27  ;;  %vm1671_vm11 = vcmp.eq.s32.totalorder %v4885_v32, %v6665_v27  ;;  %4066 = vmatpush.bf16.msk.msra.mxu0 %vm6822_vm14, %v10047_v11  ;;  %vm1474_vm14 = vcmp.eq.s32.totalorder %v5120_v52, %v6429_v7 }
 0x2a0   :  { %v10372_v31 = vsel %vm6943_vm8, 4294967295, %v10371_v31  ;;  %vm6957_vm7 = vmpackc.low %vm1846_vm5, %vm1845_vm13  ;;  %vm1473_vm13 = vcmp.eq.s32.totalorder %v5117_v51, %v6429_v7 }
 0x2a1   :  { %vm6968_vm8 = vmpackc.low %vm1476_vm9, %vm1475_vm12  ;;  %vm10380_vm9 = vcmask 1043456   ;;  %4034 = vmatpush.bf16.msk.msrb.mxu2 %vm6844_vm4, %v10047_v11  ;;  %vm1841_vm4 = vcmp.eq.s32.totalorder %v4844_v20, %v6857_v59 }
 0x2a2   :  { %4074 = vmatpush.bf16.msk.msra.mxu1 %vm6811_vm1, %v10047_v11  ;;  %vm1843_vm1 = vcmp.eq.s32.totalorder %v4838_v18, %v6857_v59  ;;  %vm6976_vm5 = vmpackc.low %vm1649_vm3, %vm1648_vm6  ;;  %v1766_v1 = vsel %vm10380_vm9, %v1764_v26, 0  ;;  %vm1646_vm6 = vcmp.eq.s32.totalorder %v4910_v37, %v6665_v27  ;;  %vm1647_vm3 = vcmp.eq.s32.totalorder %v4924_v39, %v6665_v27 }
 0x2a3   :  { %v10379_v46 = vsel %vm6976_vm5, 4294967295, %v10378_v46  ;;  %4042 = vmatpush.bf16.msk.msra.mxu3 %vm6833_vm0, %v10047_v11  ;;  %vm6988_vm12 = vmpackc.low %vm1671_vm11, %vm1670_vm2  ;;  %vm10383_vm5 = vnez %v10356_v38  ;;  %vm1668_vm2 = vcmp.eq.s32.totalorder %v4927_v40, %v6665_v27  ;;  %vm1669_vm11 = vcmp.eq.s32.totalorder %v4930_v41, %v6665_v27 }
 0x2a4   :  { %v10382_v6 = vsel %vm6988_vm12, 4294967295, %v10381_v6  ;;  %vm7002_vm0 = vmpackc.low %vm1844_vm15, %vm1843_vm1  ;;  %vm10386_vm9 = vnez %v10358_v58  ;;  %vm1842_vm1 = vcmp.eq.s32.totalorder %v4847_v21, %v6857_v59  ;;  %v10389_v38 = vmov 0  ;;  %v10391_v58 = vld [vmem:[#allocation24_spill] sm:$0xff] }
 0x2a5   :  { %4068 = vmatpush.bf16.msk.msra.mxu0 %vm10386_vm9, %v10047_v11  ;;  %vm7013_vm12 = vmpackc.low %vm1474_vm14, %vm1473_vm13  ;;  %vm1472_vm13 = vcmp.eq.s32.totalorder %v10391_v58, %v6429_v7  ;;  %vm10392_vm14 = vnez %v10362_v45  ;;  %4036 = vmatpush.bf16.msk.msrb.mxu2 %vm6924_vm10, %v10047_v11  ;;  %vm10399_vm10 = vcmp.eq.s32.totalorder %v10078_v62, %v6429_v7  ;;  %v10410_v21 = vmov 0 }
 0x2a6   :  { %4076 = vmatpush.bf16.msk.msra.mxu1 %vm10383_vm5, %v10047_v11  ;;  %vm7021_vm15 = vmpackc.low %vm1647_vm3, %vm1646_vm6  ;;  %vm1644_vm6 = vcmp.eq.s32.totalorder %v10298_v9, %v6665_v27  ;;  %vm10397_vm5 = vnez %v10369_v14  ;;  %vm10398_vm3 = vnez %v10372_v31  ;;  %v453_v14 = vpop.f32.mrf.mxu0  ;;  %v10403_v31 = vmov 0  ;;  %v481_v28 = vpop.f32.mrf.mxu2 }
 0x2a7   :  { %v10390_v38 = vsel %vm7021_vm15, 4294967295, %v10389_v38  ;;  %4044 = vmatpush.bf16.msk.msra.mxu3 %vm10392_vm14, %v10047_v11  ;;  %vm7032_vm9 = vmpackc.low %vm1669_vm11, %vm1668_vm2  ;;  %vm1667_vm15 = vcmp.eq.s32.totalorder %v4973_v53, %v6665_v27  ;;  %vm1839_vm11 = vcmp.eq.s32.totalorder %v4850_v22, %v6857_v59  ;;  %vm10413_vm14 = vcmp.eq.s32.totalorder %v10178_v15, %v6429_v7 }
 0x2a8   :  { %1615 = vmatmul.bf16.vlgmr.msra.gmra.mxu0 %v5492_v13  ;;  %vm7048_vm2 = vmpackc.low %vm1842_vm1, %vm1841_vm4  ;;  %vm1689_vm1 = vcmp.eq.s32.totalorder %v10408_v29, %v6665_v27  ;;  %1587 = vmatmul.bf16.vlgmr.msrb.gmra.mxu2 %v5477_v49  ;;  %v467_v13 = vpop.f32.mrf.mxu1 }
 0x2a9   :  { %1817 = vmatpush.bf16.msrb.mxu0 %v1766_v1  ;;  %4088 = vmatpush.bf16.msk.msra.mxu2 %vm10398_vm3, %v10047_v11  ;;  %vm7065_vm4 = vmpackc.low %vm1472_vm13, %vm10399_vm10  ;;  %vm10405_vm3 = vcmp.eq.s32.totalorder %v4945_v50, %v6665_v27  ;;  %v10406_v1 = vmov 0 }
 0x2aa   :  { %4078 = vmatpush.bf16.msk.msra.mxu1 %vm10397_vm5, %v10047_v11  ;;  %v10401_v48 = vsel %vm7065_vm4, 4294967295, %v10400_v48  ;;  %vm10402_vm5 = vcmp.eq.s32.totalorder %v10299_v61, %v6665_v27  ;;  %vm7089_vm10 = vmpackc.low %vm1667_vm15, %vm10405_vm3  ;;  %vm10409_vm15 = vcmp.eq.s32.totalorder %v4861_v25, %v6857_v59  ;;  %vm1664_vm3 = vcmp.eq.s32.totalorder %v5057_v8, %v6665_v27  ;;  %v10470_v25 = vld [vmem:[#allocation37_spill] sm:$0xff] }
 0x2ab   :  { %vm7082_vm13 = vmpackc.low %vm10402_vm5, %vm1644_vm6  ;;  %v10407_v1 = vsel %vm7089_vm10, 4294967295, %v10406_v1  ;;  %4046 = vmatpush.bf16.msk.msra.mxu3 %vm6968_vm8, %v10047_v11  ;;  %vm1643_vm5 = vcmp.eq.s32.totalorder %v10091_v2, %v6665_v27  ;;  %vm1665_vm8 = vcmp.eq.s32.totalorder %v5060_v10, %v6665_v27  ;;  %vm1838_vm10 = vcmp.eq.s32.totalorder %v4901_v35, %v6857_v59  ;;  %v10427_v35 = vld [vmem:[#allocation22_spill] sm:$0xff] }
 0x2ac   :  { %v10404_v31 = vsel %vm7082_vm13, 4294967295, %v10403_v31  ;;  %vm7109_vm6 = vmpackc.low %vm10409_vm15, %vm1839_vm11  ;;  %vm10414_vm11 = vcmp.eq.s32.totalorder %v10179_v5, %v6429_v7  ;;  %vm10417_vm13 = vnez %v10379_v46  ;;  %v10420_v7 = vmov 0 }
 0x2ad   :  { %4122 = vmatpush.bf16.msk.msra.mxu0 %vm6957_vm7, %v10047_v11  ;;  %v10411_v21 = vsel %vm7109_vm6, 4294967295, %v10410_v21  ;;  %vm10412_vm7 = vcmask 64512   ;;  %vm7127_vm15 = vmpackc.low %vm10414_vm11, %vm10413_vm14  ;;  %vm1837_vm6 = vcmp.eq.s32.totalorder %v4894_v34, %v6857_v59  ;;  %vm10419_vm14 = vcmp.eq.s32.totalorder %v4993_v56, %v6665_v27 }
 0x2ae   :  { %4069 = vmatmul.msk.bf16.vlgmr.msrb.gmra.mxu1 %vm10412_vm7, %v5504_v55  ;;  %v10416_v47 = vsel %vm7127_vm15, 4294967295, %v10415_v47  ;;  %vm10418_vm7 = vnez %v10382_v6  ;;  %vm7144_vm11 = vmpackc.low %vm1689_vm1, %vm10419_vm14  ;;  %vm1861_vm15 = vcmp.eq.s32.totalorder %v10315_v44, %v6857_v59  ;;  %vm1862_vm4 = vcmp.eq.s32.totalorder %v10316_v36, %v6857_v59  ;;  %v455_v45 = vpop.f32.mrf.mxu0 }
 0x2af   :  { %4080 = vmatpush.bf16.msk.msra.mxu1 %vm10417_vm13, %v10047_v11  ;;  %4090 = vmatpush.bf16.msk.msra.mxu2 %vm10418_vm7, %v10047_v11  ;;  %v10421_v7 = vsel %vm7144_vm11, 4294967295, %v10420_v7  ;;  %vm10422_vm13 = vcmp.eq.s32.totalorder %v10090_v23, %v6665_v27  ;;  %vm7162_vm1 = vmpackc.low %vm1665_vm8, %vm1664_vm3  ;;  %vm1686_vm14 = vcmp.eq.s32.totalorder %v5099_v30, %v6665_v27  ;;  %vm1687_vm11 = vcmp.eq.s32.totalorder %v10427_v35, %v6665_v27 }
 0x2b0   :  { %vm7158_vm7 = vmpackc.low %vm1643_vm5, %vm10422_vm13  ;;  %4048 = vmatpush.bf16.msk.msra.mxu3 %vm7013_vm12, %v10047_v11  ;;  %vm1662_vm5 = vcmp.eq.s32.totalorder %v5117_v51, %v6665_v27  ;;  %vm1663_vm3 = vcmp.eq.s32.totalorder %v5120_v52, %v6665_v27  ;;  %v468_v34 = vadd.f32 %v467_v13, %v453_v14  ;;  %vm1835_vm13 = vcmp.eq.s32.totalorder %v4910_v37, %v6857_v59  ;;  %v495_v14 = vpop.f32.mrf.mxu3 }
 0x2b1   :  { %4124 = vmatpush.bf16.msk.msra.mxu0 %vm7002_vm0, %v10047_v11  ;;  %vm7173_vm0 = vmpackc.low %vm1838_vm10, %vm1837_vm6  ;;  %vm1836_vm12 = vcmp.eq.s32.totalorder %v4924_v39, %v6857_v59  ;;  %vm10432_vm10 = vnez %v10390_v38 }
 0x2b2   :  { %vm7181_vm8 = vmpackc.low %vm1862_vm4, %vm1861_vm15  ;;  %vm1859_vm4 = vcmp.eq.s32.totalorder %v10329_v57, %v6857_v59  ;;  %vm1860_vm15 = vcmp.eq.s32.totalorder %v4885_v32, %v6857_v59  ;;  %v482_v38 = vadd.f32 %v481_v28, %v468_v34  ;;  %v10438_v34 = vmov 0 }
 0x2b3   :  { %4082 = vmatpush.bf16.msk.msra.mxu1 %vm10432_vm10, %v10047_v11  ;;  %4092 = vmatpush.bf16.msk.msra.mxu2 %vm7032_vm9, %v10047_v11  ;;  %vm7195_vm6 = vmpackc.low %vm1687_vm11, %vm1686_vm14  ;;  %vm1685_vm14 = vcmp.eq.s32.totalorder %v5167_v54, %v6665_v27  ;;  %vm10437_vm10 = vnez %v10401_v48  ;;  %v10440_v48 = vmov 0 }
 0x2b4   :  { %vm7209_vm9 = vmpackc.low %vm1663_vm3, %vm1662_vm5  ;;  %4050 = vmatpush.bf16.msk.msra.mxu3 %vm10437_vm10, %v10047_v11  ;;  %vm1661_vm3 = vcmp.eq.s32.totalorder %v10391_v58, %v6665_v27  ;;  %v496_v28 = vadd.f32 %v495_v14, %v482_v38  ;;  %vm10443_vm5 = vnez %v10407_v1  ;;  %v469_v38 = vpop.f32.mrf.mxu1  ;;  %v10495_v1 = vmov 0 }
 0x2b5   :  { %4126 = vmatpush.bf16.msk.msra.mxu0 %vm7048_vm2, %v10047_v11  ;;  %vm7226_vm2 = vmpackc.low %vm1836_vm12, %vm1835_vm13  ;;  %vm1834_vm13 = vcmp.eq.s32.totalorder %v10299_v61, %v6857_v59  ;;  %vm10442_vm12 = vnez %v10404_v31  ;;  %v10497_v61 = vmov 0 }
 0x2b6   :  { %v10439_v34 = vsel %vm7226_vm2, 4294967295, %v10438_v34  ;;  %vm7234_vm11 = vmpackc.low %vm1860_vm15, %vm1859_vm4  ;;  %vm10444_vm4 = vcmp.eq.s32.totalorder %v5164_v4, %v6665_v27  ;;  %v500_v31 = vpack.c.bf16 %v496_v28, %v496_v28  ;;  %v7290_v28 = vld [vmem:[%s9870_s3 + $0x9] ss:$0 sm:$0xff]  ;;  %v657_v13 = vpop.f32.mrf.mxu0 }
 0x2b7   :  { %v10441_v48 = vsel %vm7234_vm11, 4294967295, %v10440_v48  ;;  %4084 = vmatpush.bf16.msk.msra.mxu1 %vm10442_vm12, %v10047_v11  ;;  %4094 = vmatpush.bf16.msk.msra.mxu2 %vm10443_vm5, %v10047_v11  ;;  %vm7251_vm15 = vmpackc.low %vm1685_vm14, %vm10444_vm4  ;;  %vm10447_vm12 = vnez %v10411_v21  ;;  %vm10448_vm5 = vcmp.eq.s32.totalorder %v10078_v62, %v6665_v27  ;;  %vm10451_vm11 = vnez %v10416_v47 }
 0x2b8   :  { %vm7265_vm2 = vmpackc.low %vm1661_vm3, %vm10448_vm5  ;;  %4052 = vmatpush.bf16.msk.msra.mxu3 %vm10451_vm11, %v10047_v11  ;;  %vm10455_vm4 = vcmask 797696   ;;  %v470_v47 = vadd.f32 %v469_v38, %v455_v45  ;;  %vm10456_vm11 = vnez %v10421_v7  ;;  %vm10459_vm5 = vcmp.eq.s32.totalorder %v4930_v41, %v6857_v59  ;;  %v483_v7 = vpop.f32.mrf.mxu2  ;;  %v497_v6 = vpop.f32.mrf.mxu3 }
 0x2b9   :  { %4128 = vmatpush.bf16.msk.msra.mxu0 %vm10447_vm12, %v10047_v11  ;;  %vm10452_vm12 = vcmp.eq.s32.totalorder %v10298_v9, %v6857_v59  ;;  %503 = vst.msk [vmem:[#allocation2] sm:$0xf] %vm10455_vm4, %v500_v31  ;;  %vm1831_vm4 = vcmp.eq.s32.totalorder %v10090_v23, %v6857_v59  ;;  %vm1832_vm14 = vcmp.eq.s32.totalorder %v10091_v2, %v6857_v59  ;;  %v10464_v45 = vmov 0  ;;  %v10477_v2 = vld [vmem:[#allocation29_spill] sm:$0xff] }
 0x2ba   :  { %vm7279_vm10 = vmpackc.low %vm1834_vm13, %vm10452_vm12  ;;  %vm10457_vm13 = vcmask 64512   ;;  %vm10458_vm12 = vcmp.eq.s32.totalorder %v4927_v40, %v6857_v59  ;;  %v484_v46 = vadd.f32 %v483_v7, %v470_v47  ;;  %v10468_v38 = vmov 0  ;;  %v10476_v7 = vld [vmem:[#allocation28_spill] sm:$0xff] }
 0x2bb   :  { %4119 = vmatmul.msk.bf16.vlgmr.msrb.gmra.mxu0 %vm10457_vm13, %v5504_v55  ;;  %vm7304_vm3 = vmpackc.low %vm10459_vm5, %vm10458_vm12  ;;  %4086 = vmatpush.bf16.msk.msra.mxu1 %vm7158_vm7, %v10047_v11  ;;  %vm10462_vm5 = vcmp.eq.s32.totalorder %v5211_v24, %v6665_v27  ;;  %vm1855_vm12 = vcmp.eq.s32.totalorder %v4945_v50, %v6857_v59  ;;  %vm1877_vm7 = vcmp.eq.s32.totalorder %v4993_v56, %v6857_v59  ;;  %v10474_v47 = vmov 0 }
 0x2bc   :  { %4104 = vmatpush.bf16.msk.msrb.mxu3 %vm10456_vm11, %v10047_v11  ;;  %4096 = vmatpush.bf16.msk.msra.mxu2 %vm7162_vm1, %v10047_v11  ;;  %vm10463_vm11 = vcmp.eq.s32.totalorder %v5214_v33, %v6665_v27  ;;  %vm10466_vm1 = vcmp.eq.s32.totalorder %v10178_v15, %v6665_v27  ;;  %v498_v31 = vadd.f32 %v497_v6, %v484_v46  ;;  %v10478_v46 = vmov 0 }
 0x2bd   :  { %vm7324_vm13 = vmpackc.low %vm10463_vm11, %vm10462_vm5  ;;  %4130 = vmatpush.bf16.msk.msra.mxu0 %vm7173_vm0, %v10047_v11  ;;  %vm10467_vm5 = vcmp.eq.s32.totalorder %v10179_v5, %v6665_v27  ;;  %vm1878_vm0 = vcmp.eq.s32.totalorder %v10408_v29, %v6857_v59  ;;  %1601 = vmatmul.bf16.vlgmr.msra.gmra.mxu3 %v10470_v25 }
 0x2be   :  { %v10465_v45 = vsel %vm7324_vm13, 4294967295, %v10464_v45  ;;  %vm7344_vm11 = vmpackc.low %vm10467_vm5, %vm10466_vm1  ;;  %1776 = vmatmul.bf16.vlgmr.msra.gmra.mxu1 %v5477_v49  ;;  %vm1680_vm5 = vcmp.eq.s32.totalorder %v10476_v7, %v6665_v27  ;;  %vm1681_vm1 = vcmp.eq.s32.totalorder %v10477_v2, %v6665_v27  ;;  %v501_v6 = vpack.c.bf16 %v498_v31, %v498_v31 }
 0x2bf   :  { %4138 = vmatpush.bf16.msk.msrb.mxu1 %vm7181_vm8, %v10047_v11  ;;  %v10469_v38 = vsel %vm7344_vm11, 4294967295, %v10468_v38  ;;  %vm7359_vm8 = vmpackc.low %vm1832_vm14, %vm1831_vm4  ;;  %vm10473_vm14 = vcmp.eq.s32.totalorder %v4973_v53, %v6857_v59  ;;  %vm2049_vm13 = vcmp.eq.s32.totalorder %v4885_v32, %v7290_v28 }
 0x2c0   :  { %v10472_v43 = vsel %vm7359_vm8, 4294967295, %v10471_v43  ;;  %4106 = vmatpush.bf16.msk.msrb.mxu3 %vm7195_vm6, %v10047_v11  ;;  %vm7377_vm4 = vmpackc.low %vm10473_vm14, %vm1855_vm12  ;;  %4098 = vmatpush.bf16.msk.msra.mxu2 %vm7209_vm9, %v10047_v11  ;;  %vm1853_vm12 = vcmp.eq.s32.totalorder %v5057_v8, %v6857_v59  ;;  %vm1854_vm14 = vcmp.eq.s32.totalorder %v5060_v10, %v6857_v59  ;;  %vm10481_vm8 = vnez %v10441_v48  ;;  %v671_v48 = vpop.f32.mrf.mxu1  ;;  %v643_v14 = vpop.f32.mrf.mxu3 }
 0x2c1   :  { %v10475_v47 = vsel %vm7377_vm4, 4294967295, %v10474_v47  ;;  %vm7388_vm6 = vmpackc.low %vm1878_vm0, %vm1877_vm7  ;;  %vm10480_vm4 = vnez %v10439_v34  ;;  %vm10482_vm9 = vcmp.eq.s32.totalorder %v10315_v44, %v7290_v28  ;;  %vm10483_vm7 = vcmp.eq.s32.totalorder %v10316_v36, %v7290_v28  ;;  %v10491_v36 = vld [vmem:[#allocation30_spill] sm:$0xff]  ;;  %v10492_v44 = vld [vmem:[#allocation31_spill] sm:$0xff] }
 0x2c2   :  { %v10479_v46 = vsel %vm7388_vm6, 4294967295, %v10478_v46  ;;  %4132 = vmatpush.bf16.msk.msra.mxu0 %vm10480_vm4, %v10047_v11  ;;  %vm7408_vm0 = vmpackc.low %vm10483_vm7, %vm10482_vm9  ;;  %vm1875_vm6 = vcmp.eq.s32.totalorder %v5099_v30, %v6857_v59  ;;  %vm1876_vm4 = vcmp.eq.s32.totalorder %v10427_v35, %v6857_v59  ;;  %vm10488_vm9 = vcmask 797696  }
 0x2c3   :  { %4140 = vmatpush.bf16.msk.msrb.mxu1 %vm10481_vm8, %v10047_v11  ;;  %vm7416_vm11 = vmpackc.low %vm1681_vm1, %vm1680_vm5  ;;  %vm2048_vm8 = vcmp.eq.s32.totalorder %v10329_v57, %v7290_v28  ;;  %504 = vst.msk [vmem:[#allocation2 + $0x4] sm:$0xf] %vm10488_vm9, %v501_v6  ;;  %vm1678_vm1 = vcmp.eq.s32.totalorder %v10491_v36, %v6665_v27  ;;  %vm1679_vm5 = vcmp.eq.s32.totalorder %v10492_v44, %v6665_v27  ;;  %v685_v6 = vpop.f32.mrf.mxu2 }
 0x2c4   :  { %4108 = vmatpush.bf16.msk.msrb.mxu3 %vm7251_vm15, %v10047_v11  ;;  %vm7428_vm7 = vmpackc.low %vm1854_vm14, %vm1853_vm12  ;;  %4100 = vmatpush.bf16.msk.msra.mxu2 %vm7265_vm2, %v10047_v11  ;;  %vm1851_vm15 = vcmp.eq.s32.totalorder %v5117_v51, %v6857_v59  ;;  %vm1852_vm12 = vcmp.eq.s32.totalorder %v5120_v52, %v6857_v59  ;;  %v658_v21 = vadd.f32 %v657_v13, %v643_v14  ;;  %v10575_v14 = vld [vmem:[#allocation8_spill] sm:$0xff] }
 0x2c5   :  { %vm7439_vm9 = vmpackc.low %vm1876_vm4, %vm1875_vm6  ;;  %vm1873_vm6 = vcmp.eq.s32.totalorder %v5164_v4, %v6857_v59  ;;  %vm10499_vm4 = vnez %v10465_v45 }
 0x2c6   :  { %4134 = vmatpush.bf16.msk.msra.mxu0 %vm7279_vm10, %v10047_v11  ;;  %vm7459_vm2 = vmpackc.low %vm2049_vm13, %vm2048_vm8  ;;  %vm1874_vm10 = vcmp.eq.s32.totalorder %v5167_v54, %v6857_v59  ;;  %vm2047_vm13 = vcmp.eq.s32.totalorder %v4930_v41, %v7290_v28  ;;  %v672_v13 = vadd.f32 %v671_v48, %v658_v21 }
 0x2c7   :  { %4142 = vmatpush.bf16.msk.msrb.mxu1 %vm7304_vm3, %v10047_v11  ;;  %v10496_v1 = vsel %vm7459_vm2, 4294967295, %v10495_v1  ;;  %vm7467_vm14 = vmpackc.low %vm1679_vm5, %vm1678_vm1  ;;  %vm2046_vm3 = vcmp.eq.s32.totalorder %v4927_v40, %v7290_v28  ;;  %vm10506_vm5 = vnez %v10475_v47 }
 0x2c8   :  { %v10498_v61 = vsel %vm7467_vm14, 4294967295, %v10497_v61  ;;  %4110 = vmatpush.bf16.msk.msrb.mxu3 %vm10499_vm4, %v10047_v11  ;;  %vm7478_vm8 = vmpackc.low %vm1852_vm12, %vm1851_vm15  ;;  %vm10502_vm14 = vnez %v10469_v38  ;;  %vm1849_vm15 = vcmp.eq.s32.totalorder %v10078_v62, %v6857_v59  ;;  %vm1850_vm12 = vcmp.eq.s32.totalorder %v10391_v58, %v6857_v59  ;;  %v645_v21 = vpop.f32.mrf.mxu3 }
 0x2c9   :  { %4102 = vmatpush.bf16.msk.msra.mxu2 %vm10502_vm14, %v10047_v11  ;;  %vm7489_vm2 = vmpackc.low %vm1874_vm10, %vm1873_vm6  ;;  %vm10505_vm4 = vnez %v10472_v43  ;;  %vm1871_vm6 = vcmp.eq.s32.totalorder %v5211_v24, %v6857_v59  ;;  %vm1872_vm10 = vcmp.eq.s32.totalorder %v5214_v33, %v6857_v59  ;;  %v686_v38 = vadd.f32 %v685_v6, %v672_v13  ;;  %v659_v43 = vpop.f32.mrf.mxu0  ;;  %v673_v6 = vpop.f32.mrf.mxu1 }
 0x2ca   :  { %4136 = vmatpush.bf16.msk.msra.mxu0 %vm10505_vm4, %v10047_v11  ;;  %vm7503_vm1 = vmpackc.low %vm2047_vm13, %vm2046_vm3  ;;  %vm10509_vm14 = vnez %v10479_v46  ;;  %vm10510_vm3 = vcmp.eq.s32.totalorder %v10083_v12, %v6665_v27  ;;  %vm10511_vm13 = vcmp.eq.s32.totalorder %v10169_v63, %v6665_v27  ;;  %vm2044_vm4 = vcmp.eq.s32.totalorder %v4945_v50, %v7290_v28 }
 0x2cb   :  { %4144 = vmatpush.bf16.msk.msrb.mxu1 %vm10506_vm5, %v10047_v11  ;;  %vm7523_vm5 = vmpackc.low %vm10511_vm13, %vm10510_vm3  ;;  %vm1674_vm3 = vcmp.eq.s32.totalorder %v10098_v0, %v6665_v27  ;;  %vm1675_vm13 = vcmp.eq.s32.totalorder %v10099_v60, %v6665_v27  ;;  %v690_v26 = vpack.c.bf16 %v686_v38, %v686_v38  ;;  %v687_v34 = vpop.f32.mrf.mxu2  ;;  %v10519_v13 = vmov 0 }
 0x2cc   :  { %1790 = vmatmul.bf16.vlgmr.msra.gmra.mxu2 %v10470_v25  ;;  %4112 = vmatpush.bf16.msk.msrb.mxu3 %vm7416_vm11, %v10047_v11  ;;  %vm7558_vm11 = vmpackc.low %vm1872_vm10, %vm1871_vm6  ;;  %vm10518_vm6 = vcmp.eq.s32.totalorder %v4973_v53, %v7290_v28  ;;  %v660_v31 = vadd.f32 %v659_v43, %v645_v21  ;;  %v10523_v38 = vmov 0  ;;  %v10529_v27 = vmov 0 }
 0x2cd   :  { %4154 = vmatpush.bf16.msk.msrb.mxu2 %vm10509_vm14, %v10047_v11  ;;  %1965 = vmatmul.bf16.vlgmr.msra.gmra.mxu0 %v5477_v49  ;;  %vm7575_vm10 = vmpackc.low %vm10518_vm6, %vm2044_vm4  ;;  %vm10521_vm14 = vcmask 797696   ;;  %vm10522_vm4 = vnez %v10496_v1  ;;  %v10535_v43 = vmov 0 }
 0x2ce   :  { %4188 = vmatpush.bf16.msk.msrb.mxu0 %vm7408_vm0, %v10047_v11  ;;  %vm7541_vm0 = vmpackc.low %vm1850_vm12, %vm1849_vm15  ;;  %v10520_v13 = vsel %vm7575_vm10, 4294967295, %v10519_v13  ;;  %vm1870_vm12 = vcmp.eq.s32.totalorder %v10477_v2, %v6857_v59  ;;  %692 = vst.msk [vmem:[#allocation2 + $0x8] sm:$0xf] %vm10521_vm14, %v690_v26  ;;  %vm2043_vm14 = vcmp.eq.s32.totalorder %v5060_v10, %v7290_v28  ;;  %vm2066_vm15 = vcmp.eq.s32.totalorder %v4993_v56, %v7290_v28 }
 0x2cf   :  { %4146 = vmatpush.bf16.msk.msrb.mxu1 %vm7428_vm7, %v10047_v11  ;;  %vm7598_vm6 = vmpackc.low %vm1675_vm13, %vm1674_vm3  ;;  %vm10527_vm7 = vcmp.eq.s32.totalorder %v10178_v15, %v6857_v59  ;;  %vm10528_vm3 = vcmp.eq.s32.totalorder %v10179_v5, %v6857_v59  ;;  %v674_v1 = vadd.f32 %v673_v6, %v660_v31 }
 0x2d0   :  { %v10524_v38 = vsel %vm7598_vm6, 4294967295, %v10523_v38  ;;  %vm7617_vm13 = vmpackc.low %vm10528_vm3, %vm10527_vm7  ;;  %vm2034_vm7 = vcmp.eq.s32.totalorder %v4832_v16, %v7290_v28  ;;  %vm2035_vm3 = vcmp.eq.s32.totalorder %v4835_v17, %v7290_v28  ;;  %v846_v31 = vpop.f32.mrf.mxu3 }
 0x2d1   :  { %4156 = vmatpush.bf16.msk.msrb.mxu2 %vm7439_vm9, %v10047_v11  ;;  %vm10525_vm9 = vcmp.eq.s32.totalorder %v10186_v42, %v6857_v59  ;;  %v10530_v27 = vsel %vm7617_vm13, 4294967295, %v10529_v27  ;;  %vm10534_vm13 = vcmp.eq.s32.totalorder %v5057_v8, %v7290_v28  ;;  %v688_v6 = vadd.f32 %v687_v34, %v674_v1  ;;  %v860_v34 = vpop.f32.mrf.mxu0  ;;  %v874_v48 = vpop.f32.mrf.mxu1 }
 0x2d2   :  { %4190 = vmatpush.bf16.msk.msrb.mxu0 %vm10522_vm4, %v10047_v11  ;;  %v1928_v23 = vsel %vm10525_vm9, 1.0, %v10195_v3  ;;  %vm10526_vm4 = vnez %v10498_v61  ;;  %vm2067_vm9 = vcmp.eq.s32.totalorder %v10408_v29, %v7290_v28  ;;  %vm7642_vm10 = vmpackc.low %vm2043_vm14, %vm10534_vm13  ;;  %vm2040_vm14 = vcmp.eq.s32.totalorder %v5117_v51, %v7290_v28  ;;  %v10565_v61 = vld [vmem:[#allocation38_spill] sm:$0xff] }
 0x2d3   :  { %4114 = vmatpush.bf16.msk.msrb.mxu3 %vm10526_vm4, %v10047_v11  ;;  %vm10531_vm4 = vcmp.eq.s32.totalorder %v10476_v7, %v6857_v59  ;;  %4148 = vmatpush.bf16.msk.msrb.mxu1 %vm7478_vm8, %v10047_v11  ;;  %v10536_v43 = vsel %vm7642_vm10, 4294967295, %v10535_v43  ;;  %v1953_v26 = vpack.c.bf16 %v1928_v23, %v1928_v23  ;;  %vm7656_vm8 = vmpackc.low %vm2067_vm9, %vm2066_vm15  ;;  %vm2041_vm13 = vcmp.eq.s32.totalorder %v5120_v52, %v7290_v28  ;;  %v832_v47 = vpop.f32.mrf.mxu2 }
 0x2d4   :  { %vm7628_vm6 = vmpackc.low %vm1870_vm12, %vm10531_vm4  ;;  %vm1867_vm12 = vcmp.eq.s32.totalorder %v10491_v36, %v6857_v59  ;;  %vm1868_vm4 = vcmp.eq.s32.totalorder %v10492_v44, %v6857_v59  ;;  %v691_v45 = vpack.c.bf16 %v688_v6, %v688_v6  ;;  %vm2032_vm9 = vcmp.eq.s32.totalorder %v4838_v18, %v7290_v28 }
 0x2d5   :  { %4158 = vmatpush.bf16.msk.msrb.mxu2 %vm7489_vm2, %v10047_v11  ;;  %vm7667_vm10 = vmpackc.low %vm2035_vm3, %vm2034_vm7  ;;  %vm2064_vm2 = vcmp.eq.s32.totalorder %v5099_v30, %v7290_v28  ;;  %vm10543_vm7 = vcmask 1043456   ;;  %v847_v46 = vadd.f32 %v846_v31, %v832_v47  ;;  %v10584_v1 = vmov 0 }
 0x2d6   :  { %4192 = vmatpush.bf16.msk.msrb.mxu0 %vm7503_vm1, %v10047_v11  ;;  %vm2065_vm1 = vcmp.eq.s32.totalorder %v10427_v35, %v7290_v28  ;;  %vm7675_vm15 = vmpackc.low %vm1868_vm4, %vm1867_vm12  ;;  %v1955_v23 = vsel %vm10543_vm7, %v1953_v26, 0  ;;  %vm1865_vm12 = vcmp.eq.s32.totalorder %v10083_v12, %v6857_v59  ;;  %vm1866_vm4 = vcmp.eq.s32.totalorder %v10169_v63, %v6857_v59 }
 0x2d7   :  { %4116 = vmatpush.bf16.msk.msrb.mxu3 %vm7523_vm5, %v10047_v11  ;;  %4150 = vmatpush.bf16.msk.msrb.mxu1 %vm7541_vm0, %v10047_v11  ;;  %vm7690_vm3 = vmpackc.low %vm2041_vm13, %vm2040_vm14  ;;  %vm10546_vm5 = vcmask 797696   ;;  %vm10547_vm0 = vnez %v10520_v13  ;;  %vm2038_vm13 = vcmp.eq.s32.totalorder %v10078_v62, %v7290_v28  ;;  %v861_v6 = vadd.f32 %v860_v34, %v847_v46  ;;  %v7753_v34 = vld [vmem:[%s9870_s3 + $0xa] ss:$0 sm:$0xff] }
 0x2d8   :  { %693 = vst.msk [vmem:[#allocation2 + $0xc] sm:$0xf] %vm10546_vm5, %v691_v45  ;;  %vm7711_vm14 = vmpackc.low %vm2065_vm1, %vm2064_vm2  ;;  %vm10550_vm5 = vnez %v10524_v38  ;;  %vm10551_vm2 = vcmp.eq.s32.totalorder %v4841_v19, %v7290_v28  ;;  %v10556_v45 = vld [vmem:[#allocation7_spill] sm:$0xff]  ;;  %v10597_v38 = vmov 0 }
 0x2d9   :  { %4160 = vmatpush.bf16.msk.msrb.mxu2 %vm7558_vm11, %v10047_v11  ;;  %vm2039_vm11 = vcmp.eq.s32.totalorder %v10391_v58, %v7290_v28  ;;  %vm7728_vm1 = vmpackc.low %vm10551_vm2, %vm2032_vm9  ;;  %vm2030_vm9 = vcmp.eq.s32.totalorder %v4844_v20, %v7290_v28  ;;  %v875_v31 = vadd.f32 %v874_v48, %v861_v6  ;;  %vm2037_vm2 = vcmp.eq.s32.totalorder %v10179_v5, %v7290_v28  ;;  %v848_v48 = vpop.f32.mrf.mxu3  ;;  %v862_v21 = vpop.f32.mrf.mxu0 }
 0x2da   :  { %4194 = vmatpush.bf16.msk.msrb.mxu0 %vm10547_vm0, %v10047_v11  ;;  %vm10557_vm0 = vnez %v10530_v27  ;;  %vm7758_vm7 = vmpackc.low %vm2039_vm11, %vm2038_vm13  ;;  %vm10560_vm13 = vnez %v10536_v43  ;;  %vm10561_vm11 = vcmp.eq.s32.totalorder %v5164_v4, %v7290_v28  ;;  %v10580_v5 = vmov 0 }
 0x2db   :  { %4118 = vmatpush.bf16.msk.msrb.mxu3 %vm10550_vm5, %v10047_v11  ;;  %vm7742_vm5 = vmpackc.low %vm1866_vm4, %vm1865_vm12  ;;  %4152 = vmatpush.bf16.msk.msrb.mxu1 %vm10557_vm0, %v10047_v11  ;;  %vm1864_vm4 = vcmp.eq.s32.totalorder %v10099_v60, %v6857_v59  ;;  %vm10562_vm0 = vcmp.eq.s32.totalorder %v5167_v54, %v7290_v28  ;;  %v879_v32 = vpack.c.bf16 %v875_v31, %v875_v31  ;;  %v834_v46 = vpop.f32.mrf.mxu2  ;;  %v10609_v43 = vmov 0 }
 0x2dc   :  { %vm7780_vm12 = vmpackc.low %vm10562_vm0, %vm10561_vm11  ;;  %v849_v31 = vadd.f32 %v848_v48, %v834_v46  ;;  %v876_v46 = vpop.f32.mrf.mxu1  ;;  %v10590_v48 = vmov 0 }
 0x2dd   :  { %4162 = vmatpush.bf16.msk.msrb.mxu2 %vm7628_vm6, %v10047_v11  ;;  %vm10576_vm6 = vcmp.eq.s32.totalorder %v10186_v42, %v7290_v28 }
 0x2de   :  { %4196 = vmatpush.bf16.msk.msrb.mxu0 %vm10560_vm13, %v10047_v11  ;;  %1804 = vmatmul.bf16.vlgmr.msrb.gmra.mxu3 %v10565_v61  ;;  %vm10566_vm13 = vcmp.eq.s32.totalorder %v10556_v45, %v7290_v28  ;;  %v2117_v6 = vsel %vm10576_vm6, 1.0, %v10195_v3  ;;  %vm2058_vm6 = vcmp.eq.s32.totalorder %v10476_v7, %v7290_v28  ;;  %v863_v26 = vadd.f32 %v862_v21, %v849_v31  ;;  %v10592_v31 = vld [vmem:[#allocation13_spill] sm:$0xff]  ;;  %v10593_v21 = vld [vmem:[#allocation14_spill] sm:$0xff] }
 0x2df   :  { %2006 = vmatpush.bf16.msra.mxu3 %v1955_v23  ;;  %4204 = vmatpush.bf16.msk.msra.mxu1 %vm7656_vm8, %v10047_v11  ;;  %vm7798_vm11 = vmpackc.low %vm10566_vm13, %vm2030_vm9  ;;  %vm10569_vm8 = vcmp.eq.s32.totalorder %v10098_v0, %v6857_v59  ;;  %vm10577_vm13 = vcmask 797696   ;;  %v2142_v13 = vpack.c.bf16 %v2117_v6, %v2117_v6  ;;  %v10595_v6 = vmov 0  ;;  %v10615_v59 = vld [vmem:[#allocation18_spill] sm:$0xff] }
 0x2e0   :  { %1979 = vmatmul.bf16.vlgmr.msrb.gmra.mxu1 %v10470_v25  ;;  %vm7816_vm9 = vmpackc.low %vm1864_vm4, %vm10569_vm8  ;;  %881 = vst.msk [vmem:[#allocation2 + $0x10] sm:$0xf] %vm10577_vm13, %v879_v32  ;;  %vm10583_vm13 = vcmp.eq.s32.totalorder %v10408_v29, %v7753_v34  ;;  %vm2224_vm4 = vcmp.eq.s32.totalorder %v4835_v17, %v7753_v34  ;;  %v877_v29 = vadd.f32 %v876_v46, %v863_v26  ;;  %v10613_v23 = vmov 0 }
 0x2e1   :  { %4164 = vmatpush.bf16.msk.msrb.mxu2 %vm7675_vm15, %v10047_v11  ;;  %vm2059_vm15 = vcmp.eq.s32.totalorder %v10477_v2, %v7290_v28  ;;  %v10630_v26 = vmov 0  ;;  %v10714_v46 = vmov 0 }
 0x2e2   :  { %4198 = vmatpush.bf16.msk.msrb.mxu0 %vm7690_vm3, %v10047_v11  ;;  %vm10582_vm3 = vcmp.eq.s32.totalorder %v4993_v56, %v7753_v34  ;;  %v880_v47 = vpack.c.bf16 %v877_v29, %v877_v29 }
 0x2e3   :  { %4172 = vmatpush.bf16.msk.msrb.mxu3 %vm7667_vm10, %v10047_v11  ;;  %vm10572_vm10 = vcmp.eq.s32.totalorder %v10178_v15, %v7290_v28  ;;  %4206 = vmatpush.bf16.msk.msra.mxu1 %vm7711_vm14, %v10047_v11  ;;  %vm10586_vm14 = vcmp.eq.s32.totalorder %v4850_v22, %v7290_v28 }
 0x2e4   :  { %vm7830_vm0 = vmpackc.low %vm2037_vm2, %vm10572_vm10  ;;  %vm10578_vm2 = vcmp.eq.s32.totalorder %v5211_v24, %v7290_v28  ;;  %vm10579_vm10 = vcmp.eq.s32.totalorder %v5214_v33, %v7290_v28 }
 0x2e5   :  { %vm7855_vm8 = vmpackc.low %vm10579_vm10, %vm10578_vm2  ;;  %vm2253_vm10 = vcmp.eq.s32.totalorder %v5099_v30, %v7753_v34  ;;  %4166 = vmatpush.bf16.msk.msrb.mxu2 %vm7742_vm5, %v10047_v11 }
 0x2e6   :  { %v10581_v5 = vsel %vm7855_vm8, 4294967295, %v10580_v5  ;;  %vm7872_vm2 = vmpackc.low %vm10583_vm13, %vm10582_vm3  ;;  %vm10587_vm3 = vcmp.eq.s32.totalorder %v10575_v14, %v7290_v28  ;;  %vm2026_vm8 = vcmp.eq.s32.totalorder %v10592_v31, %v7290_v28  ;;  %4200 = vmatpush.bf16.msk.msrb.mxu0 %vm7758_vm7, %v10047_v11  ;;  %vm2221_vm7 = vcmp.eq.s32.totalorder %v4838_v18, %v7753_v34 }
 0x2e7   :  { %v10585_v1 = vsel %vm7872_vm2, 4294967295, %v10584_v1  ;;  %4174 = vmatpush.bf16.msk.msrb.mxu3 %vm7728_vm1, %v10047_v11  ;;  %vm7889_vm13 = vmpackc.low %vm10587_vm3, %vm10586_vm14  ;;  %vm2254_vm2 = vcmp.eq.s32.totalorder %v10427_v35, %v7753_v34  ;;  %vm2027_vm14 = vcmp.eq.s32.totalorder %v10593_v21, %v7290_v28  ;;  %vm2056_vm3 = vcmp.eq.s32.totalorder %v10491_v36, %v7290_v28  ;;  %4208 = vmatpush.bf16.msk.msra.mxu1 %vm7780_vm12, %v10047_v11 }
 0x2e8   :  { %vm7897_vm1 = vmpackc.low %vm2059_vm15, %vm2058_vm6  ;;  %vm10594_vm6 = vcmp.eq.s32.totalorder %v4832_v16, %v7753_v34  ;;  %vm2251_vm12 = vcmp.eq.s32.totalorder %v5164_v4, %v7753_v34 }
 0x2e9   :  { %v10591_v48 = vsel %vm7897_vm1, 4294967295, %v10590_v48  ;;  %vm7914_vm15 = vmpackc.low %vm2224_vm4, %vm10594_vm6  ;;  %vm2057_vm1 = vcmp.eq.s32.totalorder %v10492_v44, %v7290_v28  ;;  %vm2222_vm4 = vcmp.eq.s32.totalorder %v4841_v19, %v7753_v34  ;;  %4168 = vmatpush.bf16.msk.msrb.mxu2 %vm7816_vm9, %v10047_v11  ;;  %vm10608_vm9 = vnez %v10585_v1 }
 0x2ea   :  { %v10596_v6 = vsel %vm7914_vm15, 4294967295, %v10595_v6  ;;  %vm7925_vm5 = vmpackc.low %vm2254_vm2, %vm2253_vm10  ;;  %vm2252_vm2 = vcmp.eq.s32.totalorder %v5167_v54, %v7753_v34  ;;  %vm10601_vm10 = vcmask 1043456   ;;  %vm2024_vm15 = vcmp.eq.s32.totalorder %v4910_v37, %v7290_v28  ;;  %4202 = vmatpush.bf16.msk.msrb.mxu0 %vm7830_vm0, %v10047_v11 }
 0x2eb   :  { %v10598_v38 = vsel %vm7925_vm5, 4294967295, %v10597_v38  ;;  %4176 = vmatpush.bf16.msk.msrb.mxu3 %vm7798_vm11, %v10047_v11  ;;  %vm7936_vm6 = vmpackc.low %vm2027_vm14, %vm2026_vm8  ;;  %v2144_v27 = vsel %vm10601_vm10, %v2142_v13, 0  ;;  %vm2025_vm11 = vcmp.eq.s32.totalorder %v4924_v39, %v7290_v28  ;;  %vm10604_vm8 = vcmask 797696  }
 0x2ec   :  { %vm7945_vm5 = vmpackc.low %vm2057_vm1, %vm2056_vm3  ;;  %882 = vst.msk [vmem:[#allocation2 + $0x14] sm:$0xf] %vm10604_vm8, %v880_v47  ;;  %vm2054_vm14 = vcmp.eq.s32.totalorder %v10083_v12, %v7290_v28  ;;  %vm2055_vm3 = vcmp.eq.s32.totalorder %v10169_v63, %v7290_v28  ;;  %vm10607_vm10 = vnez %v10581_v5  ;;  %vm2219_vm0 = vcmp.eq.s32.totalorder %v4844_v20, %v7753_v34  ;;  %1993 = vmatmul.bf16.vlgmr.msrb.gmra.mxu2 %v10565_v61  ;;  %v10629_v47 = vld [vmem:[#allocation20_spill] sm:$0xff] }
 0x2ed   :  { %vm7960_vm1 = vmpackc.low %vm2222_vm4, %vm2221_vm7  ;;  %4210 = vmatpush.bf16.msk.msra.mxu1 %vm10607_vm10, %v10047_v11  ;;  %vm2220_vm7 = vcmp.eq.s32.totalorder %v10556_v45, %v7753_v34  ;;  %2195 = vmatpush.bf16.msra.mxu2 %v2144_v27  ;;  %v10611_v5 = vmov 0  ;;  %v10624_v13 = vmov 0  ;;  %v10632_v27 = vld [vmem:[#allocation9_spill] sm:$0xff]  ;;  %v10649_v1 = vmov 0 }
 0x2ee   :  { %4254 = vmatpush.bf16.msk.msra.mxu0 %vm10608_vm9, %v10047_v11  ;;  %vm7974_vm8 = vmpackc.low %vm2252_vm2, %vm2251_vm12  ;;  %vm2249_vm12 = vcmp.eq.s32.totalorder %v5211_v24, %v7753_v34  ;;  %vm2250_vm2 = vcmp.eq.s32.totalorder %v5214_v33, %v7753_v34  ;;  %v10651_v33 = vmov 0 }
 0x2ef   :  { %v10610_v43 = vsel %vm7974_vm8, 4294967295, %v10609_v43  ;;  %4178 = vmatpush.bf16.msk.msrb.mxu3 %vm7889_vm13, %v10047_v11  ;;  %vm7988_vm4 = vmpackc.low %vm2025_vm11, %vm2024_vm15  ;;  %2168 = vmatmul.bf16.vlgmr.msrb.gmra.mxu0 %v10470_v25  ;;  %vm2022_vm13 = vcmp.eq.s32.totalorder %v10298_v9, %v7290_v28  ;;  %vm2023_vm15 = vcmp.eq.s32.totalorder %v10615_v59, %v7290_v28  ;;  %vm10616_vm11 = vnez %v10596_v6 }
 0x2f0   :  { %v10612_v5 = vsel %vm7988_vm4, 4294967295, %v10611_v5  ;;  %vm7998_vm10 = vmpackc.low %vm2055_vm3, %vm2054_vm14  ;;  %vm2052_vm14 = vcmp.eq.s32.totalorder %v10098_v0, %v7290_v28  ;;  %vm2053_vm3 = vcmp.eq.s32.totalorder %v10099_v60, %v7290_v28  ;;  %vm10620_vm4 = vcmask 64512  }
 0x2f1   :  { %v10614_v23 = vsel %vm7998_vm10, 4294967295, %v10613_v23  ;;  %4222 = vmatpush.bf16.msk.msrb.mxu2 %vm10616_vm11, %v10047_v11  ;;  %vm8009_vm9 = vmpackc.low %vm2220_vm7, %vm2219_vm0  ;;  %vm10619_vm10 = vnez %v10591_v48  ;;  %4169 = vmatmul.msk.bf16.vlgmr.msra.gmra.mxu3 %vm10620_vm4, %v5504_v55  ;;  %vm2217_vm0 = vcmp.eq.s32.totalorder %v4850_v22, %v7753_v34  ;;  %vm2218_vm7 = vcmp.eq.s32.totalorder %v10575_v14, %v7753_v34  ;;  %v8047_v48 = vld [vmem:[%s9870_s3 + $0xb] ss:$0 sm:$0xff] }
 0x2f2   :  { %4212 = vmatpush.bf16.msk.msra.mxu1 %vm10619_vm10, %v10047_v11  ;;  %vm8022_vm8 = vmpackc.low %vm2250_vm2, %vm2249_vm12  ;;  %vm10623_vm11 = vnez %v10598_v38  ;;  %vm2247_vm4 = vcmp.eq.s32.totalorder %v10476_v7, %v7753_v34  ;;  %vm2248_vm12 = vcmp.eq.s32.totalorder %v10477_v2, %v7753_v34  ;;  %v10626_v6 = vmov 0  ;;  %v10628_v38 = vld [vmem:[#allocation6_spill] sm:$0xff]  ;;  %v10644_v7 = vld [vmem:[#allocation12_spill] sm:$0xff] }
 0x2f3   :  { %4256 = vmatpush.bf16.msk.msra.mxu0 %vm10623_vm11, %v10047_v11  ;;  %4180 = vmatpush.bf16.msk.msrb.mxu3 %vm7936_vm6, %v10047_v11  ;;  %vm8036_vm10 = vmpackc.low %vm2023_vm15, %vm2022_vm13  ;;  %vm2020_vm6 = vcmp.eq.s32.totalorder %v10628_v38, %v7290_v28  ;;  %vm2021_vm13 = vcmp.eq.s32.totalorder %v10629_v47, %v7290_v28  ;;  %v10633_v2 = vld [vmem:[#allocation10_spill] sm:$0xff]  ;;  %vm2257_vm11 = vcmp.eq.s32.totalorder %v10186_v42, %v7753_v34  ;;  %v1035_v28 = vpop.f32.mrf.mxu2 }
 0x2f4   :  { %v10625_v13 = vsel %vm8036_vm10, 4294967295, %v10624_v13  ;;  %vm8049_vm2 = vmpackc.low %vm2053_vm3, %vm2052_vm14  ;;  %vm2239_vm14 = vcmp.eq.s32.totalorder %v10632_v27, %v7753_v34  ;;  %vm2240_vm3 = vcmp.eq.s32.totalorder %v10633_v2, %v7753_v34 }
 0x2f5   :  { %v10627_v6 = vsel %vm8049_vm2, 4294967295, %v10626_v6  ;;  %4224 = vmatpush.bf16.msk.msrb.mxu2 %vm7960_vm1, %v10047_v11  ;;  %vm8060_vm15 = vmpackc.low %vm2218_vm7, %vm2217_vm0  ;;  %vm2215_vm1 = vcmp.eq.s32.totalorder %v10592_v31, %v7753_v34  ;;  %vm2216_vm0 = vcmp.eq.s32.totalorder %v10593_v21, %v7753_v34  ;;  %vm10636_vm7 = vnez %v10610_v43 }
 0x2f6   :  { %v10631_v26 = vsel %vm8060_vm15, 4294967295, %v10630_v26  ;;  %4214 = vmatpush.bf16.msk.msra.mxu1 %vm7945_vm5, %v10047_v11  ;;  %vm8073_vm2 = vmpackc.low %vm2248_vm12, %vm2247_vm4  ;;  %vm10637_vm15 = vnez %v10612_v5  ;;  %vm2412_vm5 = vcmp.eq.s32.totalorder %v4832_v16, %v8047_v48  ;;  %vm2413_vm4 = vcmp.eq.s32.totalorder %v4835_v17, %v8047_v48  ;;  %v8229_v5 = vld [vmem:[%s9870_s3 + $0xc] ss:$0 sm:$0xff] }
 0x2f7   :  { %4258 = vmatpush.bf16.msk.msra.mxu0 %vm10636_vm7, %v10047_v11  ;;  %4182 = vmatpush.bf16.msk.msrb.mxu3 %vm10637_vm15, %v10047_v11  ;;  %vm8087_vm10 = vmpackc.low %vm2021_vm13, %vm2020_vm6  ;;  %v2306_v43 = vsel %vm2257_vm11, 1.0, %v10195_v3  ;;  %vm2245_vm7 = vcmp.eq.s32.totalorder %v10491_v36, %v7753_v34  ;;  %vm2246_vm6 = vcmp.eq.s32.totalorder %v10492_v44, %v7753_v34  ;;  %vm2237_vm15 = vcmp.eq.s32.totalorder %v10329_v57, %v7753_v34  ;;  %v8118_v36 = vpop.f32.mrf.mxu3 }
 0x2f8   :  { %vm8095_vm12 = vmpackc.low %vm2240_vm3, %vm2239_vm14  ;;  %vm2238_vm14 = vcmp.eq.s32.totalorder %v10644_v7, %v7753_v34  ;;  %vm10645_vm3 = vnez %v10614_v23  ;;  %v10646_v44 = vmov 0  ;;  %v2331_v23 = vpack.c.bf16 %v2306_v43, %v2306_v43 }
 0x2f9   :  { %4226 = vmatpush.bf16.msk.msrb.mxu2 %vm8009_vm9, %v10047_v11  ;;  %vm8107_vm13 = vmpackc.low %vm2216_vm0, %vm2215_vm1  ;;  %vm2213_vm9 = vcmp.eq.s32.totalorder %v4910_v37, %v7753_v34  ;;  %vm2214_vm1 = vcmp.eq.s32.totalorder %v4924_v39, %v7753_v34  ;;  %vm10648_vm0 = vnez %v10625_v13 }
 0x2fa   :  { %4216 = vmatpush.bf16.msk.msra.mxu1 %vm10645_vm3, %v10047_v11  ;;  %vm8120_vm11 = vmpackc.low %vm2413_vm4, %vm2412_vm5  ;;  %vm2410_vm5 = vcmp.eq.s32.totalorder %v4838_v18, %v8047_v48  ;;  %vm2411_vm4 = vcmp.eq.s32.totalorder %v4841_v19, %v8047_v48 }
 0x2fb   :  { %v10647_v44 = vsel %vm8120_vm11, 4294967295, %v10646_v44  ;;  %4260 = vmatpush.bf16.msk.msra.mxu0 %vm8022_vm8, %v10047_v11  ;;  %4184 = vmatpush.bf16.msk.msrb.mxu3 %vm10648_vm0, %v10047_v11  ;;  %vm8134_vm3 = vmpackc.low %vm2246_vm6, %vm2245_vm7  ;;  %vm2243_vm8 = vcmp.eq.s32.totalorder %v10083_v12, %v7753_v34  ;;  %vm2244_vm0 = vcmp.eq.s32.totalorder %v10169_v63, %v7753_v34  ;;  %vm10653_vm7 = vnez %v10631_v26  ;;  %v1021_v26 = vpop.f32.mrf.mxu1 }
 0x2fc   :  { %v10650_v1 = vsel %vm8134_vm3, 4294967295, %v10649_v1  ;;  %vm8142_vm11 = vmpackc.low %vm2238_vm14, %vm2237_vm15  ;;  %vm2235_vm15 = vcmp.eq.s32.totalorder %v4927_v40, %v7753_v34  ;;  %vm2236_vm14 = vcmp.eq.s32.totalorder %v4930_v41, %v7753_v34  ;;  %v10668_v63 = vmov 0 }
 0x2fd   :  { %v10652_v33 = vsel %vm8142_vm11, 4294967295, %v10651_v33  ;;  %4228 = vmatpush.bf16.msk.msrb.mxu2 %vm10653_vm7, %v10047_v11  ;;  %vm8153_vm6 = vmpackc.low %vm2214_vm1, %vm2213_vm9  ;;  %vm10656_vm11 = vnez %v10627_v6  ;;  %vm2211_vm9 = vcmp.eq.s32.totalorder %v10298_v9, %v7753_v34  ;;  %vm2409_vm7 = vcmp.eq.s32.totalorder %v10556_v45, %v8047_v48 }
 0x2fe   :  { %4218 = vmatpush.bf16.msk.msra.mxu1 %vm10656_vm11, %v10047_v11  ;;  %vm8164_vm3 = vmpackc.low %vm2411_vm4, %vm2410_vm5  ;;  %vm10659_vm11 = vcmask 1043456   ;;  %vm2408_vm4 = vcmp.eq.s32.totalorder %v4844_v20, %v8047_v48  ;;  %vm2446_vm1 = vcmp.eq.s32.totalorder %v10186_v42, %v8047_v48  ;;  %v10672_v12 = vmov 0 }
 0x2ff   :  { %4262 = vmatpush.bf16.msk.msra.mxu0 %vm8073_vm2, %v10047_v11  ;;  %4186 = vmatpush.bf16.msk.msrb.mxu3 %vm8087_vm10, %v10047_v11  ;;  %v2333_v6 = vsel %vm10659_vm11, %v2331_v23, 0  ;;  %vm8179_vm5 = vmpackc.low %vm2244_vm0, %vm2243_vm8  ;;  %vm10662_vm2 = vcmask 64512   ;;  %vm2241_vm8 = vcmp.eq.s32.totalorder %v10098_v0, %v7753_v34  ;;  %vm2242_vm0 = vcmp.eq.s32.totalorder %v10099_v60, %v7753_v34  ;;  %v8232_v23 = vpop.f32.mrf.mxu3 }
 0x300   :  { %4219 = vmatmul.msk.bf16.vlgmr.msra.gmra.mxu2 %vm10662_vm2, %v5504_v55  ;;  %vm8200_vm10 = vmpackc.low %vm2236_vm14, %vm2235_vm15  ;;  %vm2233_vm14 = vcmp.eq.s32.totalorder %v4945_v50, %v7753_v34  ;;  %vm2210_vm2 = vcmp.eq.s32.totalorder %v10629_v47, %v7753_v34  ;;  %vm10674_vm11 = vnez %v10652_v33 }
 0x301   :  { %2182 = vmatmul.bf16.vlgmr.msra.gmra.mxu1 %v10565_v61  ;;  %4230 = vmatpush.bf16.msk.msrb.mxu2 %vm8107_vm13, %v10047_v11  ;;  %vm8240_vm13 = vmpackc.low %vm2409_vm7, %vm2408_vm4  ;;  %vm10671_vm4 = vnez %v10650_v1  ;;  %v1036_v1 = vadd.f32 %v1035_v28, %v1021_v26 }
 0x302   :  { %2384 = vmatpush.bf16.msrb.mxu1 %v2333_v6  ;;  %2154 = vmatmul.bf16.vlgmr.msrb.gmra.mxu3 %v5477_v49  ;;  %v10669_v63 = vsel %vm8240_vm13, 4294967295, %v10668_v63  ;;  %v2495_v6 = vsel %vm2446_vm1, 1.0, %v10195_v3  ;;  %vm8264_vm7 = vmpackc.low %vm2242_vm0, %vm2241_vm8  ;;  %vm2406_vm1 = vcmp.eq.s32.totalorder %v4850_v22, %v8047_v48  ;;  %vm2428_vm0 = vcmp.eq.s32.totalorder %v10632_v27, %v8047_v48 }
 0x303   :  { %4238 = vmatpush.bf16.msk.msra.mxu3 %vm8095_vm12, %v10047_v11  ;;  %vm10665_vm12 = vcmp.eq.s32.totalorder %v10615_v59, %v7753_v34  ;;  %4264 = vmatpush.bf16.msk.msra.mxu0 %vm10671_vm4, %v10047_v11  ;;  %v10673_v12 = vsel %vm8264_vm7, 4294967295, %v10672_v12  ;;  %vm10675_vm4 = vcmp.eq.s32.totalorder %v4973_v53, %v7753_v34  ;;  %vm2429_vm7 = vcmp.eq.s32.totalorder %v10633_v2, %v8047_v48  ;;  %v1023_v26 = vpop.f32.mrf.mxu1 }
 0x304   :  { %vm8218_vm15 = vmpackc.low %vm10665_vm12, %vm2211_vm9  ;;  %vm2209_vm9 = vcmp.eq.s32.totalorder %v10628_v38, %v7753_v34  ;;  %vm10670_vm12 = vnez %v10647_v44  ;;  %v10676_v44 = vmov 0  ;;  %v2520_v60 = vpack.c.bf16 %v2495_v6, %v2495_v6 }
 0x305   :  { %vm8281_vm8 = vmpackc.low %vm10675_vm4, %vm2233_vm14  ;;  %4232 = vmatpush.bf16.msk.msrb.mxu2 %vm8153_vm6, %v10047_v11  ;;  %vm2601_vm14 = vcmp.eq.s32.totalorder %v4832_v16, %v8229_v5  ;;  %vm2602_vm4 = vcmp.eq.s32.totalorder %v4835_v17, %v8229_v5  ;;  %vm2231_vm13 = vcmp.eq.s32.totalorder %v5057_v8, %v7753_v34  ;;  %vm2232_vm6 = vcmp.eq.s32.totalorder %v5060_v10, %v7753_v34 }
 0x306   :  { %4272 = vmatpush.bf16.msk.msra.mxu1 %vm10670_vm12, %v10047_v11  ;;  %vm2407_vm12 = vcmp.eq.s32.totalorder %v10575_v14, %v8047_v48  ;;  %v10677_v44 = vsel %vm8281_vm8, 4294967295, %v10676_v44  ;;  %v1050_v43 = vadd.f32 %v8118_v36, %v1036_v1  ;;  %v1037_v36 = vpop.f32.mrf.mxu2 }
 0x307   :  { %4240 = vmatpush.bf16.msk.msra.mxu3 %vm10674_vm11, %v10047_v11  ;;  %vm8292_vm11 = vmpackc.low %vm2210_vm2, %vm2209_vm9  ;;  %4266 = vmatpush.bf16.msk.msra.mxu0 %vm8179_vm5, %v10047_v11  ;;  %vm2404_vm2 = vcmp.eq.s32.totalorder %v10592_v31, %v8047_v48  ;;  %vm2427_vm5 = vcmp.eq.s32.totalorder %v10644_v7, %v8047_v48  ;;  %v1063_v6 = vpop.f32.mrf.mxu3 }
 0x308   :  { %vm8300_vm8 = vmpackc.low %vm2407_vm12, %vm2406_vm1  ;;  %vm2405_vm1 = vcmp.eq.s32.totalorder %v10593_v21, %v8047_v48  ;;  %v1064_v29 = vadd.f32 %v1063_v6, %v1050_v43  ;;  %v1210_v6 = vpop.f32.mrf.mxu0 }
 0x309   :  { %vm8314_vm9 = vmpackc.low %vm2429_vm7, %vm2428_vm0  ;;  %4234 = vmatpush.bf16.msk.msrb.mxu2 %vm8218_vm15, %v10047_v11  ;;  %vm10686_vm7 = vcmask 1043456   ;;  %vm2599_vm0 = vcmp.eq.s32.totalorder %v4838_v18, %v8229_v5 }
 0x30a   :  { %4274 = vmatpush.bf16.msk.msra.mxu1 %vm8164_vm3, %v10047_v11  ;;  %vm8325_vm12 = vmpackc.low %vm2602_vm4, %vm2601_vm14  ;;  %vm2426_vm3 = vcmp.eq.s32.totalorder %v10329_v57, %v8047_v48  ;;  %v2522_v28 = vsel %vm10686_vm7, %v2520_v60, 0  ;;  %vm2600_vm14 = vcmp.eq.s32.totalorder %v4841_v19, %v8229_v5  ;;  %vm10692_vm7 = vnez %v10673_v12  ;;  %v10722_v60 = vld [vmem:[#allocation19_spill] sm:$0xff] }
 0x30b   :  { %4242 = vmatpush.bf16.msk.msra.mxu3 %vm8200_vm10, %v10047_v11  ;;  %vm8341_vm10 = vmpackc.low %vm2232_vm6, %vm2231_vm13  ;;  %vm2229_vm13 = vcmp.eq.s32.totalorder %v5117_v51, %v7753_v34  ;;  %vm10691_vm6 = vnez %v10669_v63  ;;  %4268 = vmatpush.bf16.msk.msra.mxu0 %vm10692_vm7, %v10047_v11  ;;  %vm10695_vm7 = vnez %v10677_v44  ;;  %v1038_v63 = vadd.f32 %v1037_v36, %v1023_v26  ;;  %v1224_v26 = vpop.f32.mrf.mxu1  ;;  %v10716_v36 = vld [vmem:[#allocation27_spill] sm:$0xff] }
 0x30c   :  { %vm8352_vm15 = vmpackc.low %vm2405_vm1, %vm2404_vm2  ;;  %vm2402_vm1 = vcmp.eq.s32.totalorder %v4910_v37, %v8047_v48  ;;  %v1068_v43 = vpack.c.bf16 %v1064_v29, %v1064_v29  ;;  %v10725_v44 = vmov 0 }
 0x30d   :  { %vm8372_vm2 = vmpackc.low %vm2427_vm5, %vm2426_vm3  ;;  %vm2424_vm3 = vcmp.eq.s32.totalorder %v4927_v40, %v8047_v48  ;;  %4236 = vmatpush.bf16.msk.msrb.mxu2 %vm8292_vm11, %v10047_v11  ;;  %vm2598_vm5 = vcmp.eq.s32.totalorder %v10556_v45, %v8229_v5  ;;  %v1052_v13 = vadd.f32 %v8232_v23, %v1038_v63  ;;  %v10763_v63 = vmov 0 }
 0x30e   :  { %4276 = vmatpush.bf16.msk.msra.mxu1 %vm10691_vm6, %v10047_v11  ;;  %vm2403_vm6 = vcmp.eq.s32.totalorder %v4924_v39, %v8047_v48  ;;  %vm8386_vm4 = vmpackc.low %vm2600_vm14, %vm2599_vm0  ;;  %vm10698_vm0 = vcmp.eq.s32.totalorder %v5120_v52, %v7753_v34  ;;  %2371 = vmatmul.bf16.vlgmr.msra.gmra.mxu0 %v10565_v61  ;;  %v1238_v32 = vpop.f32.mrf.mxu2 }
 0x30f   :  { %4244 = vmatpush.bf16.msk.msra.mxu3 %vm10695_vm7, %v10047_v11  ;;  %2573 = vmatpush.bf16.msrb.mxu0 %v2522_v28  ;;  %vm8403_vm14 = vmpackc.low %vm10698_vm0, %vm2229_vm13  ;;  %vm2227_vm13 = vcmp.eq.s32.totalorder %v10078_v62, %v7753_v34  ;;  %vm2228_vm0 = vcmp.eq.s32.totalorder %v10391_v58, %v7753_v34  ;;  %vm10703_vm7 = vcmask 797696   ;;  %v1065_v23 = vpop.f32.mrf.mxu3 }
 0x310   :  { %vm8418_vm11 = vmpackc.low %vm2403_vm6, %vm2402_vm1  ;;  %1070 = vst.msk [vmem:[#allocation2 + $0x18] sm:$0xf] %vm10703_vm7, %v1068_v43  ;;  %2343 = vmatmul.bf16.vlgmr.msrb.gmra.mxu2 %v5477_v49  ;;  %vm10710_vm6 = vcmask 64512   ;;  %v1066_v29 = vadd.f32 %v1065_v23, %v1052_v13  ;;  %v1225_v43 = vadd.f32 %v1224_v26, %v1210_v6  ;;  %v10754_v26 = vld [vmem:[#allocation25_spill] sm:$0xff]  ;;  %v8720_v23 = vld [vmem:[%s9870_s3 + $0xd] ss:$0 sm:$0xff] }
 0x311   :  { %4288 = vmatpush.bf16.msk.msra.mxu2 %vm8314_vm9, %v10047_v11  ;;  %vm10704_vm9 = vcmp.eq.s32.totalorder %v4930_v41, %v8047_v48  ;;  %4269 = vmatmul.msk.bf16.vlgmr.msrb.gmra.mxu1 %vm10710_vm6, %v5504_v55  ;;  %vm10713_vm6 = vcmp.eq.s32.totalorder %v10298_v9, %v8047_v48 }
 0x312   :  { %4278 = vmatpush.bf16.msk.msra.mxu1 %vm8300_vm8, %v10047_v11  ;;  %vm8439_vm1 = vmpackc.low %vm10704_vm9, %vm2424_vm3  ;;  %vm2401_vm8 = vcmp.eq.s32.totalorder %v10615_v59, %v8047_v48  ;;  %vm2422_vm3 = vcmp.eq.s32.totalorder %v4945_v50, %v8047_v48  ;;  %v1069_v12 = vpack.c.bf16 %v1066_v29, %v1066_v29  ;;  %v1239_v33 = vadd.f32 %v1238_v32, %v1225_v43  ;;  %v10767_v32 = vld [vmem:[#allocation28_spill] sm:$0xff] }
 0x313   :  { %4322 = vmatpush.bf16.msk.msra.mxu0 %vm8325_vm12, %v10047_v11  ;;  %4246 = vmatpush.bf16.msk.msra.mxu3 %vm8341_vm10, %v10047_v11  ;;  %vm10707_vm12 = vcmp.eq.s32.totalorder %v4844_v20, %v8229_v5  ;;  %vm8471_vm10 = vmpackc.low %vm2228_vm0, %vm2227_vm13  ;;  %vm2225_vm13 = vcmp.eq.s32.totalorder %v10178_v15, %v7753_v34  ;;  %vm2226_vm0 = vcmp.eq.s32.totalorder %v10716_v36, %v7753_v34  ;;  %v1226_v6 = vpop.f32.mrf.mxu1  ;;  %v1212_v34 = vpop.f32.mrf.mxu0 }
 0x314   :  { %vm8454_vm7 = vmpackc.low %vm2598_vm5, %vm10707_vm12  ;;  %vm2595_vm5 = vcmp.eq.s32.totalorder %v4850_v22, %v8229_v5  ;;  %vm2596_vm12 = vcmp.eq.s32.totalorder %v10575_v14, %v8229_v5  ;;  %v1227_v43 = vadd.f32 %v1226_v6, %v1212_v34 }
 0x315   :  { %4290 = vmatpush.bf16.msk.msra.mxu2 %vm8372_vm2, %v10047_v11  ;;  %vm8485_vm9 = vmpackc.low %vm2401_vm8, %vm10713_vm6  ;;  %vm10717_vm2 = vcmp.eq.s32.totalorder %v4973_v53, %v8047_v48  ;;  %vm2398_vm6 = vcmp.eq.s32.totalorder %v10628_v38, %v8047_v48 }
 0x316   :  { %v10715_v46 = vsel %vm8485_vm9, 4294967295, %v10714_v46  ;;  %4280 = vmatpush.bf16.msk.msra.mxu1 %vm8352_vm15, %v10047_v11  ;;  %vm8505_vm8 = vmpackc.low %vm10717_vm2, %vm2422_vm3  ;;  %vm2399_vm15 = vcmp.eq.s32.totalorder %v10629_v47, %v8047_v48  ;;  %vm2445_vm2 = vcmp.eq.s32.totalorder %v10722_v60, %v8047_v48  ;;  %vm10727_vm3 = vcmask 797696   ;;  %v1240_v13 = vpop.f32.mrf.mxu2 }
 0x317   :  { %4324 = vmatpush.bf16.msk.msra.mxu0 %vm8386_vm4, %v10047_v11  ;;  %4248 = vmatpush.bf16.msk.msra.mxu3 %vm8403_vm14, %v10047_v11  ;;  %vm8519_vm4 = vmpackc.low %vm2596_vm12, %vm2595_vm5  ;;  %vm2420_vm14 = vcmp.eq.s32.totalorder %v5057_v8, %v8047_v48  ;;  %vm2421_vm5 = vcmp.eq.s32.totalorder %v5060_v10, %v8047_v48  ;;  %1071 = vst.msk [vmem:[#allocation2 + $0x1c] sm:$0xf] %vm10727_vm3, %v1069_v12  ;;  %v1252_v28 = vpop.f32.mrf.mxu3 }
 0x318   :  { %vm8527_vm9 = vmpackc.low %vm2226_vm0, %vm2225_vm13  ;;  %vm2593_vm13 = vcmp.eq.s32.totalorder %v10592_v31, %v8229_v5  ;;  %vm2594_vm0 = vcmp.eq.s32.totalorder %v10593_v21, %v8229_v5  ;;  %vm2618_vm3 = vcmp.eq.s32.totalorder %v10633_v2, %v8229_v5  ;;  %v1253_v29 = vadd.f32 %v1252_v28, %v1239_v33  ;;  %v10789_v28 = vld [vmem:[#allocation32_spill] sm:$0xff] }
 0x319   :  { %4292 = vmatpush.bf16.msk.msra.mxu2 %vm8439_vm1, %v10047_v11  ;;  %vm8538_vm12 = vmpackc.low %vm2399_vm15, %vm2398_vm6  ;;  %vm10728_vm1 = vcmp.eq.s32.totalorder %v4993_v56, %v8047_v48  ;;  %vm2617_vm15 = vcmp.eq.s32.totalorder %v10632_v27, %v8229_v5 }
 0x31a   :  { %v10726_v44 = vsel %vm8538_vm12, 4294967295, %v10725_v44  ;;  %4282 = vmatpush.bf16.msk.msra.mxu1 %vm8418_vm11, %v10047_v11  ;;  %vm8556_vm6 = vmpackc.low %vm2445_vm2, %vm10728_vm1  ;;  %vm2443_vm2 = vcmp.eq.s32.totalorder %v10427_v35, %v8047_v48  ;;  %vm2419_vm12 = vcmp.eq.s32.totalorder %v5120_v52, %v8047_v48  ;;  %v1257_v12 = vpack.c.bf16 %v1253_v29, %v1253_v29 }
 0x31b   :  { %4326 = vmatpush.bf16.msk.msra.mxu0 %vm8454_vm7, %v10047_v11  ;;  %4250 = vmatpush.bf16.msk.msra.mxu3 %vm8471_vm10, %v10047_v11  ;;  %vm8573_vm11 = vmpackc.low %vm2421_vm5, %vm2420_vm14  ;;  %vm2442_vm7 = vcmp.eq.s32.totalorder %v5099_v30, %v8047_v48  ;;  %vm2418_vm10 = vcmp.eq.s32.totalorder %v5117_v51, %v8047_v48  ;;  %vm2591_vm5 = vcmp.eq.s32.totalorder %v4910_v37, %v8229_v5 }
 0x31c   :  { %vm8581_vm1 = vmpackc.low %vm2594_vm0, %vm2593_vm13  ;;  %vm2592_vm13 = vcmp.eq.s32.totalorder %v4924_v39, %v8229_v5  ;;  %vm10737_vm0 = vnez %v10715_v46  ;;  %v10778_v46 = vld [vmem:[#allocation30_spill] sm:$0xff] }
 0x31d   :  { %4294 = vmatpush.bf16.msk.msra.mxu2 %vm8505_vm8, %v10047_v11  ;;  %vm8592_vm14 = vmpackc.low %vm2618_vm3, %vm2617_vm15  ;;  %vm2615_vm15 = vcmp.eq.s32.totalorder %v10329_v57, %v8229_v5  ;;  %vm2616_vm3 = vcmp.eq.s32.totalorder %v10644_v7, %v8229_v5 }
 0x31e   :  { %4284 = vmatpush.bf16.msk.msra.mxu1 %vm10737_vm0, %v10047_v11  ;;  %vm8606_vm8 = vmpackc.low %vm2443_vm2, %vm2442_vm7  ;;  %vm2441_vm7 = vcmp.eq.s32.totalorder %v5167_v54, %v8047_v48  ;;  %vm10747_vm2 = vcmask 797696  }
 0x31f   :  { %4328 = vmatpush.bf16.msk.msra.mxu0 %vm8519_vm4, %v10047_v11  ;;  %4252 = vmatpush.bf16.msk.msra.mxu3 %vm8527_vm9, %v10047_v11  ;;  %vm8620_vm0 = vmpackc.low %vm2419_vm12, %vm2418_vm10  ;;  %vm2440_vm4 = vcmp.eq.s32.totalorder %v5164_v4, %v8047_v48  ;;  %vm2416_vm12 = vcmp.eq.s32.totalorder %v10078_v62, %v8047_v48  ;;  %vm10744_vm10 = vcmask 64512   ;;  %1259 = vst.msk [vmem:[#allocation2 + $0x20] sm:$0xf] %vm10747_vm2, %v1257_v12  ;;  %v1254_v6 = vpop.f32.mrf.mxu3 }
 0x320   :  { %vm8637_vm9 = vmpackc.low %vm2592_vm13, %vm2591_vm5  ;;  %4319 = vmatmul.msk.bf16.vlgmr.msrb.gmra.mxu0 %vm10744_vm10, %v5504_v55  ;;  %vm2589_vm5 = vcmp.eq.s32.totalorder %v10298_v9, %v8229_v5  ;;  %vm2590_vm13 = vcmp.eq.s32.totalorder %v10615_v59, %v8229_v5  ;;  %vm10748_vm10 = vnez %v10726_v44  ;;  %v1241_v44 = vadd.f32 %v1240_v13, %v1227_v43  ;;  %v10768_v13 = vld [vmem:[#allocation29_spill] sm:$0xff] }
 0x321   :  { %4296 = vmatpush.bf16.msk.msra.mxu2 %vm8573_vm11, %v10047_v11  ;;  %vm8674_vm11 = vmpackc.low %vm2441_vm7, %vm2440_vm4  ;;  %vm2438_vm7 = vcmp.eq.s32.totalorder %v5211_v24, %v8047_v48  ;;  %vm2439_vm2 = vcmp.eq.s32.totalorder %v10754_v26, %v8047_v48 }
 0x322   :  { %4286 = vmatpush.bf16.msk.msra.mxu1 %vm10748_vm10, %v10047_v11  ;;  %2357 = vmatmul.bf16.vlgmr.msra.gmra.mxu3 %v10470_v25  ;;  %vm2415_vm10 = vcmp.eq.s32.totalorder %v10716_v36, %v8047_v48  ;;  %v1255_v1 = vadd.f32 %v1254_v6, %v1241_v44  ;;  %v1413_v44 = vpop.f32.mrf.mxu0  ;;  %v1427_v6 = vpop.f32.mrf.mxu1 }
 0x323   :  { %4304 = vmatpush.bf16.msk.msrb.mxu3 %vm8556_vm6, %v10047_v11  ;;  %vm8653_vm6 = vmpackc.low %vm2616_vm3, %vm2615_vm15  ;;  %4330 = vmatpush.bf16.msk.msra.mxu0 %vm8581_vm1, %v10047_v11  ;;  %vm2613_vm15 = vcmp.eq.s32.totalorder %v4927_v40, %v8229_v5  ;;  %vm2614_vm3 = vcmp.eq.s32.totalorder %v4930_v41, %v8229_v5  ;;  %vm10751_vm1 = vcmp.eq.s32.totalorder %v10391_v58, %v8047_v48 }
 0x324   :  { %vm8692_vm4 = vmpackc.low %vm10751_vm1, %vm2416_vm12  ;;  %vm2414_vm12 = vcmp.eq.s32.totalorder %v10178_v15, %v8047_v48  ;;  %vm2633_vm1 = vcmp.eq.s32.totalorder %v4993_v56, %v8229_v5  ;;  %v1258_v12 = vpack.c.bf16 %v1255_v1, %v1255_v1 }
 0x325   :  { %2532 = vmatmul.bf16.vlgmr.msra.gmra.mxu1 %v5477_v49  ;;  %4298 = vmatpush.bf16.msk.msra.mxu2 %vm8620_vm0, %v10047_v11  ;;  %vm8746_vm0 = vmpackc.low %vm2439_vm2, %vm2438_vm7  ;;  %vm2634_vm7 = vcmp.eq.s32.totalorder %v10722_v60, %v8229_v5 }
 0x326   :  { %4338 = vmatpush.bf16.msk.msrb.mxu1 %vm8592_vm14, %v10047_v11  ;;  %vm8709_vm14 = vmpackc.low %vm2590_vm13, %vm2589_vm5  ;;  %vm2587_vm5 = vcmp.eq.s32.totalorder %v10628_v38, %v8229_v5  ;;  %vm2588_vm13 = vcmp.eq.s32.totalorder %v10629_v47, %v8229_v5 }
 0x327   :  { %4306 = vmatpush.bf16.msk.msrb.mxu3 %vm8606_vm8, %v10047_v11  ;;  %vm8732_vm8 = vmpackc.low %vm2614_vm3, %vm2613_vm15  ;;  %4332 = vmatpush.bf16.msk.msra.mxu0 %vm8637_vm9, %v10047_v11  ;;  %vm2611_vm15 = vcmp.eq.s32.totalorder %v4945_v50, %v8229_v5  ;;  %vm2612_vm3 = vcmp.eq.s32.totalorder %v4973_v53, %v8229_v5  ;;  %v1399_v29 = vpop.f32.mrf.mxu3 }
 0x328   :  { %vm8760_vm9 = vmpackc.low %vm2415_vm10, %vm2414_vm12  ;;  %vm2807_vm12 = vcmp.eq.s32.totalorder %v10633_v2, %v8720_v23  ;;  %v1414_v34 = vadd.f32 %v1413_v44, %v1399_v29 }
 0x329   :  { %vm8771_vm2 = vmpackc.low %vm2588_vm13, %vm2587_vm5  ;;  %4300 = vmatpush.bf16.msk.msra.mxu2 %vm8692_vm4, %v10047_v11  ;;  %vm2437_vm5 = vcmp.eq.s32.totalorder %v10768_v13, %v8047_v48  ;;  %vm10769_vm13 = vcmask 797696   ;;  %vm2609_vm4 = vcmp.eq.s32.totalorder %v5057_v8, %v8229_v5 }
 0x32a   :  { %4340 = vmatpush.bf16.msk.msrb.mxu1 %vm8653_vm6, %v10047_v11  ;;  %v10764_v63 = vsel %vm8771_vm2, 4294967295, %v10763_v63  ;;  %vm2806_vm6 = vcmp.eq.s32.totalorder %v10632_v27, %v8720_v23  ;;  %vm8782_vm10 = vmpackc.low %vm2612_vm3, %vm2611_vm15  ;;  %1260 = vst.msk [vmem:[#allocation2 + $0x24] sm:$0xf] %vm10769_vm13, %v1258_v12  ;;  %vm2610_vm15 = vcmp.eq.s32.totalorder %v5060_v10, %v8229_v5  ;;  %v10779_v12 = vld [vmem:[#allocation31_spill] sm:$0xff]  ;;  %vm2607_vm13 = vcmp.eq.s32.totalorder %v5117_v51, %v8229_v5 }
 0x32b   :  { %4308 = vmatpush.bf16.msk.msrb.mxu3 %vm8674_vm11, %v10047_v11  ;;  %vm2436_vm11 = vcmp.eq.s32.totalorder %v10767_v32, %v8047_v48  ;;  %4334 = vmatpush.bf16.msk.msra.mxu0 %vm8709_vm14, %v10047_v11  ;;  %vm8794_vm2 = vmpackc.low %vm2634_vm7, %vm2633_vm1  ;;  %vm2631_vm14 = vcmp.eq.s32.totalorder %v5099_v30, %v8229_v5  ;;  %vm2632_vm1 = vcmp.eq.s32.totalorder %v10427_v35, %v8229_v5 }
 0x32c   :  { %vm8805_vm3 = vmpackc.low %vm2807_vm12, %vm2806_vm6  ;;  %vm2805_vm6 = vcmp.eq.s32.totalorder %v10644_v7, %v8720_v23  ;;  %v1428_v43 = vadd.f32 %v1427_v6, %v1414_v34  ;;  %v10790_v6 = vld [vmem:[#allocation33_spill] sm:$0xff] }
 0x32d   :  { %vm8816_vm7 = vmpackc.low %vm2437_vm5, %vm2436_vm11  ;;  %4302 = vmatpush.bf16.msk.msra.mxu2 %vm8760_vm9, %v10047_v11  ;;  %vm2435_vm11 = vcmp.eq.s32.totalorder %v10779_v12, %v8047_v48  ;;  %vm10780_vm5 = vnez %v10764_v63  ;;  %v1441_v63 = vpop.f32.mrf.mxu2 }
 0x32e   :  { %4342 = vmatpush.bf16.msk.msrb.mxu1 %vm8732_vm8, %v10047_v11  ;;  %vm2804_vm8 = vcmp.eq.s32.totalorder %v10329_v57, %v8720_v23  ;;  %vm8827_vm12 = vmpackc.low %vm2610_vm15, %vm2609_vm4  ;;  %vm2608_vm4 = vcmp.eq.s32.totalorder %v5120_v52, %v8229_v5  ;;  %vm2629_vm15 = vcmp.eq.s32.totalorder %v5164_v4, %v8229_v5  ;;  %v1442_v29 = vadd.f32 %v1441_v63, %v1428_v43  ;;  %v1415_v43 = vpop.f32.mrf.mxu0 }
 0x32f   :  { %4310 = vmatpush.bf16.msk.msrb.mxu3 %vm8746_vm0, %v10047_v11  ;;  %vm2434_vm0 = vcmp.eq.s32.totalorder %v10778_v46, %v8047_v48  ;;  %4336 = vmatpush.bf16.msk.msra.mxu0 %vm10780_vm5, %v10047_v11  ;;  %vm8844_vm9 = vmpackc.low %vm2632_vm1, %vm2631_vm14  ;;  %vm2802_vm14 = vcmp.eq.s32.totalorder %v4927_v40, %v8720_v23  ;;  %vm2803_vm1 = vcmp.eq.s32.totalorder %v4930_v41, %v8720_v23  ;;  %v1401_v41 = vpop.f32.mrf.mxu3  ;;  %v10800_v40 = vld [vmem:[#allocation35_spill] sm:$0xff] }
 0x330   :  { %2546 = vmatmul.bf16.vlgmr.msra.gmra.mxu2 %v10470_v25  ;;  %vm2605_vm5 = vcmp.eq.s32.totalorder %v10078_v62, %v8229_v5  ;;  %v1446_v63 = vpack.c.bf16 %v1442_v29, %v1442_v29  ;;  %v10799_v29 = vld [vmem:[#allocation34_spill] sm:$0xff] }
 0x331   :  { %4354 = vmatpush.bf16.msk.msrb.mxu2 %vm8794_vm2, %v10047_v11  ;;  %vm8864_vm2 = vmpackc.low %vm2805_vm6, %vm2804_vm8  ;;  %vm2635_vm8 = vcmp.eq.s32.totalorder %v10186_v42, %v8229_v5  ;;  %vm2432_vm6 = vcmp.eq.s32.totalorder %v10789_v28, %v8047_v48 }
 0x332   :  { %4344 = vmatpush.bf16.msk.msrb.mxu1 %vm8782_vm10, %v10047_v11  ;;  %vm2630_vm10 = vcmp.eq.s32.totalorder %v5167_v54, %v8229_v5  ;;  %2721 = vmatmul.bf16.vlgmr.msra.gmra.mxu0 %v5477_v49  ;;  %v2684_v1 = vsel %vm2635_vm8, 1.0, %v10195_v3  ;;  %vm2603_vm8 = vcmp.eq.s32.totalorder %v10178_v15, %v8229_v5  ;;  %v1416_v49 = vadd.f32 %v1415_v43, %v1401_v41 }
 0x333   :  { %4388 = vmatpush.bf16.msk.msrb.mxu0 %vm8805_vm3, %v10047_v11  ;;  %4312 = vmatpush.bf16.msk.msrb.mxu3 %vm8816_vm7, %v10047_v11  ;;  %vm8884_vm3 = vmpackc.low %vm2435_vm11, %vm2434_vm0  ;;  %vm2433_vm0 = vcmp.eq.s32.totalorder %v10790_v6, %v8047_v48  ;;  %v2709_v57 = vpack.c.bf16 %v2684_v1, %v2684_v1 }
 0x334   :  { %vm8899_vm7 = vmpackc.low %vm2608_vm4, %vm2607_vm13  ;;  %vm2606_vm13 = vcmp.eq.s32.totalorder %v10391_v58, %v8229_v5  ;;  %vm2627_vm4 = vcmp.eq.s32.totalorder %v5211_v24, %v8229_v5 }
 0x335   :  { %4356 = vmatpush.bf16.msk.msrb.mxu2 %vm8844_vm9, %v10047_v11  ;;  %vm8913_vm11 = vmpackc.low %vm2630_vm10, %vm2629_vm15  ;;  %vm2628_vm15 = vcmp.eq.s32.totalorder %v10754_v26, %v8229_v5  ;;  %vm2801_vm10 = vcmp.eq.s32.totalorder %v4973_v53, %v8720_v23 }
 0x336   :  { %4346 = vmatpush.bf16.msk.msrb.mxu1 %vm8827_vm12, %v10047_v11  ;;  %vm8930_vm9 = vmpackc.low %vm2803_vm1, %vm2802_vm14  ;;  %vm2431_vm1 = vcmp.eq.s32.totalorder %v10800_v40, %v8047_v48  ;;  %v1616_v44 = vpop.f32.mrf.mxu0 }
 0x337   :  { %4390 = vmatpush.bf16.msk.msrb.mxu0 %vm8864_vm2, %v10047_v11  ;;  %4314 = vmatpush.bf16.msk.msrb.mxu3 %vm8884_vm3, %v10047_v11  ;;  %vm8945_vm12 = vmpackc.low %vm2433_vm0, %vm2432_vm6  ;;  %vm2800_vm2 = vcmp.eq.s32.totalorder %v4945_v50, %v8720_v23  ;;  %vm2430_vm3 = vcmp.eq.s32.totalorder %v10799_v29, %v8047_v48  ;;  %vm10801_vm6 = vcmask 797696  }
 0x338   :  { %vm8956_vm14 = vmpackc.low %vm2606_vm13, %vm2605_vm5  ;;  %1448 = vst.msk [vmem:[#allocation2 + $0x28] sm:$0xf] %vm10801_vm6, %v1446_v63  ;;  %vm2604_vm5 = vcmp.eq.s32.totalorder %v10716_v36, %v8229_v5  ;;  %v1429_v63 = vpop.f32.mrf.mxu1  ;;  %vm2625_vm13 = vcmp.eq.s32.totalorder %v10767_v32, %v8229_v5  ;;  %vm2791_vm6 = vcmp.eq.s32.totalorder %v4835_v17, %v8720_v23 }
 0x339   :  { %4358 = vmatpush.bf16.msk.msrb.mxu2 %vm8913_vm11, %v10047_v11  ;;  %vm8976_vm0 = vmpackc.low %vm2628_vm15, %vm2627_vm4  ;;  %v1430_v0 = vadd.f32 %v1429_v63, %v1416_v49  ;;  %vm2798_vm4 = vcmp.eq.s32.totalorder %v5057_v8, %v8720_v23  ;;  %vm2799_vm15 = vcmp.eq.s32.totalorder %v5060_v10, %v8720_v23  ;;  %v1443_v49 = vpop.f32.mrf.mxu2 }
 0x33a   :  { %4348 = vmatpush.bf16.msk.msrb.mxu1 %vm8899_vm7, %v10047_v11  ;;  %vm8994_vm11 = vmpackc.low %vm2801_vm10, %vm2800_vm2  ;;  %vm2626_vm7 = vcmp.eq.s32.totalorder %v10768_v13, %v8229_v5  ;;  %vm2822_vm2 = vcmp.eq.s32.totalorder %v4993_v56, %v8720_v23  ;;  %vm2823_vm10 = vcmp.eq.s32.totalorder %v10722_v60, %v8720_v23 }
 0x33b   :  { %4392 = vmatpush.bf16.msk.msrb.mxu0 %vm8930_vm9, %v10047_v11  ;;  %4316 = vmatpush.bf16.msk.msrb.mxu3 %vm8945_vm12, %v10047_v11  ;;  %vm9011_vm9 = vmpackc.low %vm2431_vm1, %vm2430_vm3  ;;  %v1444_v48 = vadd.f32 %v1443_v49, %v1430_v0  ;;  %vm10812_vm1 = vcmask 1043456  }
 0x33c   :  { %vm9022_vm12 = vmpackc.low %vm2604_vm5, %vm2603_vm8  ;;  %v2711_v33 = vsel %vm10812_vm1, %v2709_v57, 0  ;;  %vm2790_vm8 = vcmp.eq.s32.totalorder %v4832_v16, %v8720_v23  ;;  %vm2623_vm5 = vcmp.eq.s32.totalorder %v10778_v46, %v8229_v5  ;;  %vm2788_vm1 = vcmp.eq.s32.totalorder %v4838_v18, %v8720_v23 }
 0x33d   :  { %4360 = vmatpush.bf16.msk.msrb.mxu2 %vm8976_vm0, %v10047_v11  ;;  %vm9033_vm3 = vmpackc.low %vm2626_vm7, %vm2625_vm13  ;;  %vm2624_vm13 = vcmp.eq.s32.totalorder %v10779_v12, %v8229_v5  ;;  %v1447_v57 = vpack.c.bf16 %v1444_v48, %v1444_v48  ;;  %vm2797_vm7 = vcmp.eq.s32.totalorder %v5120_v52, %v8720_v23  ;;  %v9148_v48 = vld [vmem:[%s9870_s3 + $0xe] ss:$0 sm:$0xff] }
 0x33e   :  { %4350 = vmatpush.bf16.msk.msrb.mxu1 %vm8956_vm14, %v10047_v11  ;;  %vm9048_vm0 = vmpackc.low %vm2799_vm15, %vm2798_vm4  ;;  %vm2821_vm15 = vcmp.eq.s32.totalorder %v10427_v35, %v8720_v23 }
 0x33f   :  { %4394 = vmatpush.bf16.msk.msrb.mxu0 %vm8994_vm11, %v10047_v11  ;;  %4318 = vmatpush.bf16.msk.msrb.mxu3 %vm9011_vm9, %v10047_v11  ;;  %vm9062_vm14 = vmpackc.low %vm2823_vm10, %vm2822_vm2  ;;  %vm2796_vm11 = vcmp.eq.s32.totalorder %v5117_v51, %v8720_v23  ;;  %vm2820_vm9 = vcmp.eq.s32.totalorder %v5099_v30, %v8720_v23  ;;  %vm10819_vm2 = vcmask 797696  }
 0x340   :  { %vm9070_vm4 = vmpackc.low %vm2791_vm6, %vm2790_vm8  ;;  %1449 = vst.msk [vmem:[#allocation2 + $0x2c] sm:$0xf] %vm10819_vm2, %v1447_v57  ;;  %vm2789_vm8 = vcmp.eq.s32.totalorder %v4841_v19, %v8720_v23  ;;  %vm2824_vm6 = vcmp.eq.s32.totalorder %v10186_v42, %v8720_v23  ;;  %vm2787_vm2 = vcmp.eq.s32.totalorder %v10556_v45, %v8720_v23  ;;  %v1602_v2 = vpop.f32.mrf.mxu3 }
 0x341   :  { %4362 = vmatpush.bf16.msk.msrb.mxu2 %vm9033_vm3, %v10047_v11  ;;  %vm9082_vm10 = vmpackc.low %vm2624_vm13, %vm2623_vm5  ;;  %vm2621_vm5 = vcmp.eq.s32.totalorder %v10789_v28, %v8229_v5  ;;  %vm2622_vm13 = vcmp.eq.s32.totalorder %v10790_v6, %v8229_v5  ;;  %v2873_v49 = vsel %vm2824_vm6, 1.0, %v10195_v3  ;;  %v1588_v0 = vpop.f32.mrf.mxu2 }
 0x342   :  { %4352 = vmatpush.bf16.msk.msrb.mxu1 %vm9022_vm12, %v10047_v11  ;;  %vm9098_vm3 = vmpackc.low %vm2797_vm7, %vm2796_vm11  ;;  %2560 = vmatmul.bf16.vlgmr.msrb.gmra.mxu3 %v10565_v61  ;;  %vm2795_vm11 = vcmp.eq.s32.totalorder %v10391_v58, %v8720_v23  ;;  %vm2818_vm7 = vcmp.eq.s32.totalorder %v5164_v4, %v8720_v23  ;;  %v2898_v7 = vpack.c.bf16 %v2873_v49, %v2873_v49  ;;  %v1630_v49 = vpop.f32.mrf.mxu1 }
 0x343   :  { %2762 = vmatpush.bf16.msra.mxu3 %v2711_v33  ;;  %4396 = vmatpush.bf16.msk.msrb.mxu0 %vm9048_vm0, %v10047_v11  ;;  %vm9113_vm12 = vmpackc.low %vm2821_vm15, %vm2820_vm9  ;;  %vm2794_vm0 = vcmp.eq.s32.totalorder %v10078_v62, %v8720_v23  ;;  %vm2819_vm9 = vcmp.eq.s32.totalorder %v5167_v54, %v8720_v23  ;;  %v1603_v33 = vadd.f32 %v1602_v2, %v1588_v0  ;;  %v1618_v0 = vpop.f32.mrf.mxu0 }
 0x344   :  { %vm9137_vm15 = vmpackc.low %vm2622_vm13, %vm2621_vm5  ;;  %vm2793_vm5 = vcmp.eq.s32.totalorder %v10716_v36, %v8720_v23 }
 0x345   :  { %2735 = vmatmul.bf16.vlgmr.msrb.gmra.mxu1 %v10470_v25  ;;  %4364 = vmatpush.bf16.msk.msrb.mxu2 %vm9082_vm10, %v10047_v11  ;;  %vm9153_vm10 = vmpackc.low %vm2795_vm11, %vm2794_vm0  ;;  %vm2817_vm0 = vcmp.eq.s32.totalorder %v10754_v26, %v8720_v23  ;;  %v1617_v57 = vadd.f32 %v1616_v44, %v1603_v33 }
 0x346   :  { %4404 = vmatpush.bf16.msk.msra.mxu1 %vm9062_vm14, %v10047_v11  ;;  %vm9124_vm14 = vmpackc.low %vm2789_vm8, %vm2788_vm1  ;;  %vm2619_vm1 = vcmp.eq.s32.totalorder %v10799_v29, %v8229_v5  ;;  %vm2620_vm8 = vcmp.eq.s32.totalorder %v10800_v40, %v8229_v5 }
 0x347   :  { %4372 = vmatpush.bf16.msk.msrb.mxu3 %vm9070_vm4, %v10047_v11  ;;  %vm2786_vm4 = vcmp.eq.s32.totalorder %v4844_v20, %v8720_v23  ;;  %4398 = vmatpush.bf16.msk.msrb.mxu0 %vm9098_vm3, %v10047_v11  ;;  %vm9164_vm6 = vmpackc.low %vm2819_vm9, %vm2818_vm7  ;;  %vm2792_vm3 = vcmp.eq.s32.totalorder %v10178_v15, %v8720_v23  ;;  %vm3012_vm7 = vcmp.eq.s32.totalorder %v10722_v60, %v9148_v48 }
 0x348   :  { %vm9175_vm13 = vmpackc.low %vm2787_vm2, %vm2786_vm4  ;;  %vm2785_vm4 = vcmp.eq.s32.totalorder %v10575_v14, %v8720_v23  ;;  %v1631_v44 = vadd.f32 %v1630_v49, %v1617_v57  ;;  %v1604_v1 = vpop.f32.mrf.mxu3  ;;  %v10869_v49 = vld [vmem:[#allocation10_spill] sm:$0xff] }
 0x349   :  { %4366 = vmatpush.bf16.msk.msrb.mxu2 %vm9137_vm15, %v10047_v11  ;;  %vm9186_vm11 = vmpackc.low %vm2620_vm8, %vm2619_vm1  ;;  %vm2784_vm15 = vcmp.eq.s32.totalorder %v4850_v22, %v8720_v23  ;;  %vm2979_vm1 = vcmp.eq.s32.totalorder %v4832_v16, %v9148_v48  ;;  %vm2980_vm8 = vcmp.eq.s32.totalorder %v4835_v17, %v9148_v48  ;;  %v1590_v2 = vpop.f32.mrf.mxu2 }
 0x34a   :  { %4406 = vmatpush.bf16.msk.msra.mxu1 %vm9113_vm12, %v10047_v11  ;;  %vm2816_vm12 = vcmp.eq.s32.totalorder %v5211_v24, %v8720_v23  ;;  %vm9197_vm9 = vmpackc.low %vm2793_vm5, %vm2792_vm3  ;;  %vm2815_vm5 = vcmp.eq.s32.totalorder %v10768_v13, %v8720_v23  ;;  %v1635_v34 = vpack.c.bf16 %v1631_v44, %v1631_v44  ;;  %v1605_v5 = vadd.f32 %v1604_v1, %v1590_v2 }
 0x34b   :  { %4374 = vmatpush.bf16.msk.msrb.mxu3 %vm9124_vm14, %v10047_v11  ;;  %vm3011_vm14 = vcmp.eq.s32.totalorder %v4993_v56, %v9148_v48  ;;  %4400 = vmatpush.bf16.msk.msrb.mxu0 %vm9153_vm10, %v10047_v11  ;;  %vm9208_vm2 = vmpackc.low %vm2817_vm0, %vm2816_vm12  ;;  %vm10842_vm10 = vcmask 1043456   ;;  %vm3010_vm0 = vcmp.eq.s32.totalorder %v10427_v35, %v9148_v48 }
 0x34c   :  { %v2900_v41 = vsel %vm10842_vm10, %v2898_v7, 0  ;;  %vm9220_vm3 = vmpackc.low %vm3012_vm7, %vm3011_vm14  ;;  %vm2782_vm14 = vcmp.eq.s32.totalorder %v10592_v31, %v8720_v23  ;;  %vm2783_vm7 = vcmp.eq.s32.totalorder %v10593_v21, %v8720_v23  ;;  %vm2812_vm10 = vcmp.eq.s32.totalorder %v10778_v46, %v8720_v23  ;;  %v1632_v7 = vpop.f32.mrf.mxu1 }
 0x34d   :  { %4368 = vmatpush.bf16.msk.msrb.mxu2 %vm9186_vm11, %v10047_v11  ;;  %vm4377_vm12 = vmpackc.low %vm2785_vm4, %vm2784_vm15  ;;  %vm2977_vm15 = vcmp.eq.s32.totalorder %v4838_v18, %v9148_v48  ;;  %vm2978_vm4 = vcmp.eq.s32.totalorder %v4841_v19, %v9148_v48  ;;  %v1619_v44 = vadd.f32 %v1618_v0, %v1605_v5  ;;  %v9480_v5 = vpop.f32.mrf.mxu0 }
 0x34e   :  { %4408 = vmatpush.bf16.msk.msra.mxu1 %vm9164_vm6, %v10047_v11  ;;  %vm2814_vm6 = vcmp.eq.s32.totalorder %v10767_v32, %v8720_v23  ;;  %vm9244_vm11 = vmpackc.low %vm2980_vm8, %vm2979_vm1  ;;  %vm2813_vm1 = vcmp.eq.s32.totalorder %v10779_v12, %v8720_v23 }
 0x34f   :  { %4376 = vmatpush.bf16.msk.msrb.mxu3 %vm9175_vm13, %v10047_v11  ;;  %vm3009_vm13 = vcmp.eq.s32.totalorder %v5099_v30, %v9148_v48  ;;  %4402 = vmatpush.bf16.msk.msrb.mxu0 %vm9197_vm9, %v10047_v11  ;;  %vm9264_vm9 = vmpackc.low %vm2815_vm5, %vm2814_vm6  ;;  %vm3008_vm6 = vcmp.eq.s32.totalorder %v5167_v54, %v9148_v48  ;;  %v1633_v0 = vadd.f32 %v1632_v7, %v1619_v44 }
 0x350   :  { %2749 = vmatmul.bf16.vlgmr.msrb.gmra.mxu2 %v10565_v61  ;;  %vm4379_vm8 = vmpackc.low %vm2783_vm7, %vm2782_vm14  ;;  %vm2975_vm14 = vcmp.eq.s32.totalorder %v4844_v20, %v9148_v48  ;;  %vm2976_vm7 = vcmp.eq.s32.totalorder %v10556_v45, %v9148_v48 }
 0x351   :  { %2951 = vmatpush.bf16.msra.mxu2 %v2900_v41  ;;  %vm9302_vm5 = vmpackc.low %vm2978_vm4, %vm2977_vm15  ;;  %vm2810_vm15 = vcmp.eq.s32.totalorder %v10789_v28, %v8720_v23  ;;  %vm2811_vm4 = vcmp.eq.s32.totalorder %v10790_v6, %v8720_v23  ;;  %v9423_v41 = vld [vmem:[%s9870_s3 + $0xf] ss:$0 sm:$0xff]  ;;  %v1636_v33 = vpack.c.bf16 %v1633_v0, %v1633_v0  ;;  %v10885_v0 = vld [vmem:[#allocation16_spill] sm:$0xff] }
 0x352   :  { %4410 = vmatpush.bf16.msk.msra.mxu1 %vm9208_vm2, %v10047_v11  ;;  %vm9280_vm2 = vmpackc.low %vm3010_vm0, %vm3009_vm13  ;;  %2924 = vmatmul.bf16.vlgmr.msrb.gmra.mxu0 %v10470_v25  ;;  %vm2781_vm13 = vcmp.eq.s32.totalorder %v4924_v39, %v8720_v23  ;;  %vm10853_vm0 = vcmask 64512  }
 0x353   :  { %4454 = vmatpush.bf16.msk.msra.mxu0 %vm9220_vm3, %v10047_v11  ;;  %4378 = vmatpush.bf16.msk.msrb.mxu3 %vm4377_vm12, %v10047_v11  ;;  %vm3007_vm3 = vcmp.eq.s32.totalorder %v5164_v4, %v9148_v48  ;;  %vm2780_vm12 = vcmp.eq.s32.totalorder %v4910_v37, %v8720_v23 }
 0x354   :  { %4369 = vmatmul.msk.bf16.vlgmr.msra.gmra.mxu3 %vm10853_vm0, %v5504_v55  ;;  %vm2973_vm0 = vcmp.eq.s32.totalorder %v4850_v22, %v9148_v48  ;;  %v1777_v44 = vpop.f32.mrf.mxu1 }
 0x355   :  { %4422 = vmatpush.bf16.msk.msrb.mxu2 %vm9244_vm11, %v10047_v11  ;;  %vm9315_vm11 = vmpackc.low %vm2813_vm1, %vm2812_vm10  ;;  %vm3005_vm10 = vcmp.eq.s32.totalorder %v5211_v24, %v9148_v48  ;;  %vm3006_vm1 = vcmp.eq.s32.totalorder %v10754_v26, %v9148_v48 }
 0x356   :  { %4412 = vmatpush.bf16.msk.msra.mxu1 %vm9264_vm9, %v10047_v11  ;;  %vm9327_vm9 = vmpackc.low %vm3008_vm6, %vm3007_vm3  ;;  %vm2778_vm3 = vcmp.eq.s32.totalorder %v10298_v9, %v8720_v23  ;;  %vm2779_vm6 = vcmp.eq.s32.totalorder %v10615_v59, %v8720_v23 }
 0x357   :  { %4456 = vmatpush.bf16.msk.msra.mxu0 %vm9280_vm2, %v10047_v11  ;;  %4380 = vmatpush.bf16.msk.msrb.mxu3 %vm4379_vm8, %v10047_v11  ;;  %vm9344_vm2 = vmpackc.low %vm2781_vm13, %vm2780_vm12  ;;  %vm10862_vm12 = vcmask 797696  }
 0x358   :  { %vm9355_vm8 = vmpackc.low %vm2976_vm7, %vm2975_vm14  ;;  %1637 = vst.msk [vmem:[#allocation2 + $0x30] sm:$0xf] %vm10862_vm12, %v1635_v34  ;;  %vm2974_vm14 = vcmp.eq.s32.totalorder %v10575_v14, %v9148_v48  ;;  %vm2808_vm7 = vcmp.eq.s32.totalorder %v10799_v29, %v8720_v23 }
 0x359   :  { %4424 = vmatpush.bf16.msk.msrb.mxu2 %vm9302_vm5, %v10047_v11  ;;  %vm3013_vm5 = vcmp.eq.s32.totalorder %v10186_v42, %v9148_v48  ;;  %vm9375_vm13 = vmpackc.low %vm2811_vm4, %vm2810_vm15  ;;  %vm3003_vm4 = vcmp.eq.s32.totalorder %v10767_v32, %v9148_v48 }
 0x35a   :  { %4414 = vmatpush.bf16.msk.msra.mxu1 %vm9315_vm11, %v10047_v11  ;;  %vm9395_vm11 = vmpackc.low %vm3006_vm1, %vm3005_vm10  ;;  %v3062_v63 = vsel %vm3013_vm5, 1.0, %v10195_v3  ;;  %vm2776_vm1 = vcmp.eq.s32.totalorder %v10628_v38, %v8720_v23  ;;  %vm2996_vm5 = vcmp.eq.s32.totalorder %v10869_v49, %v9148_v48 }
 0x35b   :  { %4458 = vmatpush.bf16.msk.msra.mxu0 %vm9327_vm9, %v10047_v11  ;;  %4382 = vmatpush.bf16.msk.msrb.mxu3 %vm9344_vm2, %v10047_v11  ;;  %vm2809_vm9 = vcmp.eq.s32.totalorder %v10800_v40, %v8720_v23  ;;  %vm4383_vm15 = vmpackc.low %vm2779_vm6, %vm2778_vm3  ;;  %vm3004_vm2 = vcmp.eq.s32.totalorder %v10768_v13, %v9148_v48  ;;  %vm2995_vm6 = vcmp.eq.s32.totalorder %v10632_v27, %v9148_v48 }
 0x35c   :  { %vm4427_vm10 = vmpackc.low %vm2974_vm14, %vm2973_vm0  ;;  %v3087_v1 = vpack.c.bf16 %v3062_v63, %v3062_v63  ;;  %vm2972_vm0 = vcmp.eq.s32.totalorder %v10593_v21, %v9148_v48  ;;  %v10884_v63 = vld [vmem:[#allocation15_spill] sm:$0xff]  ;;  %v1779_v7 = vpop.f32.mrf.mxu1 }
 0x35d   :  { %4426 = vmatpush.bf16.msk.msrb.mxu2 %vm9355_vm8, %v10047_v11  ;;  %vm2777_vm8 = vcmp.eq.s32.totalorder %v10629_v47, %v8720_v23  ;;  %vm9432_vm3 = vmpackc.low %vm2809_vm9, %vm2808_vm7  ;;  %vm3169_vm7 = vcmp.eq.s32.totalorder %v4835_v17, %v9423_v41  ;;  %v10877_v17 = vld [vmem:[#allocation11_spill] sm:$0xff]  ;;  %v10878_v23 = vld [vmem:[#allocation12_spill] sm:$0xff] }
 0x35e   :  { %4416 = vmatpush.bf16.msk.msra.mxu1 %vm9375_vm13, %v10047_v11  ;;  %vm9444_vm12 = vmpackc.low %vm3004_vm2, %vm3003_vm4  ;;  %vm2971_vm13 = vcmp.eq.s32.totalorder %v10592_v31, %v9148_v48  ;;  %vm3002_vm4 = vcmp.eq.s32.totalorder %v10779_v12, %v9148_v48  ;;  %vm10874_vm2 = vcmask 797696  }
 0x35f   :  { %4460 = vmatpush.bf16.msk.msra.mxu0 %vm9395_vm11, %v10047_v11  ;;  %4384 = vmatpush.bf16.msk.msrb.mxu3 %vm4383_vm15, %v10047_v11  ;;  %vm4385_vm14 = vmpackc.low %vm2777_vm8, %vm2776_vm1  ;;  %vm3168_vm11 = vcmp.eq.s32.totalorder %v4832_v16, %v9423_v41  ;;  %vm3001_vm15 = vcmp.eq.s32.totalorder %v10778_v46, %v9148_v48  ;;  %1638 = vst.msk [vmem:[#allocation2 + $0x34] sm:$0xf] %vm10874_vm2, %v1636_v33 }
 0x360   :  { %vm9460_vm9 = vmpackc.low %vm2996_vm5, %vm2995_vm6  ;;  %vm2993_vm1 = vcmp.eq.s32.totalorder %v10877_v17, %v9148_v48  ;;  %vm2994_vm8 = vcmp.eq.s32.totalorder %v10878_v23, %v9148_v48  ;;  %vm10879_vm6 = vcmask 1043456   ;;  %vm2969_vm5 = vcmp.eq.s32.totalorder %v4910_v37, %v9148_v48 }
 0x361   :  { %4428 = vmatpush.bf16.msk.msrb.mxu2 %vm4427_vm10, %v10047_v11  ;;  %vm9472_vm10 = vmpackc.low %vm2972_vm0, %vm2971_vm13  ;;  %v3089_v57 = vsel %vm10879_vm6, %v3087_v1, 0  ;;  %vm2970_vm13 = vcmp.eq.s32.totalorder %v4924_v39, %v9148_v48  ;;  %vm3202_vm0 = vcmp.eq.s32.totalorder %v10186_v42, %v9423_v41  ;;  %vm2967_vm6 = vcmp.eq.s32.totalorder %v10298_v9, %v9148_v48  ;;  %v1791_v42 = vpop.f32.mrf.mxu2  ;;  %v1805_v16 = vpop.f32.mrf.mxu3 }
 0x362   :  { %4418 = vmatpush.bf16.msk.msra.mxu1 %vm9432_vm3, %v10047_v11  ;;  %vm9487_vm3 = vmpackc.low %vm3169_vm7, %vm3168_vm11  ;;  %vm3166_vm11 = vcmp.eq.s32.totalorder %v4838_v18, %v9423_v41  ;;  %vm3167_vm7 = vcmp.eq.s32.totalorder %v4841_v19, %v9423_v41  ;;  %v10883_v19 = vld [vmem:[#allocation36_spill] sm:$0xff]  ;;  %v3251_v34 = vsel %vm3202_vm0, 1.0, %v10195_v3  ;;  %vm3165_vm0 = vcmp.eq.s32.totalorder %v10556_v45, %v9423_v41  ;;  %v1821_v45 = vpop.f32.mrf.mxu0 }
 0x363   :  { %4462 = vmatpush.bf16.msk.msra.mxu0 %vm9444_vm12, %v10047_v11  ;;  %4386 = vmatpush.bf16.msk.msrb.mxu3 %vm4385_vm14, %v10047_v11  ;;  %vm10882_vm12 = vcmask 64512   ;;  %vm4463_vm14 = vmpackc.low %vm3002_vm4, %vm3001_vm15  ;;  %vm2999_vm15 = vcmp.eq.s32.totalorder %v10789_v28, %v9148_v48  ;;  %vm3000_vm4 = vcmp.eq.s32.totalorder %v10790_v6, %v9148_v48  ;;  %v3276_v18 = vpack.c.bf16 %v3251_v34, %v3251_v34 }
 0x364   :  { %4419 = vmatmul.msk.bf16.vlgmr.msra.gmra.mxu2 %vm10882_vm12, %v5504_v55  ;;  %vm4431_vm2 = vmpackc.low %vm2970_vm13, %vm2969_vm5  ;;  %vm2968_vm5 = vcmp.eq.s32.totalorder %v10615_v59, %v9148_v48  ;;  %vm3164_vm13 = vcmp.eq.s32.totalorder %v4844_v20, %v9423_v41  ;;  %v1792_v1 = vadd.f32 %v1791_v42, %v1777_v44 }
 0x365   :  { %2938 = vmatmul.bf16.vlgmr.msra.gmra.mxu1 %v10565_v61  ;;  %4430 = vmatpush.bf16.msk.msrb.mxu2 %vm9472_vm10, %v10047_v11  ;;  %vm2991_vm10 = vcmp.eq.s32.totalorder %v10884_v63, %v9148_v48 }
 0x366   :  { %3140 = vmatpush.bf16.msrb.mxu1 %v3089_v57  ;;  %2910 = vmatmul.bf16.vlgmr.msrb.gmra.mxu3 %v10883_v19 }
 0x367   :  { %4438 = vmatpush.bf16.msk.msra.mxu3 %vm9460_vm9, %v10047_v11  ;;  %vm4439_vm9 = vmpackc.low %vm2994_vm8, %vm2993_vm1  ;;  %vm2992_vm1 = vcmp.eq.s32.totalorder %v10885_v0, %v9148_v48  ;;  %4464 = vmatpush.bf16.msk.msra.mxu0 %vm4463_vm14, %v10047_v11  ;;  %vm2997_vm14 = vcmp.eq.s32.totalorder %v10799_v29, %v9148_v48 }
 0x368   :  { %vm9548_vm8 = vmpackc.low %vm3167_vm7, %vm3166_vm11  ;;  %vm2998_vm11 = vcmp.eq.s32.totalorder %v10800_v40, %v9148_v48 }
 0x369   :  { %4432 = vmatpush.bf16.msk.msrb.mxu2 %vm4431_vm2, %v10047_v11  ;;  %vm4441_vm12 = vmpackc.low %vm2992_vm1, %vm2991_vm10  ;;  %vm2965_vm2 = vcmp.eq.s32.totalorder %v10628_v38, %v9148_v48  ;;  %vm2966_vm10 = vcmp.eq.s32.totalorder %v10629_v47, %v9148_v48 }
 0x36a   :  { %4472 = vmatpush.bf16.msk.msra.mxu1 %vm9487_vm3, %v10047_v11  ;;  %vm4465_vm3 = vmpackc.low %vm3000_vm4, %vm2999_vm15  ;;  %vm2990_vm15 = vcmp.eq.s32.totalorder %v4973_v53, %v9148_v48 }
 0x36b   :  { %4440 = vmatpush.bf16.msk.msra.mxu3 %vm4439_vm9, %v10047_v11  ;;  %vm4433_vm7 = vmpackc.low %vm2968_vm5, %vm2967_vm6  ;;  %vm2989_vm9 = vcmp.eq.s32.totalorder %v4945_v50, %v9148_v48  ;;  %4466 = vmatpush.bf16.msk.msra.mxu0 %vm4465_vm3, %v10047_v11  ;;  %vm3185_vm6 = vcmp.eq.s32.totalorder %v10869_v49, %v9423_v41  ;;  %vm3162_vm3 = vcmp.eq.s32.totalorder %v4850_v22, %v9423_v41 }
 0x36c   :  { %vm9577_vm4 = vmpackc.low %vm3165_vm0, %vm3164_vm13  ;;  %vm3163_vm13 = vcmp.eq.s32.totalorder %v10575_v14, %v9423_v41  ;;  %vm10892_vm0 = vcmask 1043456   ;;  %v1806_v22 = vadd.f32 %v1805_v16, %v1792_v1 }
 0x36d   :  { %vm9586_vm1 = vmpackc.low %vm2998_vm11, %vm2997_vm14  ;;  %4434 = vmatpush.bf16.msk.msrb.mxu2 %vm4433_vm7, %v10047_v11  ;;  %v3278_v33 = vsel %vm10892_vm0, %v3276_v18, 0  ;;  %vm2987_vm14 = vcmp.eq.s32.totalorder %v5057_v8, %v9148_v48  ;;  %vm2988_vm11 = vcmp.eq.s32.totalorder %v5060_v10, %v9148_v48  ;;  %vm3181_vm0 = vcmp.eq.s32.totalorder %v10885_v0, %v9423_v41  ;;  %v4603_v0 = vld [vmem:[#allocation2 + $0x8] sm:$0xff] }
 0x36e   :  { %4474 = vmatpush.bf16.msk.msra.mxu1 %vm9548_vm8, %v10047_v11  ;;  %vm3184_vm8 = vcmp.eq.s32.totalorder %v10632_v27, %v9423_v41  ;;  %vm4443_vm5 = vmpackc.low %vm2990_vm15, %vm2989_vm9  ;;  %vm3182_vm15 = vcmp.eq.s32.totalorder %v10877_v17, %v9423_v41  ;;  %v1820_v14 = vadd.f32 %v9480_v5, %v1806_v22  ;;  %v1793_v27 = vpop.f32.mrf.mxu2  ;;  %v1807_v17 = vpop.f32.mrf.mxu3 }
 0x36f   :  { %4442 = vmatpush.bf16.msk.msra.mxu3 %vm4441_vm12, %v10047_v11  ;;  %vm4435_vm12 = vmpackc.low %vm2966_vm10, %vm2965_vm2  ;;  %4468 = vmatpush.bf16.msk.msra.mxu0 %vm9586_vm1, %v10047_v11  ;;  %vm3160_vm10 = vcmp.eq.s32.totalorder %v10592_v31, %v9423_v41  ;;  %vm3161_vm1 = vcmp.eq.s32.totalorder %v10593_v21, %v9423_v41  ;;  %v1794_v31 = vadd.f32 %v1793_v27, %v1779_v7  ;;  %v1980_v21 = vpop.f32.mrf.mxu1 }
 0x370   :  { %vm4487_vm7 = vmpackc.low %vm3185_vm6, %vm3184_vm8  ;;  %vm2985_vm8 = vcmp.eq.s32.totalorder %v5117_v51, %v9148_v48  ;;  %vm2986_vm6 = vcmp.eq.s32.totalorder %v5120_v52, %v9148_v48  ;;  %v1824_v49 = vpack.c.bf16 %v1820_v14, %v1820_v14 }
 0x371   :  { %vm4477_vm9 = vmpackc.low %vm3163_vm13, %vm3162_vm3  ;;  %4436 = vmatpush.bf16.msk.msrb.mxu2 %vm4435_vm12, %v10047_v11  ;;  %vm3180_vm13 = vcmp.eq.s32.totalorder %v10884_v63, %v9423_v41  ;;  %vm10893_vm12 = vcmask 797696  }
 0x372   :  { %4476 = vmatpush.bf16.msk.msra.mxu1 %vm9577_vm4, %v10047_v11  ;;  %vm3183_vm4 = vcmp.eq.s32.totalorder %v10878_v23, %v9423_v41  ;;  %vm4445_vm2 = vmpackc.low %vm2988_vm11, %vm2987_vm14  ;;  %3127 = vmatmul.bf16.vlgmr.msra.gmra.mxu0 %v10565_v61  ;;  %1826 = vst.msk [vmem:[#allocation2 + $0x38] sm:$0xf] %vm10893_vm12, %v1824_v49  ;;  %vm10894_vm14 = vcmask 64512   ;;  %v1808_v23 = vadd.f32 %v1807_v17, %v1794_v31 }
 0x373   :  { %4444 = vmatpush.bf16.msk.msra.mxu3 %vm4443_vm5, %v10047_v11  ;;  %3329 = vmatpush.bf16.msrb.mxu0 %v3278_v33  ;;  %vm4489_vm5 = vmpackc.low %vm3183_vm4, %vm3182_vm15  ;;  %vm2983_vm15 = vcmp.eq.s32.totalorder %v10078_v62, %v9148_v48  ;;  %vm2984_vm4 = vcmp.eq.s32.totalorder %v10391_v58, %v9148_v48 }
 0x374   :  { %3099 = vmatmul.bf16.vlgmr.msrb.gmra.mxu2 %v10883_v19  ;;  %vm4479_vm3 = vmpackc.low %vm3161_vm1, %vm3160_vm10  ;;  %vm3178_vm1 = vcmp.eq.s32.totalorder %v4945_v50, %v9423_v41 }
 0x375   :  { %4488 = vmatpush.bf16.msk.msra.mxu2 %vm4487_vm7, %v10047_v11  ;;  %4469 = vmatmul.msk.bf16.vlgmr.msrb.gmra.mxu1 %vm10894_vm14, %v5504_v55  ;;  %vm4447_vm11 = vmpackc.low %vm2986_vm6, %vm2985_vm8  ;;  %vm3158_vm7 = vcmp.eq.s32.totalorder %v4910_v37, %v9423_v41  ;;  %v1966_v37 = vpop.f32.mrf.mxu0  ;;  %vm3179_vm8 = vcmp.eq.s32.totalorder %v4973_v53, %v9423_v41  ;;  %vm3200_vm14 = vcmp.eq.s32.totalorder %v4993_v56, %v9423_v41 }
 0x376   :  { %4478 = vmatpush.bf16.msk.msra.mxu1 %vm4477_vm9, %v10047_v11  ;;  %vm3159_vm9 = vcmp.eq.s32.totalorder %v4924_v39, %v9423_v41  ;;  %v1822_v39 = vadd.f32 %v1821_v45, %v1808_v23  ;;  %vm4449_vm6 = vmpackc.low %vm2984_vm4, %vm2983_vm15  ;;  %v1981_v50 = vadd.f32 %v1980_v21, %v1966_v37  ;;  %v1994_v53 = vpop.f32.mrf.mxu2  ;;  %vm3177_vm15 = vcmp.eq.s32.totalorder %v5060_v10, %v9423_v41  ;;  %v2008_v56 = vpop.f32.mrf.mxu3 }
 0x377   :  { %4446 = vmatpush.bf16.msk.msra.mxu3 %vm4445_vm2, %v10047_v11  ;;  %vm4491_vm2 = vmpackc.low %vm3181_vm0, %vm3180_vm13  ;;  %vm2981_vm13 = vcmp.eq.s32.totalorder %v10178_v15, %v9148_v48  ;;  %vm2982_vm0 = vcmp.eq.s32.totalorder %v10716_v36, %v9148_v48  ;;  %vm10895_vm4 = vcmask 797696   ;;  %v1982_v10 = vpop.f32.mrf.mxu1 }
 0x378   :  { %vm4481_vm10 = vmpackc.low %vm3159_vm9, %vm3158_vm7  ;;  %v1825_v5 = vpack.c.bf16 %v1822_v39, %v1822_v39  ;;  %vm3176_vm9 = vcmp.eq.s32.totalorder %v5057_v8, %v9423_v41 }
 0x379   :  { %4490 = vmatpush.bf16.msk.msra.mxu2 %vm4489_vm5, %v10047_v11  ;;  %vm3156_vm5 = vcmp.eq.s32.totalorder %v10298_v9, %v9423_v41  ;;  %vm4493_vm12 = vmpackc.low %vm3179_vm8, %vm3178_vm1  ;;  %v1995_v9 = vadd.f32 %v1994_v53, %v1981_v50  ;;  %vm3155_vm1 = vcmp.eq.s32.totalorder %v10629_v47, %v9423_v41 }
 0x37a   :  { %4480 = vmatpush.bf16.msk.msra.mxu1 %vm4479_vm3, %v10047_v11  ;;  %vm3157_vm3 = vcmp.eq.s32.totalorder %v10615_v59, %v9423_v41  ;;  %1827 = vst.msk [vmem:[#allocation2 + $0x3c] sm:$0xf] %vm10895_vm4, %v1825_v5 }
 0x37b   :  { %4448 = vmatpush.bf16.msk.msra.mxu3 %vm4447_vm11, %v10047_v11  ;;  %vm3201_vm11 = vcmp.eq.s32.totalorder %v10722_v60, %v9423_v41  ;;  %vm4483_vm7 = vmpackc.low %vm3157_vm3, %vm3156_vm5  ;;  %v2009_v8 = vadd.f32 %v2008_v56, %v1995_v9  ;;  %vm3198_vm5 = vcmp.eq.s32.totalorder %v5099_v30, %v9423_v41  ;;  %vm3199_vm3 = vcmp.eq.s32.totalorder %v10427_v35, %v9423_v41 }
 0x37c   :  { %vm4503_vm8 = vmpackc.low %vm3201_vm11, %vm3200_vm14  ;;  %vm10896_vm14 = vcmask 64512  }
 0x37d   :  { %4492 = vmatpush.bf16.msk.msra.mxu2 %vm4491_vm2, %v10047_v11  ;;  %vm4451_vm2 = vmpackc.low %vm2982_vm0, %vm2981_vm13  ;;  %vm3174_vm0 = vcmp.eq.s32.totalorder %v5117_v51, %v9423_v41  ;;  %v2013_v59 = vpack.c.bf16 %v2009_v8, %v2009_v8 }
 0x37e   :  { %4482 = vmatpush.bf16.msk.msra.mxu1 %vm4481_vm10, %v10047_v11  ;;  %vm3154_vm10 = vcmp.eq.s32.totalorder %v10628_v38, %v9423_v41  ;;  %v1968_v38 = vpop.f32.mrf.mxu0  ;;  %vm4505_vm11 = vmpackc.low %vm3199_vm3, %vm3198_vm5  ;;  %v1996_v30 = vpop.f32.mrf.mxu2  ;;  %vm3195_vm5 = vcmp.eq.s32.totalorder %v10754_v26, %v9423_v41  ;;  %vm3170_vm3 = vcmp.eq.s32.totalorder %v10178_v15, %v9423_v41  ;;  %v4607_v15 = vld [vmem:[#allocation2 + $0x28] sm:$0xff] }
 0x37f   :  { %4450 = vmatpush.bf16.msk.msra.mxu3 %vm4449_vm6, %v10047_v11  ;;  %vm4495_vm6 = vmpackc.low %vm3177_vm15, %vm3176_vm9  ;;  %v1983_v35 = vadd.f32 %v1982_v10, %v1968_v38  ;;  %vm3196_vm15 = vcmp.eq.s32.totalorder %v5164_v4, %v9423_v41 }
 0x380   :  { %vm4485_vm13 = vmpackc.low %vm3155_vm1, %vm3154_vm10  ;;  %vm3173_vm10 = vcmp.eq.s32.totalorder %v10391_v58, %v9423_v41  ;;  %v2183_v58 = vpop.f32.mrf.mxu1 }
 0x381   :  { %4494 = vmatpush.bf16.msk.msra.mxu2 %vm4493_vm12, %v10047_v11  ;;  %vm3175_vm12 = vcmp.eq.s32.totalorder %v5120_v52, %v9423_v41  ;;  %v4609_v51 = vld [vmem:[#allocation2 + $0x38] sm:$0xff]  ;;  %v1997_v52 = vadd.f32 %v1996_v30, %v1983_v35 }
 0x382   :  { %4484 = vmatpush.bf16.msk.msra.mxu1 %vm4483_vm7, %v10047_v11  ;;  %4519 = vmatmul.msk.bf16.vlgmr.msrb.gmra.mxu0 %vm10896_vm14, %v5504_v55  ;;  %vm10897_vm7 = vmmov %vm10895_vm4  ;;  %vm3197_vm4 = vcmp.eq.s32.totalorder %v5167_v54, %v9423_v41  ;;  %v2010_v55 = vpop.f32.mrf.mxu3 }
 0x383   :  { %4452 = vmatpush.bf16.msk.msra.mxu3 %vm4451_vm2, %v10047_v11  ;;  %2015 = vst.msk [vmem:[#allocation2 + $0x40] sm:$0xf] %vm10897_vm7, %v2013_v59  ;;  %vm4497_vm9 = vmpackc.low %vm3175_vm12, %vm3174_vm0  ;;  %vm3172_vm2 = vcmp.eq.s32.totalorder %v10078_v62, %v9423_v41  ;;  %v2011_v4 = vadd.f32 %v2010_v55, %v1997_v52  ;;  %3492 = vmatpush.bf16.msra.mxu0 %v4609_v51  ;;  %v4608_v62 = vld [vmem:[#allocation2 + $0x30] sm:$0xff] }
 0x384   :  { %vm4507_vm1 = vmpackc.low %vm3197_vm4, %vm3196_vm15  ;;  %vm3190_vm15 = vcmp.eq.s32.totalorder %v10778_v46, %v9423_v41  ;;  %vm3191_vm4 = vcmp.eq.s32.totalorder %v10779_v12, %v9423_v41  ;;  %v4605_v12 = vld [vmem:[#allocation2 + $0x18] sm:$0xff] }
 0x385   :  { %4496 = vmatpush.bf16.msk.msra.mxu2 %vm4495_vm6, %v10047_v11  ;;  %vm3194_vm6 = vcmp.eq.s32.totalorder %v5211_v24, %v9423_v41  ;;  %v2014_v54 = vpack.c.bf16 %v2011_v4, %v2011_v4  ;;  %vm10898_vm12 = vmmov %vm10897_vm7  ;;  %vm3193_vm7 = vcmp.eq.s32.totalorder %v10768_v13, %v9423_v41 }
 0x386   :  { %4486 = vmatpush.bf16.msk.msra.mxu1 %vm4485_vm13, %v10047_v11  ;;  %3113 = vmatmul.bf16.vlgmr.msra.gmra.mxu3 %v10470_v25  ;;  %vm3171_vm13 = vcmp.eq.s32.totalorder %v10716_v36, %v9423_v41  ;;  %vm4509_vm0 = vmpackc.low %vm3195_vm5, %vm3194_vm6  ;;  %v2169_v24 = vpop.f32.mrf.mxu0  ;;  %v2197_v60 = vpop.f32.mrf.mxu2  ;;  %vm3186_vm5 = vcmp.eq.s32.totalorder %v10799_v29, %v9423_v41  ;;  %v4602_v29 = vld [vmem:[#allocation2] sm:$0xff] }
 0x387   :  { %4504 = vmatpush.bf16.msk.msrb.mxu3 %vm4503_vm8, %v10047_v11  ;;  %vm4499_vm8 = vmpackc.low %vm3173_vm10, %vm3172_vm2  ;;  %2016 = vst.msk [vmem:[#allocation2 + $0x44] sm:$0xf] %vm10898_vm12, %v2014_v54  ;;  %3493 = vmatpush.bf16.msra.mxu0 %v4608_v62  ;;  %vm3188_vm10 = vcmp.eq.s32.totalorder %v10789_v28, %v9423_v41 }
 0x388   :  { %vm4501_vm14 = vmpackc.low %vm3171_vm13, %vm3170_vm3  ;;  %vm3187_vm3 = vcmp.eq.s32.totalorder %v10800_v40, %v9423_v41  ;;  %v2185_v28 = vpop.f32.mrf.mxu1 }
 0x389   :  { %3288 = vmatmul.bf16.vlgmr.msra.gmra.mxu1 %v10883_v19  ;;  %4498 = vmatpush.bf16.msk.msra.mxu2 %vm4497_vm9, %v10047_v11  ;;  %vm4513_vm2 = vmpackc.low %vm3191_vm4, %vm3190_vm15 }
 0x38a   :  { %v2155_v47 = vpop.f32.mrf.mxu3  ;;  %vm10899_vm6 = vmmov %vm10898_vm12 }
 0x38b   :  { %4506 = vmatpush.bf16.msk.msrb.mxu3 %vm4505_vm11, %v10047_v11  ;;  %vm3192_vm11 = vcmp.eq.s32.totalorder %v10767_v32, %v9423_v41  ;;  %v2170_v36 = vadd.f32 %v2169_v24, %v2155_v47  ;;  %3494 = vmatpush.bf16.msra.mxu0 %v4607_v15  ;;  %v4606_v32 = vld [vmem:[#allocation2 + $0x20] sm:$0xff]  ;;  %vm4517_vm13 = vmpackc.low %vm3187_vm3, %vm3186_vm5  ;;  %vm3520_vm5 = vcmask 801792  }
 0x38c   :  { %vm4511_vm9 = vmpackc.low %vm3193_vm7, %vm3192_vm11 }
 0x38d   :  { %4500 = vmatpush.bf16.msk.msra.mxu2 %vm4499_vm8, %v10047_v11  ;;  %v2184_v26 = vadd.f32 %v2183_v58, %v2170_v36 }
 0x38e   :  { %v2171_v48 = vpop.f32.mrf.mxu0  ;;  %v2199_v44 = vpop.f32.mrf.mxu2 }
 0x38f   :  { %4508 = vmatpush.bf16.msk.msrb.mxu3 %vm4507_vm1, %v10047_v11  ;;  %v2198_v13 = vadd.f32 %v2197_v60, %v2184_v26  ;;  %3495 = vmatpush.bf16.msra.mxu0 %v4606_v32  ;;  %vm3189_vm1 = vcmp.eq.s32.totalorder %v10790_v6, %v9423_v41  ;;  %v4604_v6 = vld [vmem:[#allocation2 + $0x10] sm:$0xff] }
 0x390   :  { %vm4515_vm8 = vmpackc.low %vm3189_vm1, %vm3188_vm10  ;;  %v2386_v41 = vpop.f32.mrf.mxu1 }
 0x391   :  { %4502 = vmatpush.bf16.msk.msra.mxu2 %vm4501_vm14, %v10047_v11  ;;  %v2202_v46 = vpack.c.bf16 %v2198_v13, %v2198_v13 }
 0x392   :  { %v2157_v57 = vpop.f32.mrf.mxu3 }
 0x393   :  { %4510 = vmatpush.bf16.msk.msrb.mxu3 %vm4509_vm0, %v10047_v11  ;;  %2204 = vst.msk [vmem:[#allocation2 + $0x48] sm:$0xf] %vm10899_vm6, %v2202_v46  ;;  %3496 = vmatpush.bf16.msra.mxu0 %v4605_v12  ;;  %vm10900_vm0 = vmmov %vm10899_vm6 }
 0x394   :  { %3302 = vmatmul.bf16.vlgmr.msra.gmra.mxu2 %v10470_v25  ;;  %v2172_v25 = vadd.f32 %v2171_v48, %v2157_v57  ;;  %vm10901_vm12 = vmmov %vm10900_vm0 }
 0x395   :  { %vm10902_vm14 = vmmov %vm10900_vm0 }
 0x396   :  { %v2186_v43 = vadd.f32 %v2185_v28, %v2172_v25  ;;  %v2372_v40 = vpop.f32.mrf.mxu0  ;;  %v2344_v34 = vpop.f32.mrf.mxu2  ;;  %vm10903_vm11 = vmmov %vm10900_vm0 }
 0x397   :  { %4512 = vmatpush.bf16.msk.msrb.mxu3 %vm4511_vm9, %v10047_v11  ;;  %3497 = vmatpush.bf16.msra.mxu0 %v4604_v6  ;;  %vm10904_vm7 = vmmov %vm10900_vm0 }
 0x398   :  { %v2200_v19 = vadd.f32 %v2199_v44, %v2186_v43  ;;  %v2388_v45 = vpop.f32.mrf.mxu1  ;;  %vm10905_vm9 = vmmov %vm10900_vm0 }
 0x399   :  { %vm10906_vm15 = vmmov %vm10900_vm0 }
 0x39a   :  { %v2203_v63 = vpack.c.bf16 %v2200_v19, %v2200_v19  ;;  %vm10907_vm4 = vmmov %vm10900_vm0 }
 0x39b   :  { %4514 = vmatpush.bf16.msk.msrb.mxu3 %vm4513_vm2, %v10047_v11  ;;  %3498 = vmatpush.bf16.msra.mxu0 %v4603_v0  ;;  %vm10908_vm2 = vmmov %vm10900_vm0 }
 0x39c   :  { %2205 = vst.msk [vmem:[#allocation2 + $0x4c] sm:$0xf] %vm10900_vm0, %v2203_v63  ;;  %vm10909_vm10 = vmmov %vm10900_vm0 }
 0x39d   :  { %vm10910_vm1 = vmmov %vm10900_vm0 }
 0x39e   :  { %v2374_v3 = vpop.f32.mrf.mxu0  ;;  %v2346_v33 = vpop.f32.mrf.mxu2  ;;  %vm10912_vm6 = vmmov %vm10900_vm0 }
 0x39f   :  { %4516 = vmatpush.bf16.msk.msrb.mxu3 %vm4515_vm8, %v10047_v11  ;;  %3499 = vmatpush.bf16.msra.mxu0 %v4602_v29  ;;  %vm10911_vm8 = vmmov %vm10900_vm0 }
 0x3a2   :  { %v2533_v27 = vpop.f32.mrf.mxu1 }
 0x3a3   :  { %4518 = vmatpush.bf16.msk.msrb.mxu3 %vm4517_vm13, %v10047_v11 }
 0x3a5   :  { %v2358_v2 = vpop.f32.mrf.mxu3 }
 0x3a6   :  { %3316 = vmatmul.bf16.vlgmr.msrb.gmra.mxu3 %v10565_v61  ;;  %v2359_v42 = vadd.f32 %v2358_v2, %v2344_v34  ;;  %v2575_v14 = vpop.f32.mrf.mxu0 }
 0x3a8   :  { %v2373_v18 = vadd.f32 %v2372_v40, %v2359_v42 }
 0x3aa   :  { %v2387_v20 = vadd.f32 %v2386_v41, %v2373_v18  ;;  %v2535_v21 = vpop.f32.mrf.mxu1 }
 0x3ac   :  { %v2391_v1 = vpack.c.bf16 %v2387_v20, %v2387_v20 }
 0x3ad   :  { %v2360_v11 = vpop.f32.mrf.mxu3 }
 0x3ae   :  { %2393 = vst.msk [vmem:[#allocation2 + $0x50] sm:$0xf] %vm10901_vm12, %v2391_v1  ;;  %v2361_v7 = vadd.f32 %v2360_v11, %v2346_v33  ;;  %v2577_v31 = vpop.f32.mrf.mxu0 }
 0x3b0   :  { %v2375_v16 = vadd.f32 %v2374_v3, %v2361_v7 }
 0x3b2   :  { %v2389_v22 = vadd.f32 %v2388_v45, %v2375_v16 }
 0x3b3   :  { %v2547_v49 = vpop.f32.mrf.mxu2 }
 0x3b4   :  { %v2392_v61 = vpack.c.bf16 %v2389_v22, %v2389_v22  ;;  %v2548_v17 = vadd.f32 %v2547_v49, %v2533_v27 }
 0x3b6   :  { %2394 = vst.msk [vmem:[#allocation2 + $0x54] sm:$0xf] %vm10902_vm14, %v2392_v61  ;;  %v2722_v8 = vpop.f32.mrf.mxu0 }
 0x3bb   :  { %v2549_v50 = vpop.f32.mrf.mxu2 }
 0x3bc   :  { %v2550_v53 = vadd.f32 %v2549_v50, %v2535_v21 }
 0x3be   :  { %v2724_v54 = vpop.f32.mrf.mxu0 }
 0x3c2   :  { %v2736_v9 = vpop.f32.mrf.mxu1 }
 0x3c3   :  { %v2737_v38 = vadd.f32 %v2736_v9, %v2722_v8 }
 0x3c5   :  { %v2561_v23 = vpop.f32.mrf.mxu3 }
 0x3c6   :  { %v2562_v37 = vadd.f32 %v2561_v23, %v2548_v17 }
 0x3c8   :  { %v2576_v39 = vadd.f32 %v2575_v14, %v2562_v37 }
 0x3ca   :  { %v2580_v5 = vpack.c.bf16 %v2576_v39, %v2576_v39  ;;  %v2738_v55 = vpop.f32.mrf.mxu1 }
 0x3cb   :  { %v2739_v24 = vadd.f32 %v2738_v55, %v2724_v54  ;;  %v4699_v55 = vmov 3  }
 0x3cc   :  { %2582 = vst.msk [vmem:[#allocation2 + $0x58] sm:$0xf] %vm10903_vm11, %v2580_v5  ;;  %4634 = vset.pattern.permute.xlu1 %v4699_v55  ;;  %4633 = vset.pattern.permute.xlu2 %v4699_v55  ;;  %v3602_v55 = vld [vmem:[%s9872_s5 + $0x28] sm:$0xff] }
 0x3cd   :  { %v2563_v56 = vpop.f32.mrf.mxu3 }
 0x3ce   :  { %v2564_v10 = vadd.f32 %v2563_v56, %v2550_v53 }
 0x3cf   :  { %v2925_v26 = vpop.f32.mrf.mxu0 }
 0x3d0   :  { %v2578_v59 = vadd.f32 %v2577_v31, %v2564_v10  ;;  %v4522_v10 = vld [vmem:[%s9869_s2] sm:$0xf] }
 0x3d2   :  { %v2581_v35 = vpack.c.bf16 %v2578_v59, %v2578_v59  ;;  %v4601_v59 = vld [vmem:[%s9869_s2 + $0x4] sm:$0xf0] }
 0x3d3   :  { %v2750_v30 = vpop.f32.mrf.mxu2 }
 0x3d4   :  { %v2751_v51 = vadd.f32 %v2750_v30, %v2737_v38  ;;  %2583 = vst.msk [vmem:[#allocation2 + $0x5c] sm:$0xf] %vm10904_vm7, %v2581_v35  ;;  %v4523_v35 = vor.u32 %v4601_v59, %v4522_v10  ;;  %v3609_v10 = vld [vmem:[%s9872_s5 + $0x60] sm:$0x3]  ;;  %vm3616_vm7 = vcmask 1041408   ;;  %v3608_v59 = vld [vmem:[%s9872_s5 + $0x58] sm:$0xff] }
 0x3d5   :  { %4592 = vmatpush.msk.msrb.mxu2 %vm3616_vm7, %v3609_v10 }
 0x3d6   :  { %3500 = vmatmul.bf16.vlgmr.msra.gmra.mxu0 %v4523_v35  ;;  %v3606_v35 = vld [vmem:[%s9872_s5 + $0x48] sm:$0xff] }
 0x3d7   :  { %v2764_v52 = vpop.f32.mrf.mxu3  ;;  %v2927_v28 = vpop.f32.mrf.mxu0  ;;  %3624 = vmatpush.msrb.mxu2 %v3608_v59 }
 0x3d8   :  { %v2765_v4 = vadd.f32 %v2764_v52, %v2751_v51  ;;  %v9781_v51 = vld [vmem:[%s9873_s6 + $0x8] sm:$0xff]  ;;  %v9786_v52 = vld [vmem:[%s9873_s6] sm:$0xff] }
 0x3d9   :  { %3383 = vperm.xlu1 %4634, %v9781_v51   ;;  %3378 = vperm.xlu2 %4633, %v9786_v52  }
 0x3da   :  { %v2769_v62 = vpack.c.bf16 %v2765_v4, %v2765_v4 }
 0x3db   :  { %v2752_v15 = vpop.f32.mrf.mxu2 }
 0x3dc   :  { %2771 = vst.msk [vmem:[#allocation2 + $0x60] sm:$0xf] %vm10905_vm9, %v2769_v62  ;;  %v2753_v58 = vadd.f32 %v2752_v15, %v2739_v24  ;;  %v4613_v24 = vld [vmem:[#allocation2 + $0x58] sm:$0xff]  ;;  %v4612_v15 = vld [vmem:[#allocation2 + $0x50] sm:$0xff] }
 0x3df   :  { %v2766_v47 = vpop.f32.mrf.mxu3 }
 0x3e0   :  { %v2767_v36 = vadd.f32 %v2766_v47, %v2753_v58  ;;  %v4611_v58 = vld [vmem:[#allocation2 + $0x48] sm:$0xff]  ;;  %v4600_v47 = vld [vmem:[%s9869_s2 + $0x4] sm:$0xf] }
 0x3e2   :  { %v2770_v60 = vpack.c.bf16 %v2767_v36, %v2767_v36  ;;  %v2939_v32 = vpop.f32.mrf.mxu1  ;;  %v4524_v36 = vld [vmem:[%s9869_s2 + $0x8] sm:$0xf0] }
 0x3e4   :  { %2772 = vst.msk [vmem:[#allocation2 + $0x64] sm:$0xf] %vm10906_vm15, %v2770_v60  ;;  %v4610_v60 = vld [vmem:[#allocation2 + $0x40] sm:$0xff] }
 0x3e7   :  { %v2953_v12 = vpop.f32.mrf.mxu2 }
 0x3e9   :  { %v2911_v13 = vpop.f32.mrf.mxu3 }
 0x3ea   :  { %v2926_v46 = vadd.f32 %v2925_v26, %v2911_v13  ;;  %v2941_v44 = vpop.f32.mrf.mxu1  ;;  %v4527_v26 = vor.u32 %v4600_v47, %v4524_v36  ;;  %v4702_v47 = vmov 6  }
 0x3eb   :  { %v4614_v62 = vld [vmem:[#allocation2 + $0x60] sm:$0xff] }
 0x3ec   :  { %v2940_v48 = vadd.f32 %v2939_v32, %v2926_v46 }
 0x3ee   :  { %v2954_v57 = vadd.f32 %v2953_v12, %v2940_v48 }
 0x3ef   :  { %v2955_v63 = vpop.f32.mrf.mxu2  ;;  %v3128_v41 = vpop.f32.mrf.mxu0 }
 0x3f0   :  { %v2958_v25 = vpack.c.bf16 %v2954_v57, %v2954_v57 }
 0x3f1   :  { %v2913_v43 = vpop.f32.mrf.mxu3 }
 0x3f2   :  { %2960 = vst.msk [vmem:[#allocation2 + $0x68] sm:$0xf] %vm10907_vm4, %v2958_v25  ;;  %v2928_v6 = vadd.f32 %v2927_v28, %v2913_v43  ;;  %v3142_v42 = vpop.f32.mrf.mxu1  ;;  %vm3643_vm4 = vcmask 15360  }
 0x3f4   :  { %v2942_v19 = vadd.f32 %v2941_v44, %v2928_v6 }
 0x3f6   :  { %v2956_v0 = vadd.f32 %v2955_v63, %v2942_v19 }
 0x3f7   :  { %v3100_v40 = vpop.f32.mrf.mxu2  ;;  %v3130_v11 = vpop.f32.mrf.mxu0 }
 0x3f8   :  { %v2959_v29 = vpack.c.bf16 %v2956_v0, %v2956_v0 }
 0x3fa   :  { %2961 = vst.msk [vmem:[#allocation2 + $0x6c] sm:$0xf] %vm10908_vm2, %v2959_v29  ;;  %v3144_v16 = vpop.f32.mrf.mxu1 }
 0x3ff   :  { %v3102_v45 = vpop.f32.mrf.mxu2  ;;  %v3331_v31 = vpop.f32.mrf.mxu0 }
 0x401   :  { %v4615_v54 = vld [vmem:[#allocation2 + $0x68] sm:$0xff] }
 0x406   :  { %v3289_v27 = vpop.f32.mrf.mxu1 }
 0x407   :  { %v3333_v56 = vpop.f32.mrf.mxu0 }
 0x409   :  { %v3114_v34 = vpop.f32.mrf.mxu3 }
 0x40a   :  { %v3115_v2 = vadd.f32 %v3114_v34, %v3100_v40 }
 0x40c   :  { %v3129_v18 = vadd.f32 %v3128_v41, %v3115_v2 }
 0x40e   :  { %v3143_v20 = vadd.f32 %v3142_v42, %v3129_v18  ;;  %v3291_v50 = vpop.f32.mrf.mxu1 }
 0x410   :  { %v3147_v3 = vpack.c.bf16 %v3143_v20, %v3143_v20 }
 0x411   :  { %v3116_v1 = vpop.f32.mrf.mxu3 }
 0x412   :  { %3149 = vst.msk [vmem:[#allocation2 + $0x70] sm:$0xf] %vm10909_vm10, %v3147_v3  ;;  %v3117_v33 = vadd.f32 %v3116_v1, %v3102_v45  ;;  %v4700_v3 = vmov 5   ;;  %v4701_v45 = vmov 4  }
 0x413   :  { %4636 = vset.pattern.permute.xlu1 %v4700_v3  ;;  %4635 = vset.pattern.permute.xlu0 %v4701_v45 }
 0x414   :  { %v3131_v7 = vadd.f32 %v3130_v11, %v3117_v33  ;;  %4637 = vset.pattern.permute.xlu2 %v4701_v45 }
 0x416   :  { %v3145_v22 = vadd.f32 %v3144_v16, %v3131_v7 }
 0x417   :  { %v3303_v14 = vpop.f32.mrf.mxu2 }
 0x418   :  { %v3148_v61 = vpack.c.bf16 %v3145_v22, %v3145_v22  ;;  %v3304_v49 = vadd.f32 %v3303_v14, %v3289_v27 }
 0x41a   :  { %3150 = vst.msk [vmem:[#allocation2 + $0x74] sm:$0xf] %vm10910_vm1, %v3148_v61 }
 0x41f   :  { %v3305_v37 = vpop.f32.mrf.mxu2 }
 0x420   :  { %v3306_v5 = vadd.f32 %v3305_v37, %v3291_v50 }
 0x421   :  { %v4616_v4 = vld [vmem:[#allocation2 + $0x70] sm:$0xff] }
 0x429   :  { %v3317_v21 = vpop.f32.mrf.mxu3 }
 0x42a   :  { %v3318_v17 = vadd.f32 %v3317_v21, %v3304_v49 }
 0x42c   :  { %v3332_v23 = vadd.f32 %v3331_v31, %v3318_v17 }
 0x42e   :  { %v3336_v39 = vpack.c.bf16 %v3332_v23, %v3332_v23 }
 0x430   :  { %3338 = vst.msk [vmem:[#allocation2 + $0x78] sm:$0xf] %vm10911_vm8, %v3336_v39  ;;  %vm3679_vm8 = vcmask 8192  }
 0x431   :  { %v3319_v53 = vpop.f32.mrf.mxu3 }
 0x432   :  { %v3320_v9 = vadd.f32 %v3319_v53, %v3306_v5 }
 0x433   :  { %v3379_v13 = vpop.permute.xlu2 %3378 }
 0x434   :  { %v3334_v8 = vadd.f32 %v3333_v56, %v3320_v9 }
 0x436   :  { %v3337_v38 = vpack.c.bf16 %v3334_v8, %v3334_v8 }
 0x438   :  { %3339 = vst.msk [vmem:[#allocation2 + $0x7c] sm:$0xf] %vm10912_vm6, %v3337_v38  ;;  %v3607_v38 = vld [vmem:[%s9872_s5 + $0x50] sm:$0xff] }
 0x439   :  { %3625 = vmatpush.msrb.mxu2 %v3607_v38 }
 0x43b   :  { %3626 = vmatpush.msrb.mxu2 %v3606_v35 }
 0x43f   :  { %v4617_v30 = vld [vmem:[#allocation2 + $0x78] sm:$0xff] }
 0x440   :  { %3506 = vmatpush.bf16.msrb.mxu1 %v4617_v30  ;;  %v3605_v30 = vld [vmem:[%s9872_s5 + $0x40] sm:$0xff] }
 0x441   :  { %3627 = vmatpush.msrb.mxu2 %v3605_v30 }
 0x444   :  { %3507 = vmatpush.bf16.msrb.mxu1 %v4616_v4  ;;  %v3601_v4 = vld [vmem:[%s9872_s5 + $0x20] sm:$0xff] }
 0x448   :  { %3508 = vmatpush.bf16.msrb.mxu1 %v4615_v54  ;;  %v3600_v54 = vld [vmem:[%s9872_s5 + $0x18] sm:$0xff] }
 0x44b   :  { %v3384_v25 = vpop.permute.xlu1 %3383 }
 0x44c   :  { %3509 = vmatpush.bf16.msrb.mxu1 %v4614_v62  ;;  %v3599_v62 = vld [vmem:[%s9872_s5 + $0x10] sm:$0xff] }
 0x450   :  { %3510 = vmatpush.bf16.msrb.mxu1 %v4613_v24  ;;  %v3598_v24 = vld [vmem:[%s9872_s5 + $0x8] sm:$0xff] }
 0x453   :  { %v3501_v32 = vpop.f32.mrf.mxu0 }
 0x454   :  { %3511 = vmatpush.bf16.msrb.mxu1 %v4612_v15  ;;  %v3502_v46 = vadd.f32 %v3501_v32, %v3379_v13  ;;  %v3597_v15 = vld [vmem:[%s9872_s5] sm:$0xff] }
 0x458   :  { %3512 = vmatpush.bf16.msrb.mxu1 %v4611_v58  ;;  %v3653_v58 = vld [vmem:[%s9873_s6] sm:$0x1] }
 0x45b   :  { %v3503_v28 = vpop.f32.mrf.mxu0 }
 0x45c   :  { %3513 = vmatpush.bf16.msrb.mxu1 %v4610_v60  ;;  %v3504_v43 = vadd.f32 %v3503_v28, %v3384_v25 }
 0x45f   :  { %3514 = vmatmul.bf16.vlgmr.msrb.gmra.mxu1 %v4527_v26 }
 0x4dc   :  { %v3515_v12 = vpop.f32.mrf.mxu1 }
 0x4dd   :  { %v3516_v48 = vadd.f32 %v3515_v12, %v3502_v46 }
 0x4df   :  { %v3521_v57 = vsel %vm3520_vm5, %v3516_v48, 0.0 }
 0x4e0   :  { %3522 = vadd.xlane.f32.xlu0 %v3521_v57  ;;  %v3593_v57 = vld [vmem:[%s9871_s4] sm:$0xff] }
 0x4e4   :  { %v3517_v6 = vpop.f32.mrf.mxu1 }
 0x4e5   :  { %v3518_v44 = vadd.f32 %v3517_v6, %v3504_v43 }
 0x4e7   :  { %v3524_v19 = vsel %vm3520_vm5, %v3518_v44, 0.0 }
 0x4e8   :  { %3525 = vadd.xlane.f32.xlu2 %v3524_v19 }
 0x553   :  { %v3523_v63 = vpop.xlane.xlu0 %3522 }
 0x554   :  { %v3527_v0 = vmul.f32 0.010204081, %v3523_v63 }
 0x556   :  { %v9798_v29 = vsub.f32 %v3516_v48, %v3527_v0 }
 0x558   :  { %v3531_v40 = vmul.f32 %v9798_v29, %v9798_v29 }
 0x55a   :  { %v3533_v41 = vsel %vm3520_vm5, %v3531_v40, 0.0 }
 0x55b   :  { %3534 = vadd.xlane.f32.xlu1 %v3533_v41  ;;  %v3526_v34 = vpop.xlane.xlu2 %3525 }
 0x55c   :  { %v3528_v2 = vmul.f32 0.010204081, %v3526_v34 }
 0x55e   :  { %v9803_v42 = vsub.f32 %v3518_v44, %v3528_v2  ;;  %v3594_v44 = vld [vmem:[%s9871_s4 + $0x8] sm:$0xff]  ;;  %s4703_s4 = smov [#allocation3]  }
 0x55f   :  { %s3686_s18 = sshll.u32 %s4703_s4, 4  ;;  %s3687_s18 = int_to_ptr.vmem [resolvable:$true] %s3686_s18 }
 0x560   :  { %v3532_v18 = vmul.f32 %v9803_v42, %v9803_v42 }
 0x562   :  { %v3536_v20 = vsel %vm3520_vm5, %v3532_v18, 0.0 }
 0x563   :  { %3537 = vadd.xlane.f32.xlu2 %v3536_v20 }
 0x574   :  { %3578 = vperm.xlu1 %4636, %v9786_v52  }
 0x57c   :  { %3582 = vperm.xlu1 %4636, %v9781_v51  }
 0x5ce   :  { %v3535_v1 = vpop.xlane.xlu1 %3534 }
 0x5cf   :  { %v3539_v33 = vmul.f32 0.010204081, %v3535_v1 }
 0x5d1   :  { %v3541_v11 = vadd.f32 1e-05, %v3539_v33 }
 0x5d3   :  { %4660 = vrsqrt.f32 %v3541_v11  ;;  %vm3549_vm13 = vweird.f32 %v3541_v11 }
 0x5d6   :  { %v3538_v7 = vpop.xlane.xlu2 %3537 }
 0x5d7   :  { %v3540_v16 = vmul.f32 0.010204081, %v3538_v7 }
 0x5d9   :  { %v4661_v22 = vpop.eup %4660  ;;  %v3542_v61 = vadd.f32 1e-05, %v3540_v16 }
 0x5da   :  { %v3544_v14 = vmul.f32 %v4661_v22, %v3541_v11  ;;  %vm3550_vm3 = vweird.f32 %v4661_v22 }
 0x5db   :  { %4662 = vrsqrt.f32 %v3542_v61  ;;  %vm3551_vm0 = vmor %vm3549_vm13, %vm3550_vm3  ;;  %vm3559_vm14 = vweird.f32 %v3542_v61 }
 0x5dc   :  { %v3545_v27 = vmul.f32 %v4661_v22, %v3544_v14 }
 0x5de   :  { %v3546_v49 = vmul.f32 0.5, %v3545_v27 }
 0x5e0   :  { %v3547_v31 = vsub.f32 1.5, %v3546_v49 }
 0x5e1   :  { %v4663_v21 = vpop.eup %4662 }
 0x5e2   :  { %v3554_v17 = vmul.f32 %v4663_v21, %v3542_v61  ;;  %v3548_v23 = vmul.f32 %v4661_v22, %v3547_v31  ;;  %vm3560_vm12 = vweird.f32 %v4663_v21 }
 0x5e3   :  { %vm3561_vm11 = vmor %vm3559_vm14, %vm3560_vm12 }
 0x5e4   :  { %v3555_v37 = vmul.f32 %v4663_v21, %v3554_v17  ;;  %v3552_v39 = vsel %vm3551_vm0, %v4661_v22, %v3548_v23 }
 0x5e5   :  { %v3563_v50 = vmul.f32 %v3552_v39, %v9786_v52  ;;  %v3603_v52 = vld [vmem:[%s9872_s5 + $0x30] sm:$0xff] }
 0x5e6   :  { %v3556_v5 = vmul.f32 0.5, %v3555_v37  ;;  %v3579_v36 = vpop.permute.xlu1 %3578 }
 0x5e7   :  { %3567 = vperm.xlu0 %4635, %v3563_v50  }
 0x5e8   :  { %v3557_v53 = vsub.f32 1.5, %v3556_v5 }
 0x5ea   :  { %v3558_v9 = vmul.f32 %v4663_v21, %v3557_v53 }
 0x5ec   :  { %v3562_v56 = vsel %vm3561_vm11, %v4663_v21, %v3558_v9 }
 0x5ed   :  { %v3564_v8 = vmul.f32 %v3562_v56, %v9781_v51  ;;  %v3604_v51 = vld [vmem:[%s9872_s5 + $0x38] sm:$0xff] }
 0x5ee   :  { %3628 = vmatpush.msrb.mxu2 %v3604_v51  ;;  %v3583_v46 = vpop.permute.xlu1 %3582 }
 0x5ef   :  { %3572 = vperm.xlu2 %4637, %v3564_v8   ;;  %4639 = vset.pattern.permute.xlu0 %v4702_v47 }
 0x5f0   :  { %3629 = vmatpush.msrb.mxu2 %v3603_v52 }
 0x5f2   :  { %3630 = vmatpush.msrb.mxu2 %v3602_v55 }
 0x5f4   :  { %3631 = vmatpush.msrb.mxu2 %v3601_v4 }
 0x5f6   :  { %3632 = vmatpush.msrb.mxu2 %v3600_v54 }
 0x5f7   :  { %4638 = vset.pattern.permute.xlu2 %v4702_v47 }
 0x5f8   :  { %3633 = vmatpush.msrb.mxu2 %v3599_v62  ;;  %3656 = vperm.xlu2 %4638, %v3653_v58  }
 0x5fa   :  { %3634 = vmatpush.msrb.mxu2 %v3598_v24 }
 0x5fc   :  { %3635 = vmatpush.msrb.mxu2 %v3597_v15 }
 0x649   :  { %v3573_v60 = vpop.permute.xlu2 %3572 }
 0x64a   :  { %v3576_v32 = vmul.f32 %v3573_v60, %v9803_v42 }
 0x64c   :  { %v3586_v48 = vadd.f32 %v3583_v46, %v3576_v32 }
 0x64e   :  { %v3590_v6 = vmul.f32 0.2, %v3586_v48  ;;  %vm3588_vm15 = vcmp.ge.f32.partialorder %v3586_v48, 0.0 }
 0x650   :  { %v3592_v19 = vsel %vm3588_vm15, %v3586_v48, %v3590_v6 }
 0x651   :  { %v3596_v63 = vmul.f32 %v3594_v44, %v3592_v19 }
 0x652   :  { %v3657_v45 = vpop.permute.xlu2 %3656 }
 0x659   :  { %v3568_v26 = vpop.permute.xlu0 %3567 }
 0x65a   :  { %v3575_v13 = vmul.f32 %v3568_v26, %v9798_v29 }
 0x65c   :  { %v3585_v12 = vadd.f32 %v3579_v36, %v3575_v13 }
 0x65e   :  { %vm3587_vm9 = vcmp.ge.f32.partialorder %v3585_v12, 0.0  ;;  %v3589_v25 = vmul.f32 0.2, %v3585_v12 }
 0x660   :  { %v3591_v28 = vsel %vm3587_vm9, %v3585_v12, %v3589_v25 }
 0x661   :  { %v3595_v43 = vmul.f32 %v3593_v57, %v3591_v28 }
 0x663   :  { %4593 = vmatmul.msk.f32.vlgmr.msrb.gmra.mxu2 %vm3520_vm5, %v3595_v43 }
 0x66b   :  { %4594 = vmatmul.msk.f32.gmra.mxu2 %vm3520_vm5, %v3596_v63 }
 0x6e6   :  { %v3637_v0 = vpop.f32.mrf.mxu2 }
 0x6e7   :  { %v3644_v40 = vsel %vm3643_vm4, %v3637_v0, 0.0 }
 0x6ee   :  { %v3640_v29 = vpop.f32.mrf.mxu2 }
 0x6ef   :  { %v3645_v41 = vsel %vm3643_vm4, %v3640_v29, 0.0 }
 0x6f0   :  { %v3646_v34 = vadd.f32 %v3645_v41, %v3644_v40 }
 0x6f2   :  { %v3647_v2 = vrot.slane %v3646_v34, 4 }
 0x6f4   :  { %v3648_v42 = vadd.f32 %v3647_v2, %v3646_v34 }
 0x6f6   :  { %v3649_v18 = vrot.slane %v3648_v42, 2 }
 0x6f8   :  { %v3650_v20 = vadd.f32 %v3649_v18, %v3648_v42 }
 0x6fa   :  { %v3651_v3 = vrot.slane %v3650_v20, 1 }
 0x6fc   :  { %v3652_v1 = vadd.f32 %v3651_v3, %v3650_v20 }
 0x6fe   :  { %v3659_v33 = vadd.f32 %v3657_v45, %v3652_v1 }
 0x700   :  { %v3660_v11 = vsub.f32 0.0, %v3659_v33 }
 0x702   :  { %v3661_v7 = vmul.f32 1.442695, %v3660_v11 }
 0x704   :  { %4664 = vpow2.f32 %v3661_v7 }
 0x70a   :  { %v4665_v16 = vpop.eup %4664 }
 0x70b   :  { %v3663_v22 = vadd.f32 1.0, %v4665_v16 }
 0x70d   :  { %4666 = vrcp.f32 %v3663_v22  ;;  %v3675_v49 = vand.u32 2147483648, %v3663_v22  ;;  %v3673_v21 = vand.u32 2147483647, %v3663_v22  ;;  %vm3669_vm10 = vweird.f32 %v3663_v22 }
 0x70f   :  { %v3676_v23 = vor.u32 1.1754944e-38, %v3675_v49  ;;  %vm3674_vm6 = vcmp.eq.f32.partialorder %v3673_v21, 8.507059e+37 }
 0x713   :  { %v4667_v61 = vpop.eup %4666 }
 0x714   :  { %v3665_v14 = vmul.f32 %v4667_v61, %v3663_v22  ;;  %vm3670_vm2 = vweird.f32 %v4667_v61 }
 0x715   :  { %vm3671_vm1 = vmor %vm3669_vm10, %vm3670_vm2 }
 0x716   :  { %v3666_v27 = vsub.f32 1.0, %v3665_v14 }
 0x718   :  { %v3667_v31 = vmul.f32 %v4667_v61, %v3666_v27 }
 0x71a   :  { %v3668_v17 = vadd.f32 %v4667_v61, %v3667_v31 }
 0x71c   :  { %v3672_v37 = vsel %vm3671_vm1, %v4667_v61, %v3668_v17 }
 0x71d   :  { %v3677_v39 = vsel %vm3674_vm6, %v3676_v23, %v3672_v37 }
 0x71e   :  { %3680 = vst.msk [vmem:[#allocation3] sm:$0x1] %vm3679_vm8, %v3677_v39 }
 0x71f   :  { %3691 = dma.vmem_to_hbm [thread:$0]  %s3687_s18, 16, %s3689_s0, [#allocation4]  }
 0x720   :  { %4692 = dma.done.wait [#allocation4], 16  }
 0x721   :  { %4693 = vsyncadd [#allocation4], 4294967280 }
 0x722   :  { %3696 = vsyncpa [#allocation4], 1 }

</bundles_post_ra>
